<compile_context>
chip_gen: v7x
topology: tpu7x:2x2x1
jax: 0.10.0
libtpu: 0.0.40
codegen_flags: <defaults>
</compile_context>

<pallas_src>
import functools

import jax
import jax.numpy as jnp
from jax import lax
from jax.experimental import pallas as pl
from jax.experimental.pallas import tpu as pltpu

LANE = 128
CHUNK = 256  # M-chunk: (256,128) f32 accumulator = 32 vregs


def _round_up(x, m):
    return ((x + m - 1) // m) * m


def _params():
    return pltpu.CompilerParams(dimension_semantics=("parallel",))


# -----------------------------------------------------------------------------
# Fused GEMM kernel: conv (tap-packed K) + folded BN + optional residual + ReLU,
# writing straight into the next layer's zero-halo padded layout.
# -----------------------------------------------------------------------------
def conv_gemm(patches, w, Ho, Wo, *, relu=True, residual=None):
    """patches : (N, (Ho+2)*(Wo+2), Kp) bf16  tap-packed rows, zero at halo positions
    w       : (Kp, 128) bf16               BN-scale-folded weights (+bias row, +proj rows)
    residual: (N, (Ho+2)*(Wo+2), 128) bf16 identity shortcut in the same padded layout
    returns : (N, (Ho+2)*(Wo+2), 128) bf16 zero-halo padded activation
    """
    N, Mp, Kp = patches.shape
    Coutp = w.shape[1]
    assert Mp == (Ho + 2) * (Wo + 2)
    has_res = residual is not None

    def kernel(*refs):
        if has_res:
            x_ref, w_ref, r_ref, o_ref = refs
        else:
            x_ref, w_ref, o_ref = refs
            r_ref = None
        # M-chunked GEMM: per-chunk f32 accumulator stays in registers, stored once.
        for r0 in range(0, Mp, CHUNK):
            rows = min(CHUNK, Mp - r0)
            y = jnp.dot(x_ref[0, pl.ds(r0, rows), :], w_ref[...],
                        preferred_element_type=jnp.float32)
            if has_res:
                y = y + r_ref[0, pl.ds(r0, rows), :].astype(jnp.float32)
            if relu:
                y = jnp.maximum(y, 0.0)
            # Halo rows: patch row (incl. ones channel) is all-zero, residual halo is
            # zero -> y is exactly 0 there, so the stored activation keeps a zero halo.
            o_ref[0, pl.ds(r0, rows), :] = y.astype(o_ref.dtype)

    in_specs = [
        pl.BlockSpec((1, Mp, Kp), lambda n: (n, 0, 0)),
        pl.BlockSpec((Kp, Coutp), lambda n: (0, 0)),
    ]
    args = [patches, w]
    if has_res:
        in_specs.append(pl.BlockSpec((1, Mp, Coutp), lambda n: (n, 0, 0)))
        args.append(residual)

    return pl.pallas_call(
        kernel,
        out_shape=jax.ShapeDtypeStruct((N, Mp, Coutp), jnp.bfloat16),
        grid=(N,),
        in_specs=in_specs,
        out_specs=pl.BlockSpec((1, Mp, Coutp), lambda n: (n, 0, 0)),
        compiler_params=_params(),
    )(*args)


# -----------------------------------------------------------------------------
# Fused AdaptiveAvgPool2d(1) + Linear kernel (halo is zero, so summing all rows
# equals summing the Ho*Wo valid pixels).
# -----------------------------------------------------------------------------
def pool_fc(act, Ho, Wo, w_fc, b_fc, num_classes):
    N, L, C = act.shape
    inv = 1.0 / float(Ho * Wo)

    def kernel(x_ref, w_ref, b_ref, o_ref):
        pooled = jnp.sum(x_ref[0].astype(jnp.float32), axis=0, keepdims=True) * inv
        y = jnp.dot(pooled.astype(jnp.bfloat16), w_ref[...],
                    preferred_element_type=jnp.float32)
        o_ref[0] = y + b_ref[...]

    out = pl.pallas_call(
        kernel,
        out_shape=jax.ShapeDtypeStruct((N, 1, LANE), jnp.float32),
        grid=(N,),
        in_specs=[
            pl.BlockSpec((1, L, C), lambda n: (n, 0, 0)),
            pl.BlockSpec((LANE, LANE), lambda n: (0, 0)),
            pl.BlockSpec((1, LANE), lambda n: (0, 0)),
        ],
        out_specs=pl.BlockSpec((1, 1, LANE), lambda n: (n, 0, 0)),
        compiler_params=_params(),
    )(act, w_fc, b_fc)
    return out[:, 0, :num_classes]


# -----------------------------------------------------------------------------
# Tap-packed patch extraction (small bf16 slicing/concat glue; no pad to 128 per tap).
# -----------------------------------------------------------------------------
def build_patches(x4, Ho, Wo, stride, kp, extra=None):
    """x4: (N, Hi+2, Wi+2, C) bf16, zero halo, REAL channels only.
    Returns (N, (Ho+2)*(Wo+2), kp) bf16 where row r of the padded output geometry
    holds [tap(0,0) ch | ... | tap(2,2) ch | extra ch | 1.0] for valid positions
    and all zeros for halo positions."""
    N = x4.shape[0]
    taps = []
    for di in range(3):
        for dj in range(3):
            taps.append(x4[:, di:di + stride * (Ho - 1) + 1:stride,
                              dj:dj + stride * (Wo - 1) + 1:stride, :])
    if extra is not None:
        taps.append(extra)
    taps.append(jnp.ones((N, Ho, Wo, 1), jnp.bfloat16))          # bias carrier
    pat = jnp.concatenate(taps, axis=-1)                          # (N, Ho, Wo, K)
    k = pat.shape[-1]
    pat = jnp.pad(pat, ((0, 0), (1, 1), (1, 1), (0, kp - k)))     # halo rows/cols -> 0
    return pat.reshape(N, (Ho + 2) * (Wo + 2), kp)


# -----------------------------------------------------------------------------
# Deterministic raw parameters (shapes follow ResNet.__init__)
# -----------------------------------------------------------------------------
def init_conv(key, cout, cin, k):
    std = (2.0 / (cin * k * k)) ** 0.5
    return jax.random.normal(key, (cout, cin, k, k), jnp.float32) * std


def init_bn(key, c):
    k1, k2, k3, k4 = jax.random.split(key, 4)
    gamma = jax.random.uniform(k1, (c,), jnp.float32, 0.5, 1.5)
    beta = jax.random.normal(k2, (c,), jnp.float32) * 0.1
    mean = jax.random.normal(k3, (c,), jnp.float32) * 0.1
    var = jax.random.uniform(k4, (c,), jnp.float32, 0.5, 1.5)
    return (gamma, beta, mean, var)


def build_raw_params(key, plan, in_channels, num_classes, kernel_size=3):
    keys = iter(jax.random.split(key, 256))
    params = {}
    w0 = plan[0][0]
    params["conv"] = init_conv(next(keys), w0, in_channels, kernel_size)
    params["bn"] = init_bn(next(keys), w0)
    blocks = []
    current = w0
    for seg, (filters, num_blocks) in enumerate(plan):
        for b in range(num_blocks):
            downsample = seg > 0 and b == 0
            blk = {
                "cfg": (current, filters, downsample),
                "conv1": init_conv(next(keys), filters, current, kernel_size),
                "bn1": init_bn(next(keys), filters),
                "conv2": init_conv(next(keys), filters, filters, kernel_size),
                "bn2": init_bn(next(keys), filters),
            }
            if downsample or current != filters:
                blk["shortcut_w"] = init_conv(next(keys), filters, current, 1)
                blk["bn_sc"] = init_bn(next(keys), filters)
            blocks.append(blk)
            current = filters
    params["blocks"] = blocks
    bound = 1.0 / (plan[-1][0] ** 0.5)
    params["fc_w"] = jax.random.uniform(
        next(keys), (num_classes, plan[-1][0]), jnp.float32, -bound, bound)
    params["fc_b"] = jax.random.uniform(
        next(keys), (num_classes,), jnp.float32, -bound, bound)
    return params


# -----------------------------------------------------------------------------
# Parameter preparation: fold BN into weights, tap-pack K, pre-pad everything once.
# -----------------------------------------------------------------------------
def prepare_params(raw, eps=1e-5):
    def fold(bn):
        g, b, m, v = bn
        s = g / jnp.sqrt(v + eps)
        return s, b - m * s

    def conv_rows(w, scale):                       # (cout,cin,kh,kw) -> (kh*kw*cin,cout)
        cout, cin, kh, kw = w.shape
        rows = jnp.transpose(w, (2, 3, 1, 0)).reshape(kh * kw * cin, cout)
        return rows * scale[None, :]

    def finish(rows_list, bias):                   # append bias row, pad to (Kp,128)
        w = jnp.concatenate(list(rows_list) + [bias[None, :]], axis=0)
        kr, cout = w.shape
        assert cout <= LANE
        kp = _round_up(kr, LANE)
        return jnp.pad(w, ((0, kp - kr), (0, LANE - cout))).astype(jnp.bfloat16)

    p = {"num_classes": raw["fc_b"].shape[0]}
    s0, b0 = fold(raw["bn"])
    p["stem_w"] = finish([conv_rows(raw["conv"], s0)], b0)

    blocks = []
    for blk in raw["blocks"]:
        cin, cout, down = blk["cfg"]
        e = {"cin": int(cin), "cout": int(cout), "downsample": bool(down),
             "has_proj": "shortcut_w" in blk}
        s1, b1 = fold(blk["bn1"])
        e["w1"] = finish([conv_rows(blk["conv1"], s1)], b1)
        s2, b2 = fold(blk["bn2"])
        if e["has_proj"]:
            ssc, bsc = fold(blk["bn_sc"])
            wsc = blk["shortcut_w"][:, :, 0, 0].T * ssc[None, :]   # (cin, cout)
            e["w2"] = finish([conv_rows(blk["conv2"], s2), wsc], b2 + bsc)
        else:
            e["w2"] = finish([conv_rows(blk["conv2"], s2)], b2)
        blocks.append(e)
    p["blocks"] = blocks

    feat = raw["fc_w"].shape[1]
    ncls = raw["fc_b"].shape[0]
    p["fc_w"] = jnp.pad(raw["fc_w"].T,
                        ((0, LANE - feat), (0, LANE - ncls))).astype(jnp.bfloat16)
    p["fc_b"] = jnp.pad(raw["fc_b"], (0, LANE - ncls)).reshape(1, LANE).astype(jnp.float32)
    return p


# -----------------------------------------------------------------------------
# Forward pass (matches ResNet.forward; default conv_type, zero padding, k=3)
# -----------------------------------------------------------------------------
def resnet_forward(x_nchw, params):
    N = x_nchw.shape[0]
    x = jnp.transpose(x_nchw, (0, 2, 3, 1)).astype(jnp.bfloat16)         # NHWC bf16
    H, W = x.shape[1], x.shape[2]
    x4 = jnp.pad(x, ((0, 0), (1, 1), (1, 1), (0, 0)))                    # zero halo

    # Stem: conv3x3(s1) + BN + ReLU
    pat = build_patches(x4, H, W, 1, params["stem_w"].shape[0])
    act = conv_gemm(pat, params["stem_w"], H, W, relu=True)
    Hc, Wc = H, W

    for blk in params["blocks"]:
        stride = 2 if blk["downsample"] else 1
        Ho, Wo = Hc // stride, Wc // stride
        xin4 = act.reshape(N, Hc + 2, Wc + 2, LANE)[..., :blk["cin"]]

        # conv1 + bn1 + relu (stride handled by the patch extractor)
        pat1 = build_patches(xin4, Ho, Wo, stride, blk["w1"].shape[0])
        h = conv_gemm(pat1, blk["w1"], Ho, Wo, relu=True)
        h4 = h.reshape(N, Ho + 2, Wo + 2, LANE)[..., :blk["cout"]]

        # conv2 + bn2 + shortcut + relu, all in one GEMM kernel
        if blk["has_proj"]:
            # 1x1 stride-2 projection: its input (x sampled at stride 2) is appended
            # to the K dim; its BN-folded weight rows were appended in prepare_params.
            xs = xin4[:, 1:2 * Ho:2, 1:2 * Wo:2, :]
            pat2 = build_patches(h4, Ho, Wo, 1, blk["w2"].shape[0], extra=xs)
            act = conv_gemm(pat2, blk["w2"], Ho, Wo, relu=True)
        else:
            pat2 = build_patches(h4, Ho, Wo, 1, blk["w2"].shape[0])
            act = conv_gemm(pat2, blk["w2"], Ho, Wo, relu=True, residual=act)
        Hc, Wc = Ho, Wo

    return pool_fc(act, Hc, Wc, params["fc_w"], params["fc_b"], params["num_classes"])


# -----------------------------------------------------------------------------
# Pure-JAX f32 reference (inference-mode BN), for a tolerance check.
# -----------------------------------------------------------------------------
def ref_forward(x, raw, eps=1e-5):
    def conv(x, w, stride, pad):
        return lax.conv_general_dilated(
            x, w, (stride, stride), ((pad, pad), (pad, pad)),
            dimension_numbers=("NCHW", "OIHW", "NCHW"),
            precision=lax.Precision.HIGHEST)

    def bn(x, p):
        g, b, m, v = p
        s = g / jnp.sqrt(v + eps)
        return x * s[None, :, None, None] + (b - m * s)[None, :, None, None]

    out = jax.nn.relu(bn(conv(x, raw["conv"], 1, 1), raw["bn"]))
    for blk in raw["blocks"]:
        _, _, down = blk["cfg"]
        stride = 2 if down else 1
        h = jax.nn.relu(bn(conv(out, blk["conv1"], stride, 1), blk["bn1"]))
        y = bn(conv(h, blk["conv2"], 1, 1), blk["bn2"])
        if "shortcut_w" in blk:
            sc = bn(conv(out, blk["shortcut_w"], 2, 0), blk["bn_sc"])
        else:
            sc = out
        out = jax.nn.relu(y + sc)
    pooled = jnp.mean(out, axis=(2, 3))
    return pooled @ raw["fc_w"].T + raw["fc_b"]


# -----------------------------------------------------------------------------
if __name__ == "__main__":
    # CIFAR-style config (resnet_8_8): plan = [(8,1),(16,1),(32,1)]
    plan = [(8, 1), (16, 1), (32, 1)]
    in_channels = 3
    num_classes = 10

    key = jax.random.PRNGKey(0)
    k_params, k_x = jax.random.split(key)
    raw = build_raw_params(k_params, plan, in_channels, num_classes)
    params = prepare_params(raw)

    x = jax.random.normal(k_x, (2, in_channels, 32, 32), jnp.float32)

    fwd = jax.jit(functools.partial(resnet_forward, params=params))
    out = jax.block_until_ready(fwd(x))

    assert out.shape == (2, num_classes), out.shape
    assert out.dtype == jnp.float32
    assert bool(jnp.all(jnp.isfinite(out)))

    # Loose tolerance: bf16 weights/activations vs. an f32 reference.
    ref = ref_forward(x, raw)
    err = float(jnp.max(jnp.abs(out - ref)))
    scale = float(jnp.max(jnp.abs(ref)))
    assert err <= 0.2 * scale + 0.05, (err, scale)

    print("KERNEL_OK")
</pallas_src>

<mosaic_0001>
module attributes {stable_mosaic.version = 11 : i64} {
  func.func @kernel(%arg0: i32, %arg1: memref<1x1156x128xbf16, #tpu.memory_space<vmem>>, %arg2: memref<128x128xbf16, #tpu.memory_space<vmem>>, %arg3: memref<1x1156x128xbf16, #tpu.memory_space<vmem>>) attributes {dimension_semantics = [#tpu.dimension_semantics<parallel>], iteration_bounds = array<i64: 2>, scalar_prefetch = 0 : i64, scratch_operands = 0 : i64, tpu.core_type = #tpu.core_type<tc>, window_params = [{transform_indices = @transform_0, window_bounds = array<i64: 1, 1156, 128>}, {pipeline_mode = #tpu.pipeline_mode<synchronous>, transform_indices = @transform_1, window_bounds = array<i64: 128, 128>}, {transform_indices = @transform_2, window_bounds = array<i64: 1, 1156, 128>}]} {
    %c0 = arith.constant 0 : index
    %c0_0 = arith.constant 0 : index
    %c0_1 = arith.constant 0 : index
    %0 = vector.load %arg1[%c0, %c0_0, %c0_1] : memref<1x1156x128xbf16, #tpu.memory_space<vmem>>, vector<1x256x128xbf16>
    %1 = vector.shape_cast %0 : vector<1x256x128xbf16> to vector<256x128xbf16>
    %c0_2 = arith.constant 0 : index
    %c0_3 = arith.constant 0 : index
    %2 = vector.load %arg2[%c0_2, %c0_3] : memref<128x128xbf16, #tpu.memory_space<vmem>>, vector<128x128xbf16>
    %cst = arith.constant dense<0.000000e+00> : vector<256x128xf32>
    %3 = tpu.matmul %1, %2, %cst {dimension_numbers = #tpu.dot_dimension_numbers<[1], [0], [0], [1], [0, 0, 1, 1], [], []>} : vector<256x128xbf16>, vector<128x128xbf16>, vector<256x128xf32> -> vector<256x128xf32>
    %cst_4 = arith.constant 0.000000e+00 : f32
    %4 = vector.broadcast %cst_4 : f32 to vector<256x128xf32>
    %5 = arith.maximumf %3, %4 : vector<256x128xf32>
    %6 = arith.truncf %5 : vector<256x128xf32> to vector<256x128xbf16>
    %c0_5 = arith.constant 0 : index
    %c0_6 = arith.constant 0 : index
    %c0_7 = arith.constant 0 : index
    %7 = vector.load %arg3[%c0_5, %c0_6, %c0_7] : memref<1x1156x128xbf16, #tpu.memory_space<vmem>>, vector<1x256x128xbf16>
    %8 = vector.shape_cast %7 : vector<1x256x128xbf16> to vector<256x128xbf16>
    %9 = vector.shape_cast %6 : vector<256x128xbf16> to vector<1x256x128xbf16>
    tpu.vector_store %arg3[%c0_5, %c0_6, %c0_7], %9 {strides = array<i32>} : memref<1x1156x128xbf16, #tpu.memory_space<vmem>>, vector<1x256x128xbf16>,
    %c0_8 = arith.constant 0 : index
    %c256 = arith.constant 256 : index
    %c0_9 = arith.constant 0 : index
    %10 = vector.load %arg1[%c0_8, %c256, %c0_9] : memref<1x1156x128xbf16, #tpu.memory_space<vmem>>, vector<1x256x128xbf16>
    %11 = vector.shape_cast %10 : vector<1x256x128xbf16> to vector<256x128xbf16>
    %c0_10 = arith.constant 0 : index
    %c0_11 = arith.constant 0 : index
    %12 = vector.load %arg2[%c0_10, %c0_11] : memref<128x128xbf16, #tpu.memory_space<vmem>>, vector<128x128xbf16>
    %cst_12 = arith.constant dense<0.000000e+00> : vector<256x128xf32>
    %13 = tpu.matmul %11, %12, %cst_12 {dimension_numbers = #tpu.dot_dimension_numbers<[1], [0], [0], [1], [0, 0, 1, 1], [], []>} : vector<256x128xbf16>, vector<128x128xbf16>, vector<256x128xf32> -> vector<256x128xf32>
    %cst_13 = arith.constant 0.000000e+00 : f32
    %14 = vector.broadcast %cst_13 : f32 to vector<256x128xf32>
    %15 = arith.maximumf %13, %14 : vector<256x128xf32>
    %16 = arith.truncf %15 : vector<256x128xf32> to vector<256x128xbf16>
    %c0_14 = arith.constant 0 : index
    %c256_15 = arith.constant 256 : index
    %c0_16 = arith.constant 0 : index
    %17 = vector.load %arg3[%c0_14, %c256_15, %c0_16] : memref<1x1156x128xbf16, #tpu.memory_space<vmem>>, vector<1x256x128xbf16>
    %18 = vector.shape_cast %17 : vector<1x256x128xbf16> to vector<256x128xbf16>
    %19 = vector.shape_cast %16 : vector<256x128xbf16> to vector<1x256x128xbf16>
    tpu.vector_store %arg3[%c0_14, %c256_15, %c0_16], %19 {strides = array<i32>} : memref<1x1156x128xbf16, #tpu.memory_space<vmem>>, vector<1x256x128xbf16>,
    %c0_17 = arith.constant 0 : index
    %c512 = arith.constant 512 : index
    %c0_18 = arith.constant 0 : index
    %20 = vector.load %arg1[%c0_17, %c512, %c0_18] : memref<1x1156x128xbf16, #tpu.memory_space<vmem>>, vector<1x256x128xbf16>
    %21 = vector.shape_cast %20 : vector<1x256x128xbf16> to vector<256x128xbf16>
    %c0_19 = arith.constant 0 : index
    %c0_20 = arith.constant 0 : index
    %22 = vector.load %arg2[%c0_19, %c0_20] : memref<128x128xbf16, #tpu.memory_space<vmem>>, vector<128x128xbf16>
    %cst_21 = arith.constant dense<0.000000e+00> : vector<256x128xf32>
    %23 = tpu.matmul %21, %22, %cst_21 {dimension_numbers = #tpu.dot_dimension_numbers<[1], [0], [0], [1], [0, 0, 1, 1], [], []>} : vector<256x128xbf16>, vector<128x128xbf16>, vector<256x128xf32> -> vector<256x128xf32>
    %cst_22 = arith.constant 0.000000e+00 : f32
    %24 = vector.broadcast %cst_22 : f32 to vector<256x128xf32>
    %25 = arith.maximumf %23, %24 : vector<256x128xf32>
    %26 = arith.truncf %25 : vector<256x128xf32> to vector<256x128xbf16>
    %c0_23 = arith.constant 0 : index
    %c512_24 = arith.constant 512 : index
    %c0_25 = arith.constant 0 : index
    %27 = vector.load %arg3[%c0_23, %c512_24, %c0_25] : memref<1x1156x128xbf16, #tpu.memory_space<vmem>>, vector<1x256x128xbf16>
    %28 = vector.shape_cast %27 : vector<1x256x128xbf16> to vector<256x128xbf16>
    %29 = vector.shape_cast %26 : vector<256x128xbf16> to vector<1x256x128xbf16>
    tpu.vector_store %arg3[%c0_23, %c512_24, %c0_25], %29 {strides = array<i32>} : memref<1x1156x128xbf16, #tpu.memory_space<vmem>>, vector<1x256x128xbf16>,
    %c0_26 = arith.constant 0 : index
    %c768 = arith.constant 768 : index
    %c0_27 = arith.constant 0 : index
    %30 = vector.load %arg1[%c0_26, %c768, %c0_27] : memref<1x1156x128xbf16, #tpu.memory_space<vmem>>, vector<1x256x128xbf16>
    %31 = vector.shape_cast %30 : vector<1x256x128xbf16> to vector<256x128xbf16>
    %c0_28 = arith.constant 0 : index
    %c0_29 = arith.constant 0 : index
    %32 = vector.load %arg2[%c0_28, %c0_29] : memref<128x128xbf16, #tpu.memory_space<vmem>>, vector<128x128xbf16>
    %cst_30 = arith.constant dense<0.000000e+00> : vector<256x128xf32>
    %33 = tpu.matmul %31, %32, %cst_30 {dimension_numbers = #tpu.dot_dimension_numbers<[1], [0], [0], [1], [0, 0, 1, 1], [], []>} : vector<256x128xbf16>, vector<128x128xbf16>, vector<256x128xf32> -> vector<256x128xf32>
    %cst_31 = arith.constant 0.000000e+00 : f32
    %34 = vector.broadcast %cst_31 : f32 to vector<256x128xf32>
    %35 = arith.maximumf %33, %34 : vector<256x128xf32>
    %36 = arith.truncf %35 : vector<256x128xf32> to vector<256x128xbf16>
    %c0_32 = arith.constant 0 : index
    %c768_33 = arith.constant 768 : index
    %c0_34 = arith.constant 0 : index
    %37 = vector.load %arg3[%c0_32, %c768_33, %c0_34] : memref<1x1156x128xbf16, #tpu.memory_space<vmem>>, vector<1x256x128xbf16>
    %38 = vector.shape_cast %37 : vector<1x256x128xbf16> to vector<256x128xbf16>
    %39 = vector.shape_cast %36 : vector<256x128xbf16> to vector<1x256x128xbf16>
    tpu.vector_store %arg3[%c0_32, %c768_33, %c0_34], %39 {strides = array<i32>} : memref<1x1156x128xbf16, #tpu.memory_space<vmem>>, vector<1x256x128xbf16>,
    %c0_35 = arith.constant 0 : index
    %c1024 = arith.constant 1024 : index
    %c0_36 = arith.constant 0 : index
    %40 = vector.load %arg1[%c0_35, %c1024, %c0_36] : memref<1x1156x128xbf16, #tpu.memory_space<vmem>>, vector<1x132x128xbf16>
    %41 = vector.shape_cast %40 : vector<1x132x128xbf16> to vector<132x128xbf16>
    %c0_37 = arith.constant 0 : index
    %c0_38 = arith.constant 0 : index
    %42 = vector.load %arg2[%c0_37, %c0_38] : memref<128x128xbf16, #tpu.memory_space<vmem>>, vector<128x128xbf16>
    %cst_39 = arith.constant dense<0.000000e+00> : vector<132x128xf32>
    %43 = tpu.matmul %41, %42, %cst_39 {dimension_numbers = #tpu.dot_dimension_numbers<[1], [0], [0], [1], [0, 0, 1, 1], [], []>} : vector<132x128xbf16>, vector<128x128xbf16>, vector<132x128xf32> -> vector<132x128xf32>
    %cst_40 = arith.constant 0.000000e+00 : f32
    %44 = vector.broadcast %cst_40 : f32 to vector<132x128xf32>
    %45 = arith.maximumf %43, %44 : vector<132x128xf32>
    %46 = arith.truncf %45 : vector<132x128xf32> to vector<132x128xbf16>
    %c0_41 = arith.constant 0 : index
    %c1024_42 = arith.constant 1024 : index
    %c0_43 = arith.constant 0 : index
    %47 = vector.load %arg3[%c0_41, %c1024_42, %c0_43] : memref<1x1156x128xbf16, #tpu.memory_space<vmem>>, vector<1x132x128xbf16>
    %48 = vector.shape_cast %47 : vector<1x132x128xbf16> to vector<132x128xbf16>
    %49 = vector.shape_cast %46 : vector<132x128xbf16> to vector<1x132x128xbf16>
    tpu.vector_store %arg3[%c0_41, %c1024_42, %c0_43], %49 {strides = array<i32>} : memref<1x1156x128xbf16, #tpu.memory_space<vmem>>, vector<1x132x128xbf16>,
    return
  }
  func.func @transform_0(%arg0: i32) -> (i32, i32, i32) {
    %c0_i32 = arith.constant 0 : i32
    %c0_i32_0 = arith.constant 0 : i32
    %c0_i32_1 = arith.constant 0 : i32
    return %arg0, %c0_i32, %c0_i32_0 : i32, i32, i32
  }
  func.func @transform_1(%arg0: i32) -> (i32, i32) {
    %c0_i32 = arith.constant 0 : i32
    %c0_i32_0 = arith.constant 0 : i32
    %c0_i32_1 = arith.constant 0 : i32
    return %c0_i32, %c0_i32_0 : i32, i32
  }
  func.func @transform_2(%arg0: i32) -> (i32, i32, i32) {
    %c0_i32 = arith.constant 0 : i32
    %c0_i32_0 = arith.constant 0 : i32
    %c0_i32_1 = arith.constant 0 : i32
    return %arg0, %c0_i32, %c0_i32_0 : i32, i32, i32
  }
}

module attributes {stable_mosaic.version = 11 : i64} {
  func.func @kernel(%arg0: i32, %arg1: memref<1x1156x128xbf16, #tpu.memory_space<vmem>>, %arg2: memref<128x128xbf16, #tpu.memory_space<vmem>>, %arg3: memref<1x1156x128xbf16, #tpu.memory_space<vmem>>, %arg4: memref<1x1156x128xbf16, #tpu.memory_space<vmem>>) attributes {dimension_semantics = [#tpu.dimension_semantics<parallel>], iteration_bounds = array<i64: 2>, scalar_prefetch = 0 : i64, scratch_operands = 0 : i64, tpu.core_type = #tpu.core_type<tc>, window_params = [{transform_indices = @transform_0, window_bounds = array<i64: 1, 1156, 128>}, {pipeline_mode = #tpu.pipeline_mode<synchronous>, transform_indices = @transform_1, window_bounds = array<i64: 128, 128>}, {transform_indices = @transform_2, window_bounds = array<i64: 1, 1156, 128>}, {transform_indices = @transform_3, window_bounds = array<i64: 1, 1156, 128>}]} {
    %c0 = arith.constant 0 : index
    %c0_0 = arith.constant 0 : index
    %c0_1 = arith.constant 0 : index
    %0 = vector.load %arg1[%c0, %c0_0, %c0_1] : memref<1x1156x128xbf16, #tpu.memory_space<vmem>>, vector<1x256x128xbf16>
    %1 = vector.shape_cast %0 : vector<1x256x128xbf16> to vector<256x128xbf16>
    %c0_2 = arith.constant 0 : index
    %c0_3 = arith.constant 0 : index
    %2 = vector.load %arg2[%c0_2, %c0_3] : memref<128x128xbf16, #tpu.memory_space<vmem>>, vector<128x128xbf16>
    %cst = arith.constant dense<0.000000e+00> : vector<256x128xf32>
    %3 = tpu.matmul %1, %2, %cst {dimension_numbers = #tpu.dot_dimension_numbers<[1], [0], [0], [1], [0, 0, 1, 1], [], []>} : vector<256x128xbf16>, vector<128x128xbf16>, vector<256x128xf32> -> vector<256x128xf32>
    %c0_4 = arith.constant 0 : index
    %c0_5 = arith.constant 0 : index
    %c0_6 = arith.constant 0 : index
    %4 = vector.load %arg3[%c0_4, %c0_5, %c0_6] : memref<1x1156x128xbf16, #tpu.memory_space<vmem>>, vector<1x256x128xbf16>
    %5 = vector.shape_cast %4 : vector<1x256x128xbf16> to vector<256x128xbf16>
    %6 = arith.extf %5 : vector<256x128xbf16> to vector<256x128xf32>
    %7 = arith.addf %3, %6 : vector<256x128xf32>
    %cst_7 = arith.constant 0.000000e+00 : f32
    %8 = vector.broadcast %cst_7 : f32 to vector<256x128xf32>
    %9 = arith.maximumf %7, %8 : vector<256x128xf32>
    %10 = arith.truncf %9 : vector<256x128xf32> to vector<256x128xbf16>
    %c0_8 = arith.constant 0 : index
    %c0_9 = arith.constant 0 : index
    %c0_10 = arith.constant 0 : index
    %11 = vector.load %arg4[%c0_8, %c0_9, %c0_10] : memref<1x1156x128xbf16, #tpu.memory_space<vmem>>, vector<1x256x128xbf16>
    %12 = vector.shape_cast %11 : vector<1x256x128xbf16> to vector<256x128xbf16>
    %13 = vector.shape_cast %10 : vector<256x128xbf16> to vector<1x256x128xbf16>
    tpu.vector_store %arg4[%c0_8, %c0_9, %c0_10], %13 {strides = array<i32>} : memref<1x1156x128xbf16, #tpu.memory_space<vmem>>, vector<1x256x128xbf16>,
    %c0_11 = arith.constant 0 : index
    %c256 = arith.constant 256 : index
    %c0_12 = arith.constant 0 : index
    %14 = vector.load %arg1[%c0_11, %c256, %c0_12] : memref<1x1156x128xbf16, #tpu.memory_space<vmem>>, vector<1x256x128xbf16>
    %15 = vector.shape_cast %14 : vector<1x256x128xbf16> to vector<256x128xbf16>
    %c0_13 = arith.constant 0 : index
    %c0_14 = arith.constant 0 : index
    %16 = vector.load %arg2[%c0_13, %c0_14] : memref<128x128xbf16, #tpu.memory_space<vmem>>, vector<128x128xbf16>
    %cst_15 = arith.constant dense<0.000000e+00> : vector<256x128xf32>
    %17 = tpu.matmul %15, %16, %cst_15 {dimension_numbers = #tpu.dot_dimension_numbers<[1], [0], [0], [1], [0, 0, 1, 1], [], []>} : vector<256x128xbf16>, vector<128x128xbf16>, vector<256x128xf32> -> vector<256x128xf32>
    %c0_16 = arith.constant 0 : index
    %c256_17 = arith.constant 256 : index
    %c0_18 = arith.constant 0 : index
    %18 = vector.load %arg3[%c0_16, %c256_17, %c0_18] : memref<1x1156x128xbf16, #tpu.memory_space<vmem>>, vector<1x256x128xbf16>
    %19 = vector.shape_cast %18 : vector<1x256x128xbf16> to vector<256x128xbf16>
    %20 = arith.extf %19 : vector<256x128xbf16> to vector<256x128xf32>
    %21 = arith.addf %17, %20 : vector<256x128xf32>
    %cst_19 = arith.constant 0.000000e+00 : f32
    %22 = vector.broadcast %cst_19 : f32 to vector<256x128xf32>
    %23 = arith.maximumf %21, %22 : vector<256x128xf32>
    %24 = arith.truncf %23 : vector<256x128xf32> to vector<256x128xbf16>
    %c0_20 = arith.constant 0 : index
    %c256_21 = arith.constant 256 : index
    %c0_22 = arith.constant 0 : index
    %25 = vector.load %arg4[%c0_20, %c256_21, %c0_22] : memref<1x1156x128xbf16, #tpu.memory_space<vmem>>, vector<1x256x128xbf16>
    %26 = vector.shape_cast %25 : vector<1x256x128xbf16> to vector<256x128xbf16>
    %27 = vector.shape_cast %24 : vector<256x128xbf16> to vector<1x256x128xbf16>
    tpu.vector_store %arg4[%c0_20, %c256_21, %c0_22], %27 {strides = array<i32>} : memref<1x1156x128xbf16, #tpu.memory_space<vmem>>, vector<1x256x128xbf16>,
    %c0_23 = arith.constant 0 : index
    %c512 = arith.constant 512 : index
    %c0_24 = arith.constant 0 : index
    %28 = vector.load %arg1[%c0_23, %c512, %c0_24] : memref<1x1156x128xbf16, #tpu.memory_space<vmem>>, vector<1x256x128xbf16>
    %29 = vector.shape_cast %28 : vector<1x256x128xbf16> to vector<256x128xbf16>
    %c0_25 = arith.constant 0 : index
    %c0_26 = arith.constant 0 : index
    %30 = vector.load %arg2[%c0_25, %c0_26] : memref<128x128xbf16, #tpu.memory_space<vmem>>, vector<128x128xbf16>
    %cst_27 = arith.constant dense<0.000000e+00> : vector<256x128xf32>
    %31 = tpu.matmul %29, %30, %cst_27 {dimension_numbers = #tpu.dot_dimension_numbers<[1], [0], [0], [1], [0, 0, 1, 1], [], []>} : vector<256x128xbf16>, vector<128x128xbf16>, vector<256x128xf32> -> vector<256x128xf32>
    %c0_28 = arith.constant 0 : index
    %c512_29 = arith.constant 512 : index
    %c0_30 = arith.constant 0 : index
    %32 = vector.load %arg3[%c0_28, %c512_29, %c0_30] : memref<1x1156x128xbf16, #tpu.memory_space<vmem>>, vector<1x256x128xbf16>
    %33 = vector.shape_cast %32 : vector<1x256x128xbf16> to vector<256x128xbf16>
    %34 = arith.extf %33 : vector<256x128xbf16> to vector<256x128xf32>
    %35 = arith.addf %31, %34 : vector<256x128xf32>
    %cst_31 = arith.constant 0.000000e+00 : f32
    %36 = vector.broadcast %cst_31 : f32 to vector<256x128xf32>
    %37 = arith.maximumf %35, %36 : vector<256x128xf32>
    %38 = arith.truncf %37 : vector<256x128xf32> to vector<256x128xbf16>
    %c0_32 = arith.constant 0 : index
    %c512_33 = arith.constant 512 : index
    %c0_34 = arith.constant 0 : index
    %39 = vector.load %arg4[%c0_32, %c512_33, %c0_34] : memref<1x1156x128xbf16, #tpu.memory_space<vmem>>, vector<1x256x128xbf16>
    %40 = vector.shape_cast %39 : vector<1x256x128xbf16> to vector<256x128xbf16>
    %41 = vector.shape_cast %38 : vector<256x128xbf16> to vector<1x256x128xbf16>
    tpu.vector_store %arg4[%c0_32, %c512_33, %c0_34], %41 {strides = array<i32>} : memref<1x1156x128xbf16, #tpu.memory_space<vmem>>, vector<1x256x128xbf16>,
    %c0_35 = arith.constant 0 : index
    %c768 = arith.constant 768 : index
    %c0_36 = arith.constant 0 : index
    %42 = vector.load %arg1[%c0_35, %c768, %c0_36] : memref<1x1156x128xbf16, #tpu.memory_space<vmem>>, vector<1x256x128xbf16>
    %43 = vector.shape_cast %42 : vector<1x256x128xbf16> to vector<256x128xbf16>
    %c0_37 = arith.constant 0 : index
    %c0_38 = arith.constant 0 : index
    %44 = vector.load %arg2[%c0_37, %c0_38] : memref<128x128xbf16, #tpu.memory_space<vmem>>, vector<128x128xbf16>
    %cst_39 = arith.constant dense<0.000000e+00> : vector<256x128xf32>
    %45 = tpu.matmul %43, %44, %cst_39 {dimension_numbers = #tpu.dot_dimension_numbers<[1], [0], [0], [1], [0, 0, 1, 1], [], []>} : vector<256x128xbf16>, vector<128x128xbf16>, vector<256x128xf32> -> vector<256x128xf32>
    %c0_40 = arith.constant 0 : index
    %c768_41 = arith.constant 768 : index
    %c0_42 = arith.constant 0 : index
    %46 = vector.load %arg3[%c0_40, %c768_41, %c0_42] : memref<1x1156x128xbf16, #tpu.memory_space<vmem>>, vector<1x256x128xbf16>
    %47 = vector.shape_cast %46 : vector<1x256x128xbf16> to vector<256x128xbf16>
    %48 = arith.extf %47 : vector<256x128xbf16> to vector<256x128xf32>
    %49 = arith.addf %45, %48 : vector<256x128xf32>
    %cst_43 = arith.constant 0.000000e+00 : f32
    %50 = vector.broadcast %cst_43 : f32 to vector<256x128xf32>
    %51 = arith.maximumf %49, %50 : vector<256x128xf32>
    %52 = arith.truncf %51 : vector<256x128xf32> to vector<256x128xbf16>
    %c0_44 = arith.constant 0 : index
    %c768_45 = arith.constant 768 : index
    %c0_46 = arith.constant 0 : index
    %53 = vector.load %arg4[%c0_44, %c768_45, %c0_46] : memref<1x1156x128xbf16, #tpu.memory_space<vmem>>, vector<1x256x128xbf16>
    %54 = vector.shape_cast %53 : vector<1x256x128xbf16> to vector<256x128xbf16>
    %55 = vector.shape_cast %52 : vector<256x128xbf16> to vector<1x256x128xbf16>
    tpu.vector_store %arg4[%c0_44, %c768_45, %c0_46], %55 {strides = array<i32>} : memref<1x1156x128xbf16, #tpu.memory_space<vmem>>, vector<1x256x128xbf16>,
    %c0_47 = arith.constant 0 : index
    %c1024 = arith.constant 1024 : index
    %c0_48 = arith.constant 0 : index
    %56 = vector.load %arg1[%c0_47, %c1024, %c0_48] : memref<1x1156x128xbf16, #tpu.memory_space<vmem>>, vector<1x132x128xbf16>
    %57 = vector.shape_cast %56 : vector<1x132x128xbf16> to vector<132x128xbf16>
    %c0_49 = arith.constant 0 : index
    %c0_50 = arith.constant 0 : index
    %58 = vector.load %arg2[%c0_49, %c0_50] : memref<128x128xbf16, #tpu.memory_space<vmem>>, vector<128x128xbf16>
    %cst_51 = arith.constant dense<0.000000e+00> : vector<132x128xf32>
    %59 = tpu.matmul %57, %58, %cst_51 {dimension_numbers = #tpu.dot_dimension_numbers<[1], [0], [0], [1], [0, 0, 1, 1], [], []>} : vector<132x128xbf16>, vector<128x128xbf16>, vector<132x128xf32> -> vector<132x128xf32>
    %c0_52 = arith.constant 0 : index
    %c1024_53 = arith.constant 1024 : index
    %c0_54 = arith.constant 0 : index
    %60 = vector.load %arg3[%c0_52, %c1024_53, %c0_54] : memref<1x1156x128xbf16, #tpu.memory_space<vmem>>, vector<1x132x128xbf16>
    %61 = vector.shape_cast %60 : vector<1x132x128xbf16> to vector<132x128xbf16>
    %62 = arith.extf %61 : vector<132x128xbf16> to vector<132x128xf32>
    %63 = arith.addf %59, %62 : vector<132x128xf32>
    %cst_55 = arith.constant 0.000000e+00 : f32
    %64 = vector.broadcast %cst_55 : f32 to vector<132x128xf32>
    %65 = arith.maximumf %63, %64 : vector<132x128xf32>
    %66 = arith.truncf %65 : vector<132x128xf32> to vector<132x128xbf16>
    %c0_56 = arith.constant 0 : index
    %c1024_57 = arith.constant 1024 : index
    %c0_58 = arith.constant 0 : index
    %67 = vector.load %arg4[%c0_56, %c1024_57, %c0_58] : memref<1x1156x128xbf16, #tpu.memory_space<vmem>>, vector<1x132x128xbf16>
    %68 = vector.shape_cast %67 : vector<1x132x128xbf16> to vector<132x128xbf16>
    %69 = vector.shape_cast %66 : vector<132x128xbf16> to vector<1x132x128xbf16>
    tpu.vector_store %arg4[%c0_56, %c1024_57, %c0_58], %69 {strides = array<i32>} : memref<1x1156x128xbf16, #tpu.memory_space<vmem>>, vector<1x132x128xbf16>,
    return
  }
  func.func @transform_0(%arg0: i32) -> (i32, i32, i32) {
    %c0_i32 = arith.constant 0 : i32
    %c0_i32_0 = arith.constant 0 : i32
    %c0_i32_1 = arith.constant 0 : i32
    return %arg0, %c0_i32, %c0_i32_0 : i32, i32, i32
  }
  func.func @transform_1(%arg0: i32) -> (i32, i32) {
    %c0_i32 = arith.constant 0 : i32
    %c0_i32_0 = arith.constant 0 : i32
    %c0_i32_1 = arith.constant 0 : i32
    return %c0_i32, %c0_i32_0 : i32, i32
  }
  func.func @transform_2(%arg0: i32) -> (i32, i32, i32) {
    %c0_i32 = arith.constant 0 : i32
    %c0_i32_0 = arith.constant 0 : i32
    %c0_i32_1 = arith.constant 0 : i32
    return %arg0, %c0_i32, %c0_i32_0 : i32, i32, i32
  }
  func.func @transform_3(%arg0: i32) -> (i32, i32, i32) {
    %c0_i32 = arith.constant 0 : i32
    %c0_i32_0 = arith.constant 0 : i32
    %c0_i32_1 = arith.constant 0 : i32
    return %arg0, %c0_i32, %c0_i32_0 : i32, i32, i32
  }
}

module attributes {stable_mosaic.version = 11 : i64} {
  func.func @kernel(%arg0: i32, %arg1: memref<1x324x128xbf16, #tpu.memory_space<vmem>>, %arg2: memref<128x128xbf16, #tpu.memory_space<vmem>>, %arg3: memref<1x324x128xbf16, #tpu.memory_space<vmem>>) attributes {dimension_semantics = [#tpu.dimension_semantics<parallel>], iteration_bounds = array<i64: 2>, scalar_prefetch = 0 : i64, scratch_operands = 0 : i64, tpu.core_type = #tpu.core_type<tc>, window_params = [{transform_indices = @transform_0, window_bounds = array<i64: 1, 324, 128>}, {pipeline_mode = #tpu.pipeline_mode<synchronous>, transform_indices = @transform_1, window_bounds = array<i64: 128, 128>}, {transform_indices = @transform_2, window_bounds = array<i64: 1, 324, 128>}]} {
    %c0 = arith.constant 0 : index
    %c0_0 = arith.constant 0 : index
    %c0_1 = arith.constant 0 : index
    %0 = vector.load %arg1[%c0, %c0_0, %c0_1] : memref<1x324x128xbf16, #tpu.memory_space<vmem>>, vector<1x256x128xbf16>
    %1 = vector.shape_cast %0 : vector<1x256x128xbf16> to vector<256x128xbf16>
    %c0_2 = arith.constant 0 : index
    %c0_3 = arith.constant 0 : index
    %2 = vector.load %arg2[%c0_2, %c0_3] : memref<128x128xbf16, #tpu.memory_space<vmem>>, vector<128x128xbf16>
    %cst = arith.constant dense<0.000000e+00> : vector<256x128xf32>
    %3 = tpu.matmul %1, %2, %cst {dimension_numbers = #tpu.dot_dimension_numbers<[1], [0], [0], [1], [0, 0, 1, 1], [], []>} : vector<256x128xbf16>, vector<128x128xbf16>, vector<256x128xf32> -> vector<256x128xf32>
    %cst_4 = arith.constant 0.000000e+00 : f32
    %4 = vector.broadcast %cst_4 : f32 to vector<256x128xf32>
    %5 = arith.maximumf %3, %4 : vector<256x128xf32>
    %6 = arith.truncf %5 : vector<256x128xf32> to vector<256x128xbf16>
    %c0_5 = arith.constant 0 : index
    %c0_6 = arith.constant 0 : index
    %c0_7 = arith.constant 0 : index
    %7 = vector.load %arg3[%c0_5, %c0_6, %c0_7] : memref<1x324x128xbf16, #tpu.memory_space<vmem>>, vector<1x256x128xbf16>
    %8 = vector.shape_cast %7 : vector<1x256x128xbf16> to vector<256x128xbf16>
    %9 = vector.shape_cast %6 : vector<256x128xbf16> to vector<1x256x128xbf16>
    tpu.vector_store %arg3[%c0_5, %c0_6, %c0_7], %9 {strides = array<i32>} : memref<1x324x128xbf16, #tpu.memory_space<vmem>>, vector<1x256x128xbf16>,
    %c0_8 = arith.constant 0 : index
    %c256 = arith.constant 256 : index
    %c0_9 = arith.constant 0 : index
    %10 = vector.load %arg1[%c0_8, %c256, %c0_9] : memref<1x324x128xbf16, #tpu.memory_space<vmem>>, vector<1x68x128xbf16>
    %11 = vector.shape_cast %10 : vector<1x68x128xbf16> to vector<68x128xbf16>
    %c0_10 = arith.constant 0 : index
    %c0_11 = arith.constant 0 : index
    %12 = vector.load %arg2[%c0_10, %c0_11] : memref<128x128xbf16, #tpu.memory_space<vmem>>, vector<128x128xbf16>
    %cst_12 = arith.constant dense<0.000000e+00> : vector<68x128xf32>
    %13 = tpu.matmul %11, %12, %cst_12 {dimension_numbers = #tpu.dot_dimension_numbers<[1], [0], [0], [1], [0, 0, 1, 1], [], []>} : vector<68x128xbf16>, vector<128x128xbf16>, vector<68x128xf32> -> vector<68x128xf32>
    %cst_13 = arith.constant 0.000000e+00 : f32
    %14 = vector.broadcast %cst_13 : f32 to vector<68x128xf32>
    %15 = arith.maximumf %13, %14 : vector<68x128xf32>
    %16 = arith.truncf %15 : vector<68x128xf32> to vector<68x128xbf16>
    %c0_14 = arith.constant 0 : index
    %c256_15 = arith.constant 256 : index
    %c0_16 = arith.constant 0 : index
    %17 = vector.load %arg3[%c0_14, %c256_15, %c0_16] : memref<1x324x128xbf16, #tpu.memory_space<vmem>>, vector<1x68x128xbf16>
    %18 = vector.shape_cast %17 : vector<1x68x128xbf16> to vector<68x128xbf16>
    %19 = vector.shape_cast %16 : vector<68x128xbf16> to vector<1x68x128xbf16>
    tpu.vector_store %arg3[%c0_14, %c256_15, %c0_16], %19 {strides = array<i32>} : memref<1x324x128xbf16, #tpu.memory_space<vmem>>, vector<1x68x128xbf16>,
    return
  }
  func.func @transform_0(%arg0: i32) -> (i32, i32, i32) {
    %c0_i32 = arith.constant 0 : i32
    %c0_i32_0 = arith.constant 0 : i32
    %c0_i32_1 = arith.constant 0 : i32
    return %arg0, %c0_i32, %c0_i32_0 : i32, i32, i32
  }
  func.func @transform_1(%arg0: i32) -> (i32, i32) {
    %c0_i32 = arith.constant 0 : i32
    %c0_i32_0 = arith.constant 0 : i32
    %c0_i32_1 = arith.constant 0 : i32
    return %c0_i32, %c0_i32_0 : i32, i32
  }
  func.func @transform_2(%arg0: i32) -> (i32, i32, i32) {
    %c0_i32 = arith.constant 0 : i32
    %c0_i32_0 = arith.constant 0 : i32
    %c0_i32_1 = arith.constant 0 : i32
    return %arg0, %c0_i32, %c0_i32_0 : i32, i32, i32
  }
}

module attributes {stable_mosaic.version = 11 : i64} {
  func.func @kernel(%arg0: i32, %arg1: memref<1x324x256xbf16, #tpu.memory_space<vmem>>, %arg2: memref<256x128xbf16, #tpu.memory_space<vmem>>, %arg3: memref<1x324x128xbf16, #tpu.memory_space<vmem>>) attributes {dimension_semantics = [#tpu.dimension_semantics<parallel>], iteration_bounds = array<i64: 2>, scalar_prefetch = 0 : i64, scratch_operands = 0 : i64, tpu.core_type = #tpu.core_type<tc>, window_params = [{transform_indices = @transform_0, window_bounds = array<i64: 1, 324, 256>}, {pipeline_mode = #tpu.pipeline_mode<synchronous>, transform_indices = @transform_1, window_bounds = array<i64: 256, 128>}, {transform_indices = @transform_2, window_bounds = array<i64: 1, 324, 128>}]} {
    %c0 = arith.constant 0 : index
    %c0_0 = arith.constant 0 : index
    %c0_1 = arith.constant 0 : index
    %0 = vector.load %arg1[%c0, %c0_0, %c0_1] : memref<1x324x256xbf16, #tpu.memory_space<vmem>>, vector<1x256x256xbf16>
    %1 = vector.shape_cast %0 : vector<1x256x256xbf16> to vector<256x256xbf16>
    %c0_2 = arith.constant 0 : index
    %c0_3 = arith.constant 0 : index
    %2 = vector.load %arg2[%c0_2, %c0_3] : memref<256x128xbf16, #tpu.memory_space<vmem>>, vector<256x128xbf16>
    %cst = arith.constant dense<0.000000e+00> : vector<256x128xf32>
    %3 = tpu.matmul %1, %2, %cst {dimension_numbers = #tpu.dot_dimension_numbers<[1], [0], [0], [1], [0, 0, 1, 1], [], []>} : vector<256x256xbf16>, vector<256x128xbf16>, vector<256x128xf32> -> vector<256x128xf32>
    %cst_4 = arith.constant 0.000000e+00 : f32
    %4 = vector.broadcast %cst_4 : f32 to vector<256x128xf32>
    %5 = arith.maximumf %3, %4 : vector<256x128xf32>
    %6 = arith.truncf %5 : vector<256x128xf32> to vector<256x128xbf16>
    %c0_5 = arith.constant 0 : index
    %c0_6 = arith.constant 0 : index
    %c0_7 = arith.constant 0 : index
    %7 = vector.load %arg3[%c0_5, %c0_6, %c0_7] : memref<1x324x128xbf16, #tpu.memory_space<vmem>>, vector<1x256x128xbf16>
    %8 = vector.shape_cast %7 : vector<1x256x128xbf16> to vector<256x128xbf16>
    %9 = vector.shape_cast %6 : vector<256x128xbf16> to vector<1x256x128xbf16>
    tpu.vector_store %arg3[%c0_5, %c0_6, %c0_7], %9 {strides = array<i32>} : memref<1x324x128xbf16, #tpu.memory_space<vmem>>, vector<1x256x128xbf16>,
    %c0_8 = arith.constant 0 : index
    %c256 = arith.constant 256 : index
    %c0_9 = arith.constant 0 : index
    %10 = vector.load %arg1[%c0_8, %c256, %c0_9] : memref<1x324x256xbf16, #tpu.memory_space<vmem>>, vector<1x68x256xbf16>
    %11 = vector.shape_cast %10 : vector<1x68x256xbf16> to vector<68x256xbf16>
    %c0_10 = arith.constant 0 : index
    %c0_11 = arith.constant 0 : index
    %12 = vector.load %arg2[%c0_10, %c0_11] : memref<256x128xbf16, #tpu.memory_space<vmem>>, vector<256x128xbf16>
    %cst_12 = arith.constant dense<0.000000e+00> : vector<68x128xf32>
    %13 = tpu.matmul %11, %12, %cst_12 {dimension_numbers = #tpu.dot_dimension_numbers<[1], [0], [0], [1], [0, 0, 1, 1], [], []>} : vector<68x256xbf16>, vector<256x128xbf16>, vector<68x128xf32> -> vector<68x128xf32>
    %cst_13 = arith.constant 0.000000e+00 : f32
    %14 = vector.broadcast %cst_13 : f32 to vector<68x128xf32>
    %15 = arith.maximumf %13, %14 : vector<68x128xf32>
    %16 = arith.truncf %15 : vector<68x128xf32> to vector<68x128xbf16>
    %c0_14 = arith.constant 0 : index
    %c256_15 = arith.constant 256 : index
    %c0_16 = arith.constant 0 : index
    %17 = vector.load %arg3[%c0_14, %c256_15, %c0_16] : memref<1x324x128xbf16, #tpu.memory_space<vmem>>, vector<1x68x128xbf16>
    %18 = vector.shape_cast %17 : vector<1x68x128xbf16> to vector<68x128xbf16>
    %19 = vector.shape_cast %16 : vector<68x128xbf16> to vector<1x68x128xbf16>
    tpu.vector_store %arg3[%c0_14, %c256_15, %c0_16], %19 {strides = array<i32>} : memref<1x324x128xbf16, #tpu.memory_space<vmem>>, vector<1x68x128xbf16>,
    return
  }
  func.func @transform_0(%arg0: i32) -> (i32, i32, i32) {
    %c0_i32 = arith.constant 0 : i32
    %c0_i32_0 = arith.constant 0 : i32
    %c0_i32_1 = arith.constant 0 : i32
    return %arg0, %c0_i32, %c0_i32_0 : i32, i32, i32
  }
  func.func @transform_1(%arg0: i32) -> (i32, i32) {
    %c0_i32 = arith.constant 0 : i32
    %c0_i32_0 = arith.constant 0 : i32
    %c0_i32_1 = arith.constant 0 : i32
    return %c0_i32, %c0_i32_0 : i32, i32
  }
  func.func @transform_2(%arg0: i32) -> (i32, i32, i32) {
    %c0_i32 = arith.constant 0 : i32
    %c0_i32_0 = arith.constant 0 : i32
    %c0_i32_1 = arith.constant 0 : i32
    return %arg0, %c0_i32, %c0_i32_0 : i32, i32, i32
  }
}

module attributes {stable_mosaic.version = 11 : i64} {
  func.func @kernel(%arg0: i32, %arg1: memref<1x100x256xbf16, #tpu.memory_space<vmem>>, %arg2: memref<256x128xbf16, #tpu.memory_space<vmem>>, %arg3: memref<1x100x128xbf16, #tpu.memory_space<vmem>>) attributes {dimension_semantics = [#tpu.dimension_semantics<parallel>], iteration_bounds = array<i64: 2>, scalar_prefetch = 0 : i64, scratch_operands = 0 : i64, tpu.core_type = #tpu.core_type<tc>, window_params = [{transform_indices = @transform_0, window_bounds = array<i64: 1, 100, 256>}, {pipeline_mode = #tpu.pipeline_mode<synchronous>, transform_indices = @transform_1, window_bounds = array<i64: 256, 128>}, {transform_indices = @transform_2, window_bounds = array<i64: 1, 100, 128>}]} {
    %c0 = arith.constant 0 : index
    %c0_0 = arith.constant 0 : index
    %c0_1 = arith.constant 0 : index
    %0 = vector.load %arg1[%c0, %c0_0, %c0_1] : memref<1x100x256xbf16, #tpu.memory_space<vmem>>, vector<1x100x256xbf16>
    %1 = vector.shape_cast %0 : vector<1x100x256xbf16> to vector<100x256xbf16>
    %c0_2 = arith.constant 0 : index
    %c0_3 = arith.constant 0 : index
    %2 = vector.load %arg2[%c0_2, %c0_3] : memref<256x128xbf16, #tpu.memory_space<vmem>>, vector<256x128xbf16>
    %cst = arith.constant dense<0.000000e+00> : vector<100x128xf32>
    %3 = tpu.matmul %1, %2, %cst {dimension_numbers = #tpu.dot_dimension_numbers<[1], [0], [0], [1], [0, 0, 1, 1], [], []>} : vector<100x256xbf16>, vector<256x128xbf16>, vector<100x128xf32> -> vector<100x128xf32>
    %cst_4 = arith.constant 0.000000e+00 : f32
    %4 = vector.broadcast %cst_4 : f32 to vector<100x128xf32>
    %5 = arith.maximumf %3, %4 : vector<100x128xf32>
    %6 = arith.truncf %5 : vector<100x128xf32> to vector<100x128xbf16>
    %c0_5 = arith.constant 0 : index
    %c0_6 = arith.constant 0 : index
    %c0_7 = arith.constant 0 : index
    %7 = vector.load %arg3[%c0_5, %c0_6, %c0_7] : memref<1x100x128xbf16, #tpu.memory_space<vmem>>, vector<1x100x128xbf16>
    %8 = vector.shape_cast %7 : vector<1x100x128xbf16> to vector<100x128xbf16>
    %9 = vector.shape_cast %6 : vector<100x128xbf16> to vector<1x100x128xbf16>
    tpu.vector_store %arg3[%c0_5, %c0_6, %c0_7], %9 {strides = array<i32>} : memref<1x100x128xbf16, #tpu.memory_space<vmem>>, vector<1x100x128xbf16>,
    return
  }
  func.func @transform_0(%arg0: i32) -> (i32, i32, i32) {
    %c0_i32 = arith.constant 0 : i32
    %c0_i32_0 = arith.constant 0 : i32
    %c0_i32_1 = arith.constant 0 : i32
    return %arg0, %c0_i32, %c0_i32_0 : i32, i32, i32
  }
  func.func @transform_1(%arg0: i32) -> (i32, i32) {
    %c0_i32 = arith.constant 0 : i32
    %c0_i32_0 = arith.constant 0 : i32
    %c0_i32_1 = arith.constant 0 : i32
    return %c0_i32, %c0_i32_0 : i32, i32
  }
  func.func @transform_2(%arg0: i32) -> (i32, i32, i32) {
    %c0_i32 = arith.constant 0 : i32
    %c0_i32_0 = arith.constant 0 : i32
    %c0_i32_1 = arith.constant 0 : i32
    return %arg0, %c0_i32, %c0_i32_0 : i32, i32, i32
  }
}

module attributes {stable_mosaic.version = 11 : i64} {
  func.func @kernel(%arg0: i32, %arg1: memref<1x100x128xbf16, #tpu.memory_space<vmem>>, %arg2: memref<128x128xbf16, #tpu.memory_space<vmem>>, %arg3: memref<1x128xf32, #tpu.memory_space<vmem>>, %arg4: memref<1x1x128xf32, #tpu.memory_space<vmem>>) attributes {dimension_semantics = [#tpu.dimension_semantics<parallel>], iteration_bounds = array<i64: 2>, scalar_prefetch = 0 : i64, scratch_operands = 0 : i64, tpu.core_type = #tpu.core_type<tc>, window_params = [{transform_indices = @transform_0, window_bounds = array<i64: 1, 100, 128>}, {pipeline_mode = #tpu.pipeline_mode<synchronous>, transform_indices = @transform_1, window_bounds = array<i64: 128, 128>}, {pipeline_mode = #tpu.pipeline_mode<synchronous>, transform_indices = @transform_2, window_bounds = array<i64: 1, 128>}, {transform_indices = @transform_3, window_bounds = array<i64: 1, 1, 128>}]} {
    %c0 = arith.constant 0 : index
    %c0_0 = arith.constant 0 : index
    %c0_1 = arith.constant 0 : index
    %0 = vector.load %arg1[%c0, %c0_0, %c0_1] : memref<1x100x128xbf16, #tpu.memory_space<vmem>>, vector<1x100x128xbf16>
    %1 = vector.shape_cast %0 : vector<1x100x128xbf16> to vector<100x128xbf16>
    %2 = arith.extf %1 : vector<100x128xbf16> to vector<100x128xf32>
    %cst = arith.constant dense<0.000000e+00> : vector<128xf32>
    %3 = vector.multi_reduction <add>, %2, %cst [0] : vector<100x128xf32> to vector<128xf32>
    %4 = vector.shape_cast %3 : vector<128xf32> to vector<1x128xf32>
    %cst_2 = arith.constant 1.562500e-02 : f32
    %5 = vector.broadcast %cst_2 : f32 to vector<1x128xf32>
    %6 = arith.mulf %4, %5 : vector<1x128xf32>
    %7 = arith.truncf %6 : vector<1x128xf32> to vector<1x128xbf16>
    %c0_3 = arith.constant 0 : index
    %c0_4 = arith.constant 0 : index
    %8 = vector.load %arg2[%c0_3, %c0_4] : memref<128x128xbf16, #tpu.memory_space<vmem>>, vector<128x128xbf16>
    %cst_5 = arith.constant dense<0.000000e+00> : vector<1x128xf32>
    %9 = tpu.matmul %7, %8, %cst_5 {dimension_numbers = #tpu.dot_dimension_numbers<[1], [0], [0], [1], [0, 0, 1, 1], [], []>} : vector<1x128xbf16>, vector<128x128xbf16>, vector<1x128xf32> -> vector<1x128xf32>
    %c0_6 = arith.constant 0 : index
    %c0_7 = arith.constant 0 : index
    %10 = vector.load %arg3[%c0_6, %c0_7] : memref<1x128xf32, #tpu.memory_space<vmem>>, vector<1x128xf32>
    %11 = arith.addf %9, %10 : vector<1x128xf32>
    %c0_8 = arith.constant 0 : index
    %c0_9 = arith.constant 0 : index
    %c0_10 = arith.constant 0 : index
    %12 = vector.load %arg4[%c0_8, %c0_9, %c0_10] : memref<1x1x128xf32, #tpu.memory_space<vmem>>, vector<1x1x128xf32>
    %13 = vector.shape_cast %12 : vector<1x1x128xf32> to vector<1x128xf32>
    %14 = vector.shape_cast %11 : vector<1x128xf32> to vector<1x1x128xf32>
    tpu.vector_store %arg4[%c0_8, %c0_9, %c0_10], %14 {strides = array<i32>} : memref<1x1x128xf32, #tpu.memory_space<vmem>>, vector<1x1x128xf32>,
    return
  }
  func.func @transform_0(%arg0: i32) -> (i32, i32, i32) {
    %c0_i32 = arith.constant 0 : i32
    %c0_i32_0 = arith.constant 0 : i32
    %c0_i32_1 = arith.constant 0 : i32
    return %arg0, %c0_i32, %c0_i32_0 : i32, i32, i32
  }
  func.func @transform_1(%arg0: i32) -> (i32, i32) {
    %c0_i32 = arith.constant 0 : i32
    %c0_i32_0 = arith.constant 0 : i32
    %c0_i32_1 = arith.constant 0 : i32
    return %c0_i32, %c0_i32_0 : i32, i32
  }
  func.func @transform_2(%arg0: i32) -> (i32, i32) {
    %c0_i32 = arith.constant 0 : i32
    %c0_i32_0 = arith.constant 0 : i32
    %c0_i32_1 = arith.constant 0 : i32
    return %c0_i32, %c0_i32_0 : i32, i32
  }
  func.func @transform_3(%arg0: i32) -> (i32, i32, i32) {
    %c0_i32 = arith.constant 0 : i32
    %c0_i32_0 = arith.constant 0 : i32
    %c0_i32_1 = arith.constant 0 : i32
    return %arg0, %c0_i32, %c0_i32_0 : i32, i32, i32
  }
}

module attributes {stable_mosaic.version = 11 : i64} {
  func.func @kernel(%arg0: i32, %arg1: memref<1x100x384xbf16, #tpu.memory_space<vmem>>, %arg2: memref<384x128xbf16, #tpu.memory_space<vmem>>, %arg3: memref<1x100x128xbf16, #tpu.memory_space<vmem>>) attributes {dimension_semantics = [#tpu.dimension_semantics<parallel>], iteration_bounds = array<i64: 2>, scalar_prefetch = 0 : i64, scratch_operands = 0 : i64, tpu.core_type = #tpu.core_type<tc>, window_params = [{transform_indices = @transform_0, window_bounds = array<i64: 1, 100, 384>}, {pipeline_mode = #tpu.pipeline_mode<synchronous>, transform_indices = @transform_1, window_bounds = array<i64: 384, 128>}, {transform_indices = @transform_2, window_bounds = array<i64: 1, 100, 128>}]} {
    %c0 = arith.constant 0 : index
    %c0_0 = arith.constant 0 : index
    %c0_1 = arith.constant 0 : index
    %0 = vector.load %arg1[%c0, %c0_0, %c0_1] : memref<1x100x384xbf16, #tpu.memory_space<vmem>>, vector<1x100x384xbf16>
    %1 = vector.shape_cast %0 : vector<1x100x384xbf16> to vector<100x384xbf16>
    %c0_2 = arith.constant 0 : index
    %c0_3 = arith.constant 0 : index
    %2 = vector.load %arg2[%c0_2, %c0_3] : memref<384x128xbf16, #tpu.memory_space<vmem>>, vector<384x128xbf16>
    %cst = arith.constant dense<0.000000e+00> : vector<100x128xf32>
    %3 = tpu.matmul %1, %2, %cst {dimension_numbers = #tpu.dot_dimension_numbers<[1], [0], [0], [1], [0, 0, 1, 1], [], []>} : vector<100x384xbf16>, vector<384x128xbf16>, vector<100x128xf32> -> vector<100x128xf32>
    %cst_4 = arith.constant 0.000000e+00 : f32
    %4 = vector.broadcast %cst_4 : f32 to vector<100x128xf32>
    %5 = arith.maximumf %3, %4 : vector<100x128xf32>
    %6 = arith.truncf %5 : vector<100x128xf32> to vector<100x128xbf16>
    %c0_5 = arith.constant 0 : index
    %c0_6 = arith.constant 0 : index
    %c0_7 = arith.constant 0 : index
    %7 = vector.load %arg3[%c0_5, %c0_6, %c0_7] : memref<1x100x128xbf16, #tpu.memory_space<vmem>>, vector<1x100x128xbf16>
    %8 = vector.shape_cast %7 : vector<1x100x128xbf16> to vector<100x128xbf16>
    %9 = vector.shape_cast %6 : vector<100x128xbf16> to vector<1x100x128xbf16>
    tpu.vector_store %arg3[%c0_5, %c0_6, %c0_7], %9 {strides = array<i32>} : memref<1x100x128xbf16, #tpu.memory_space<vmem>>, vector<1x100x128xbf16>,
    return
  }
  func.func @transform_0(%arg0: i32) -> (i32, i32, i32) {
    %c0_i32 = arith.constant 0 : i32
    %c0_i32_0 = arith.constant 0 : i32
    %c0_i32_1 = arith.constant 0 : i32
    return %arg0, %c0_i32, %c0_i32_0 : i32, i32, i32
  }
  func.func @transform_1(%arg0: i32) -> (i32, i32) {
    %c0_i32 = arith.constant 0 : i32
    %c0_i32_0 = arith.constant 0 : i32
    %c0_i32_1 = arith.constant 0 : i32
    return %c0_i32, %c0_i32_0 : i32, i32
  }
  func.func @transform_2(%arg0: i32) -> (i32, i32, i32) {
    %c0_i32 = arith.constant 0 : i32
    %c0_i32_0 = arith.constant 0 : i32
    %c0_i32_1 = arith.constant 0 : i32
    return %arg0, %c0_i32, %c0_i32_0 : i32, i32, i32
  }
}

</mosaic_0001>

<bundles_post_ra>
// kernel: resnet_forward.8
= control target key start
LH: loop header
LB: loop body
LE: loop exit
PB: predicated region body
PF: predicated region fallthrough
CT: control target
= control target key end

     0   :  { %s4085_s9 = smov 0   ;;  %s4405_s0 = inlined_call_operand.vmem [shape: bf16[2,1156,128], index: 0, kind: input, shape index: {}]   ;;  %s4406_s1 = inlined_call_operand.vmem [shape: bf16[128,128], index: 1, kind: input, shape index: {}]   ;;  %s4407_s2 = inlined_call_operand.vmem [shape: bf16[2,1156,128], index: 2, kind: output, shape index: {}]  }
   0x1 LB: > { %s2720_s10 = sadd.s32 4294967295, %s4066_s9   ;;  %p2724_p0 = scmp.ge.s32.totalorder %s4066_s9, 1  ;;  %s4066_s9 = sphi %s4085_s9, %s12_s9  }
   0x2   : > { %p112_p1 = scmp.lt.s32.totalorder %s4066_s9, 3 }
   0x4   : > { %p113_p2 = pnand %p2724_p0, %p112_p1 }
   0x5   : > { %v3947_v0 = vld [vmem:[%s4406_s1] sm:$0xff] (!%p113_p2)   ;;  %p134_p3 = scmp.lt.s32.totalorder (!%p113_p2), %s2720_s10, 1  ;;  %v3948_v1 = vld [vmem:[%s4406_s1 + $0x8] sm:$0xff] (!%p113_p2)   ;;  %v3949_v2 = vld [vmem:[%s4406_s1 + $0x10] sm:$0xff] (!%p113_p2)   ;;  %v4068_v47 = vmov (!%p113_p2), 0.0   ;;  %vm4069_vm0 = vmmov (!%p113_p2), 0  }
   0x6   : > { %116 = sbr.rel (%p113_p2) target bundleno = 415 (0x19f), region = 28  ;;  %3676 = vmatprep.subr.bf16.mxu0 (!%p113_p2), %v3947_v0  ;;  %3920 = vmatprep.subr.bf16.mxu1 (!%p113_p2), %v3947_v0  ;;  %v3950_v3 = vld [vmem:[%s4406_s1 + $0x18] sm:$0xff] (!%p113_p2)   ;;  %v3951_v6 = vld [vmem:[%s4406_s1 + $0x20] sm:$0xff] (!%p113_p2)   ;;  %v3952_v7 = vld [vmem:[%s4406_s1 + $0x28] sm:$0xff] (!%p113_p2)  }
   0x7   : > { %3677 = vmatpush3.bf16.msra.mxu0 (!%p113_p2), %v3947_v0  ;;  %3928 = vmatpush3.bf16.msra.mxu1 (!%p113_p2), %v3947_v0  ;;  %v3953_v8 = vld [vmem:[%s4406_s1 + $0x30] sm:$0xff] (!%p113_p2)   ;;  %v3954_v9 = vld [vmem:[%s4406_s1 + $0x38] sm:$0xff] (!%p113_p2)   ;;  %v3957_v10 = vld [vmem:[%s4406_s1] sm:$0xff] (!%p113_p2)  }
   0x8   : > { %3678 = vmatprep.subr.bf16.mxu0 (!%p113_p2), %v3948_v1  ;;  %3921 = vmatprep.subr.bf16.mxu1 (!%p113_p2), %v3948_v1  ;;  %v3960_v12 = vld [vmem:[%s4406_s1] sm:$0xff] (!%p113_p2)   ;;  %v3961_v14 = vld [vmem:[%s4406_s1 + $0x8] sm:$0xff] (!%p113_p2)   ;;  %v3965_v18 = vld [vmem:[%s4406_s1 + $0x10] sm:$0xff] (!%p113_p2)  }
   0x9   : > { %v3963_v16 = vld [vmem:[%s4406_s1 + $0x8] sm:$0xff] (!%p113_p2)   ;;  %v3968_v20 = vld [vmem:[%s4406_s1 + $0x10] sm:$0xff] (!%p113_p2)   ;;  %v3969_v22 = vld [vmem:[%s4406_s1 + $0x18] sm:$0xff] (!%p113_p2)  }
   0xa   : > { %v3971_v24 = vld [vmem:[%s4406_s1 + $0x18] sm:$0xff] (!%p113_p2)   ;;  %v3973_v26 = vld [vmem:[%s4406_s1 + $0x20] sm:$0xff] (!%p113_p2)   ;;  %v3977_v30 = vld [vmem:[%s4406_s1 + $0x28] sm:$0xff] (!%p113_p2)  }
   0xb   : > { %3679 = vmatpush3.bf16.msra.mxu0 (!%p113_p2), %v3948_v1  ;;  %3929 = vmatpush3.bf16.msra.mxu1 (!%p113_p2), %v3948_v1  ;;  %v3976_v28 = vld [vmem:[%s4406_s1 + $0x20] sm:$0xff] (!%p113_p2)   ;;  %v3979_v32 = vld [vmem:[%s4406_s1 + $0x28] sm:$0xff] (!%p113_p2)   ;;  %v3981_v34 = vld [vmem:[%s4406_s1 + $0x30] sm:$0xff] (!%p113_p2)  }
   0xc   : > { %3680 = vmatprep.subr.bf16.mxu0 (!%p113_p2), %v3949_v2  ;;  %3922 = vmatprep.subr.bf16.mxu1 (!%p113_p2), %v3949_v2  ;;  %v3984_v36 = vld [vmem:[%s4406_s1 + $0x30] sm:$0xff] (!%p113_p2)   ;;  %v3985_v38 = vld [vmem:[%s4406_s1 + $0x38] sm:$0xff] (!%p113_p2)   ;;  %v3992_v43 = vld [vmem:[%s4406_s1] sm:$0xff] (!%p113_p2)  }
   0xd   : > { %s4409_s10 = smov (!%p134_p3, %s2720_s10), 1  ;;  %v3986_v39 = vld [vmem:[%s4406_s1 + $0x38] sm:$0xff]   ;;  %v3989_v44 = vld [vmem:[%s4406_s1] sm:$0xff]   ;;  %v3998_v49 = vld [vmem:[%s4406_s1 + $0x8] sm:$0xff]  }
   0xe   : > { %s3936_s17 = smul.u32 580, %s4409_s10  ;;  %v3995_v50 = vld [vmem:[%s4406_s1 + $0x8] sm:$0xff]   ;;  %v4004_v52 = vld [vmem:[%s4406_s1 + $0x10] sm:$0xff]   ;;  %v4010_v57 = vld [vmem:[%s4406_s1 + $0x18] sm:$0xff]  }
   0xf   : > { %3681 = vmatpush3.bf16.msra.mxu0 %v3949_v2  ;;  %3930 = vmatpush3.bf16.msra.mxu1 %v3949_v2  ;;  %v4001_v55 = vld [vmem:[%s4406_s1 + $0x10] sm:$0xff]   ;;  %v4007_v58 = vld [vmem:[%s4406_s1 + $0x18] sm:$0xff]   ;;  %v4016_v61 = vld [vmem:[%s4406_s1 + $0x20] sm:$0xff]  }
  0x10   : > { %s4110_s20 = scalar_lea.vmem %s4405_s0, %s3936_s17  ;;  %3682 = vmatprep.subr.bf16.mxu0 %v3950_v3  ;;  %3923 = vmatprep.subr.bf16.mxu1 %v3950_v3  ;;  %v4013_v0 = vld [vmem:[%s4406_s1 + $0x20] sm:$0xff]   ;;  %v4022_v1 = vld [vmem:[%s4406_s1 + $0x28] sm:$0xff]  }
  0x11   : > { %v3955_v4 = vld [vmem:[%s4110_s20] sm:$0xff]   ;;  %v3956_v11 = vld [vmem:[%s4110_s20 + $0x8] sm:$0xff]   ;;  %v3962_v15 = vld [vmem:[%s4110_s20 + $0x10] sm:$0xff]  }
  0x12   : > { %3692 = vmatprep.mubr.bf16.mxu0 %v3955_v4  ;;  %v3958_v5 = vld [vmem:[%s4110_s20 + $0x40] sm:$0xff]   ;;  %v3959_v13 = vld [vmem:[%s4110_s20 + $0x48] sm:$0xff]   ;;  %v3966_v17 = vld [vmem:[%s4110_s20 + $0x50] sm:$0xff]  }
  0x13   : > { %3708 = vmatprep.mubr.bf16.mxu1 %v3958_v5  ;;  %3683 = vmatpush3.bf16.msra.mxu0 %v3950_v3  ;;  %v3964_v19 = vld [vmem:[%s4110_s20 + $0x18] sm:$0xff]   ;;  %v3970_v23 = vld [vmem:[%s4110_s20 + $0x20] sm:$0xff]   ;;  %v3972_v27 = vld [vmem:[%s4110_s20 + $0x28] sm:$0xff]  }
  0x14   : > { %3931 = vmatpush3.bf16.msra.mxu1 %v3950_v3  ;;  %3684 = vmatprep.subr.bf16.mxu0 %v3951_v6  ;;  %v3967_v21 = vld [vmem:[%s4110_s20 + $0x58] sm:$0xff]   ;;  %v3974_v25 = vld [vmem:[%s4110_s20 + $0x60] sm:$0xff]   ;;  %v3975_v29 = vld [vmem:[%s4110_s20 + $0x68] sm:$0xff]  }
  0x15   : > { %3924 = vmatprep.subr.bf16.mxu1 %v3951_v6  ;;  %v3978_v31 = vld [vmem:[%s4110_s20 + $0x30] sm:$0xff]   ;;  %v3980_v35 = vld [vmem:[%s4110_s20 + $0x38] sm:$0xff]   ;;  %v3987_v40 = vld [vmem:[%s4110_s20 + $0x100] sm:$0xff]  }
  0x16   : > { %v3982_v33 = vld [vmem:[%s4110_s20 + $0x70] sm:$0xff]   ;;  %v3983_v37 = vld [vmem:[%s4110_s20 + $0x78] sm:$0xff]   ;;  %v3990_v41 = vld [vmem:[%s4110_s20 + $0x80] sm:$0xff]  }
  0x17   : > { %3685 = vmatpush3.bf16.msra.mxu0 %v3951_v6  ;;  %v3988_v42 = vld [vmem:[%s4110_s20 + $0x108] sm:$0xff]   ;;  %v3993_v46 = vld [vmem:[%s4110_s20 + $0x110] sm:$0xff]   ;;  %v3994_v51 = vld [vmem:[%s4110_s20 + $0x118] sm:$0xff]  }
  0x18   : > { %3932 = vmatpush3.bf16.msra.mxu1 %v3951_v6  ;;  %3686 = vmatprep.subr.bf16.mxu0 %v3952_v7  ;;  %v3991_v45 = vld [vmem:[%s4110_s20 + $0x88] sm:$0xff]   ;;  %v3996_v48 = vld [vmem:[%s4110_s20 + $0x90] sm:$0xff]   ;;  %v3997_v53 = vld [vmem:[%s4110_s20 + $0x98] sm:$0xff]  }
  0x19   : > { %3925 = vmatprep.subr.bf16.mxu1 %v3952_v7  ;;  %v3999_v54 = vld [vmem:[%s4110_s20 + $0x120] sm:$0xff]   ;;  %v4000_v59 = vld [vmem:[%s4110_s20 + $0x128] sm:$0xff]   ;;  %v4005_v62 = vld [vmem:[%s4110_s20 + $0x130] sm:$0xff]  }
  0x1a   : > { %v4002_v56 = vld [vmem:[%s4110_s20 + $0xa0] sm:$0xff]   ;;  %v4003_v60 = vld [vmem:[%s4110_s20 + $0xa8] sm:$0xff]   ;;  %v4008_v63 = vld [vmem:[%s4110_s20 + $0xb0] sm:$0xff]  }
  0x1b   : > { %3687 = vmatpush3.bf16.msra.mxu0 %v3952_v7  ;;  %v4006_v2 = vld [vmem:[%s4110_s20 + $0x138] sm:$0xff]   ;;  %v4019_v4 = vld [vmem:[%s4406_s1 + $0x28] sm:$0xff]   ;;  %v4028_v5 = vld [vmem:[%s4406_s1 + $0x30] sm:$0xff]  }
  0x1c   : > { %3933 = vmatpush3.bf16.msra.mxu1 %v3952_v7  ;;  %3688 = vmatprep.subr.bf16.mxu0 %v3953_v8  ;;  %v4009_v3 = vld [vmem:[%s4110_s20 + $0xb8] sm:$0xff]   ;;  %v4011_v6 = vld [vmem:[%s4110_s20 + $0x140] sm:$0xff]  }
  0x1d   : > { %3926 = vmatprep.subr.bf16.mxu1 %v3953_v8  ;;  %v4014_v7 = vld [vmem:[%s4110_s20 + $0xc0] sm:$0xff]  }
  0x1f   : > { %3689 = vmatpush3.bf16.msra.mxu0 %v3953_v8 }
  0x20   : > { %3934 = vmatpush3.bf16.msra.mxu1 %v3953_v8  ;;  %3690 = vmatprep.subr.bf16.mxu0 %v3954_v9  ;;  %v4025_v8 = vld [vmem:[%s4406_s1 + $0x30] sm:$0xff]  }
  0x21   : > { %3927 = vmatprep.subr.bf16.mxu1 %v3954_v9 }
  0x23   : > { %3691 = vmatpush3.bf16.msra.mxu0 %v3954_v9 }
  0x24   : > { %3935 = vmatpush3.bf16.msra.mxu1 %v3954_v9  ;;  %3772 = vmatprep.subr.bf16.mxu0 %v3957_v10  ;;  %v4034_v9 = vld [vmem:[%s4406_s1 + $0x38] sm:$0xff]  }
  0x25   : > { %3724 = vmatprep.subr.bf16.mxu1 %v3960_v12 }
  0x26   : > { %3693 = vmatmul.mubr.bf16.vlgmr.msra.gmra.mrb[0].mxu0 %v3956_v11  ;;  %v4031_v11 = vld [vmem:[%s4406_s1 + $0x38] sm:$0xff]  }
  0x27   : > { %3709 = vmatmul.mubr.bf16.vlgmr.msra.gmra.mrb[0].mxu1 %v3959_v13  ;;  %3773 = vmatpush3.bf16.msra.mxu0 %v3957_v10  ;;  %v4012_v10 = vld [vmem:[%s4110_s20 + $0x148] sm:$0xff]   ;;  %v4017_v13 = vld [vmem:[%s4110_s20 + $0x150] sm:$0xff]  }
  0x28   : > { %3725 = vmatpush3.bf16.msra.mxu1 %v3960_v12  ;;  %3774 = vmatprep.subr.bf16.mxu0 %v3961_v14  ;;  %v4015_v12 = vld [vmem:[%s4110_s20 + $0xc8] sm:$0xff]  }
  0x29   : > { %3696 = vmatprep.mubr.bf16.mxu0 %v3962_v15  ;;  %3726 = vmatprep.subr.bf16.mxu1 %v3963_v16  ;;  %v4018_v15 = vld [vmem:[%s4110_s20 + $0x158] sm:$0xff]  }
  0x2a   : > { %3712 = vmatprep.mubr.bf16.mxu1 %v3966_v17  ;;  %v4023_v17 = vld [vmem:[%s4110_s20 + $0x160] sm:$0xff]  }
  0x2b   : > { %3775 = vmatpush3.bf16.msra.mxu0 %v3961_v14  ;;  %v4020_v14 = vld [vmem:[%s4110_s20 + $0xd0] sm:$0xff]  }
  0x2c   : > { %3727 = vmatpush3.bf16.msra.mxu1 %v3963_v16  ;;  %3776 = vmatprep.subr.bf16.mxu0 %v3965_v18  ;;  %v4021_v16 = vld [vmem:[%s4110_s20 + $0xd8] sm:$0xff]  }
  0x2d   : > { %3728 = vmatprep.subr.bf16.mxu1 %v3968_v20 }
  0x2e   : > { %3697 = vmatmul.mubr.bf16.gmra.mrb[4].mxu0 %v3964_v19  ;;  %v4024_v19 = vld [vmem:[%s4110_s20 + $0x168] sm:$0xff]  }
  0x2f   : > { %3713 = vmatmul.mubr.bf16.gmra.mrb[4].mxu1 %v3967_v21  ;;  %3777 = vmatpush3.bf16.msra.mxu0 %v3965_v18  ;;  %v4026_v18 = vld [vmem:[%s4110_s20 + $0xe0] sm:$0xff]   ;;  %v4029_v21 = vld [vmem:[%s4110_s20 + $0x170] sm:$0xff]  }
  0x30   : > { %3729 = vmatpush3.bf16.msra.mxu1 %v3968_v20  ;;  %3778 = vmatprep.subr.bf16.mxu0 %v3969_v22  ;;  %v4027_v20 = vld [vmem:[%s4110_s20 + $0xe8] sm:$0xff]  }
  0x31   : > { %3700 = vmatprep.mubr.bf16.mxu0 %v3970_v23  ;;  %3730 = vmatprep.subr.bf16.mxu1 %v3971_v24  ;;  %v4030_v23 = vld [vmem:[%s4110_s20 + $0x178] sm:$0xff]  }
  0x32   : > { %3716 = vmatprep.mubr.bf16.mxu1 %v3974_v25  ;;  %v4036_v25 = vld [vmem:[%s4110_s20 + $0x180] sm:$0xff]  }
  0x33   : > { %3779 = vmatpush3.bf16.msra.mxu0 %v3969_v22  ;;  %v4032_v22 = vld [vmem:[%s4110_s20 + $0xf0] sm:$0xff]  }
  0x34   : > { %3731 = vmatpush3.bf16.msra.mxu1 %v3971_v24  ;;  %3780 = vmatprep.subr.bf16.mxu0 %v3973_v26  ;;  %v4033_v24 = vld [vmem:[%s4110_s20 + $0xf8] sm:$0xff]  }
  0x35   : > { %3732 = vmatprep.subr.bf16.mxu1 %v3976_v28 }
  0x36   : > { %3701 = vmatmul.mubr.bf16.gmra.mrb[8].mxu0 %v3972_v27  ;;  %v4037_v27 = vld [vmem:[%s4110_s20 + $0x188] sm:$0xff]  }
  0x37   : > { %3717 = vmatmul.mubr.bf16.gmra.mrb[8].mxu1 %v3975_v29  ;;  %3781 = vmatpush3.bf16.msra.mxu0 %v3973_v26  ;;  %v4035_v26 = vld [vmem:[%s4110_s20 + $0x200] sm:$0xff]   ;;  %v4038_v29 = vld [vmem:[%s4110_s20 + $0x208] sm:$0xff]  }
  0x38   : > { %3733 = vmatpush3.bf16.msra.mxu1 %v3976_v28  ;;  %3782 = vmatprep.subr.bf16.mxu0 %v3977_v30  ;;  %v4039_v28 = vld [vmem:[%s4110_s20 + $0x190] sm:$0xff]  }
  0x39   : > { %3704 = vmatprep.mubr.bf16.mxu0 %v3978_v31  ;;  %3734 = vmatprep.subr.bf16.mxu1 %v3979_v32  ;;  %v4042_v31 = vld [vmem:[%s4110_s20 + $0x1a0] sm:$0xff]  }
  0x3a   : > { %3720 = vmatprep.mubr.bf16.mxu1 %v3982_v33  ;;  %v4043_v33 = vld [vmem:[%s4110_s20 + $0x1a8] sm:$0xff]  }
  0x3b   : > { %3783 = vmatpush3.bf16.msra.mxu0 %v3977_v30  ;;  %v4040_v30 = vld [vmem:[%s4110_s20 + $0x198] sm:$0xff]  }
  0x3c   : > { %3735 = vmatpush3.bf16.msra.mxu1 %v3979_v32  ;;  %3784 = vmatprep.subr.bf16.mxu0 %v3981_v34  ;;  %v4041_v32 = vld [vmem:[%s4110_s20 + $0x210] sm:$0xff]  }
  0x3d   : > { %3736 = vmatprep.subr.bf16.mxu1 %v3984_v36 }
  0x3e   : > { %3705 = vmatmul.mubr.bf16.gmra.mrb[12].mxu0 %v3980_v35  ;;  %v4044_v35 = vld [vmem:[%s4110_s20 + $0x218] sm:$0xff]  }
  0x3f   : > { %3721 = vmatmul.mubr.bf16.gmra.mrb[12].mxu1 %v3983_v37  ;;  %3785 = vmatpush3.bf16.msra.mxu0 %v3981_v34  ;;  %v4045_v34 = vld [vmem:[%s4110_s20 + $0x1b0] sm:$0xff]   ;;  %v4048_v37 = vld [vmem:[%s4110_s20 + $0x1c0] sm:$0xff]  }
  0x40   : > { %3737 = vmatpush3.bf16.msra.mxu1 %v3984_v36  ;;  %3786 = vmatprep.subr.bf16.mxu0 %v3985_v38  ;;  %v4046_v36 = vld [vmem:[%s4110_s20 + $0x1b8] sm:$0xff]  }
  0x41   : > { %3738 = vmatprep.subr.bf16.mxu1 %v3986_v39  ;;  %3788 = vmatprep.mubr.bf16.mxu0 %v3987_v40  ;;  %v4051_v40 = vld [vmem:[%s4110_s20 + $0x1d0] sm:$0xff]  }
  0x42   : > { %3740 = vmatprep.mubr.bf16.mxu1 %v3990_v41  ;;  %v4050_v41 = vld [vmem:[%s4110_s20 + $0x228] sm:$0xff]  }
  0x43   : > { %3787 = vmatpush3.bf16.msra.mxu0 %v3985_v38  ;;  %v4047_v38 = vld [vmem:[%s4110_s20 + $0x220] sm:$0xff]  }
  0x44   : > { %3739 = vmatpush3.bf16.msra.mxu1 %v3986_v39  ;;  %3868 = vmatprep.subr.bf16.mxu0 %v4068_v47  ;;  %v4049_v39 = vld [vmem:[%s4110_s20 + $0x1c8] sm:$0xff]  }
  0x45   : > { %3820 = vmatprep.subr.bf16.mxu1 %v3992_v43 }
  0x46   : > { %3789 = vmatmul.mubr.bf16.vlgmr.msra.gmra.mrb[16].mxu0 %v3988_v42  ;;  %v4052_v42 = vld [vmem:[%s4110_s20 + $0x1d8] sm:$0xff]  }
  0x47   : > { %3741 = vmatmul.mubr.bf16.vlgmr.msra.gmra.mrb[16].mxu1 %v3991_v45  ;;  %3869 = vmatpush3.bf16.msra.mxu0 %v3989_v44  ;;  %v4053_v44 = vld [vmem:[%s4110_s20 + $0x230] sm:$0xff]   ;;  %v4055_v45 = vld [vmem:[%s4110_s20 + $0x1e8] sm:$0xff]  }
  0x48   : > { %3821 = vmatpush3.bf16.msra.mxu1 %v3992_v43  ;;  %3792 = vmatprep.mubr.bf16.mxu0 %v3993_v46  ;;  %v4054_v43 = vld [vmem:[%s4110_s20 + $0x1e0] sm:$0xff]   ;;  %v4057_v46 = vld [vmem:[%s4110_s20 + $0x1f0] sm:$0xff]  }
  0x49   : > { %3870 = vmatprep.subr.bf16.mxu0 %v4068_v47  ;;  %3744 = vmatprep.mubr.bf16.mxu1 %v3996_v48  ;;  %v4056_v48 = vld [vmem:[%s4110_s20 + $0x238] sm:$0xff]  }
  0x4a   : > { %3822 = vmatprep.subr.bf16.mxu1 %v3998_v49 }
  0x4b   : > { %3871 = vmatpush3.bf16.msra.mxu0 %v3995_v50  ;;  %v4059_v50 = vld [vmem:[%s4110_s20 + $0x240] ss:$0 sps:$4 sm:$0x33]  }
  0x4c   : > { %3823 = vmatpush3.bf16.msra.mxu1 %v3998_v49  ;;  %3872 = vmatprep.subr.bf16.mxu0 %v4068_v47  ;;  %v4058_v49 = vld [vmem:[%s4110_s20 + $0x1f8] sm:$0xff]   ;;  %s4327_s20 = scalar_lea.vmem %s4407_s2, %s3936_s17 }
  0x4d   : > { %3824 = vmatprep.subr.bf16.mxu1 %v4004_v52 }
  0x4e   : > { %3793 = vmatmul.mubr.bf16.gmra.mrb[20].mxu0 %v3994_v51 }
  0x4f   : > { %3745 = vmatmul.mubr.bf16.gmra.mrb[20].mxu1 %v3997_v53  ;;  %3796 = vmatprep.mubr.bf16.mxu0 %v3999_v54 }
  0x50   : > { %3873 = vmatpush3.bf16.msra.mxu0 %v4001_v55  ;;  %3748 = vmatprep.mubr.bf16.mxu1 %v4002_v56 }
  0x51   : > { %3825 = vmatpush3.bf16.msra.mxu1 %v4004_v52  ;;  %3874 = vmatprep.subr.bf16.mxu0 %v4068_v47 }
  0x52   : > { %3826 = vmatprep.subr.bf16.mxu1 %v4010_v57 }
  0x54   : > { %3875 = vmatpush3.bf16.msra.mxu0 %v4007_v58 }
  0x55   : > { %3827 = vmatpush3.bf16.msra.mxu1 %v4010_v57  ;;  %3876 = vmatprep.subr.bf16.mxu0 %v4068_v47 }
  0x56   : > { %3828 = vmatprep.subr.bf16.mxu1 %v4016_v61  ;;  %3797 = vmatmul.mubr.bf16.gmra.mrb[24].mxu0 %v4000_v59 }
  0x57   : > { %3749 = vmatmul.mubr.bf16.gmra.mrb[24].mxu1 %v4003_v60  ;;  %3800 = vmatprep.mubr.bf16.mxu0 %v4005_v62 }
  0x58   : > { %3752 = vmatprep.mubr.bf16.mxu1 %v4008_v63  ;;  %3877 = vmatpush3.bf16.msra.mxu0 %v4013_v0 }
  0x59   : > { %3829 = vmatpush3.bf16.msra.mxu1 %v4016_v61  ;;  %3878 = vmatprep.subr.bf16.mxu0 %v4068_v47 }
  0x5a   : > { %3830 = vmatprep.subr.bf16.mxu1 %v4022_v1 }
  0x5c   : > { %3879 = vmatpush3.bf16.msra.mxu0 %v4019_v4 }
  0x5d   : > { %3831 = vmatpush3.bf16.msra.mxu1 %v4022_v1  ;;  %3880 = vmatprep.subr.bf16.mxu0 %v4068_v47 }
  0x5e   : > { %3832 = vmatprep.subr.bf16.mxu1 %v4028_v5  ;;  %3801 = vmatmul.mubr.bf16.gmra.mrb[28].mxu0 %v4006_v2 }
  0x5f   : > { %3753 = vmatmul.mubr.bf16.gmra.mrb[28].mxu1 %v4009_v3  ;;  %3804 = vmatprep.mubr.bf16.mxu0 %v4011_v6 }
  0x60   : > { %3756 = vmatprep.mubr.bf16.mxu1 %v4014_v7  ;;  %3881 = vmatpush3.bf16.msra.mxu0 %v4025_v8 }
  0x61   : > { %3833 = vmatpush3.bf16.msra.mxu1 %v4028_v5  ;;  %3882 = vmatprep.subr.bf16.mxu0 %v4068_v47 }
  0x62   : > { %3834 = vmatprep.subr.bf16.mxu1 %v4034_v9 }
  0x64   : > { %3883 = vmatpush3.bf16.msra.mxu0 %v4031_v11 }
  0x65   : > { %3835 = vmatpush3.bf16.msra.mxu1 %v4034_v9 }
  0x66   : > { %3805 = vmatmul.mubr.bf16.gmra.mrb[32].mxu0 %v4012_v10 }
  0x67   : > { %3757 = vmatmul.mubr.bf16.gmra.mrb[32].mxu1 %v4015_v12  ;;  %3808 = vmatprep.mubr.bf16.mxu0 %v4017_v13 }
  0x68   : > { %3760 = vmatprep.mubr.bf16.mxu1 %v4020_v14 }
  0x6e   : > { %3809 = vmatmul.mubr.bf16.gmra.mrb[36].mxu0 %v4018_v15 }
  0x6f   : > { %3761 = vmatmul.mubr.bf16.gmra.mrb[36].mxu1 %v4021_v16  ;;  %3812 = vmatprep.mubr.bf16.mxu0 %v4023_v17 }
  0x70   : > { %3764 = vmatprep.mubr.bf16.mxu1 %v4026_v18 }
  0x76   : > { %3813 = vmatmul.mubr.bf16.gmra.mrb[40].mxu0 %v4024_v19 }
  0x77   : > { %3765 = vmatmul.mubr.bf16.gmra.mrb[40].mxu1 %v4027_v20  ;;  %3816 = vmatprep.mubr.bf16.mxu0 %v4029_v21 }
  0x78   : > { %3768 = vmatprep.mubr.bf16.mxu1 %v4032_v22 }
  0x7e   : > { %3817 = vmatmul.mubr.bf16.gmra.mrb[44].mxu0 %v4030_v23 }
  0x7f   : > { %3769 = vmatmul.mubr.bf16.gmra.mrb[44].mxu1 %v4033_v24  ;;  %3884 = vmatprep.mubr.msk.bf16.mxu0 %vm4069_vm0, %v4068_v47 }
  0x80   : > { %3836 = vmatprep.mubr.bf16.mxu1 %v4036_v25 }
  0x86   : > { %3885 = vmatmul.mubr.bf16.vlgmr.msra.gmra.mrb[48].mxu0 %v4035_v26 }
  0x87   : > { %3837 = vmatmul.mubr.bf16.vlgmr.msra.gmra.mrb[48].mxu1 %v4037_v27  ;;  %3888 = vmatprep.mubr.msk.bf16.mxu0 %vm4069_vm0, %v4068_v47 }
  0x88   : > { %3840 = vmatprep.mubr.bf16.mxu1 %v4039_v28 }
  0x8e   : > { %3889 = vmatmul.mubr.bf16.gmra.mrb[52].mxu0 %v4038_v29 }
  0x8f   : > { %3841 = vmatmul.mubr.bf16.gmra.mrb[52].mxu1 %v4040_v30  ;;  %3892 = vmatprep.mubr.msk.bf16.mxu0 %vm4069_vm0, %v4068_v47 }
  0x90   : > { %3844 = vmatprep.mubr.bf16.mxu1 %v4042_v31 }
  0x96   : > { %3893 = vmatmul.mubr.bf16.gmra.mrb[56].mxu0 %v4041_v32 }
  0x97   : > { %3845 = vmatmul.mubr.bf16.gmra.mrb[56].mxu1 %v4043_v33  ;;  %3896 = vmatprep.mubr.msk.bf16.mxu0 %vm4069_vm0, %v4068_v47 }
  0x98   : > { %3848 = vmatprep.mubr.bf16.mxu1 %v4045_v34 }
  0x9e   : > { %3897 = vmatmul.mubr.bf16.gmra.mrb[60].mxu0 %v4044_v35 }
  0x9f   : > { %3849 = vmatmul.mubr.bf16.gmra.mrb[60].mxu1 %v4046_v36  ;;  %3900 = vmatprep.mubr.msk.bf16.mxu0 %vm4069_vm0, %v4068_v47 }
  0xa0   : > { %3852 = vmatprep.mubr.bf16.mxu1 %v4048_v37 }
  0xa6   : > { %3901 = vmatmul.mubr.bf16.gmra.mrb[64].mxu0 %v4047_v38 }
  0xa7   : > { %3853 = vmatmul.mubr.bf16.gmra.mrb[64].mxu1 %v4049_v39  ;;  %3904 = vmatprep.mubr.msk.bf16.mxu0 %vm4069_vm0, %v4068_v47 }
  0xa8   : > { %3856 = vmatprep.mubr.bf16.mxu1 %v4051_v40 }
  0xae   : > { %3905 = vmatmul.mubr.bf16.gmra.mrb[68].mxu0 %v4050_v41 }
  0xaf   : > { %3857 = vmatmul.mubr.bf16.gmra.mrb[68].mxu1 %v4052_v42  ;;  %3908 = vmatprep.mubr.msk.bf16.mxu0 %vm4069_vm0, %v4068_v47 }
  0xb0   : > { %3860 = vmatprep.mubr.bf16.mxu1 %v4054_v43 }
  0xb6   : > { %3909 = vmatmul.mubr.bf16.gmra.mrb[72].mxu0 %v4053_v44 }
  0xb7   : > { %3861 = vmatmul.mubr.bf16.gmra.mrb[72].mxu1 %v4055_v45  ;;  %3912 = vmatprep.mubr.msk.bf16.mxu0 %vm4069_vm0, %v4068_v47 }
  0xb8   : > { %3864 = vmatprep.mubr.bf16.mxu1 %v4057_v46 }
  0xbe   : > { %3913 = vmatmul.mubr.bf16.gmra.mrb[76].mxu0 %v4056_v48 }
  0xbf   : > { %3865 = vmatmul.mubr.bf16.gmra.mrb[76].mxu1 %v4058_v49  ;;  %3916 = vmatprep.mubr.msk.bf16.mxu0 %vm4069_vm0, %v4068_v47 }
  0xc6   : > { %3917 = vmatmul.mubr.bf16.gmra.mrb[80].mxu0 %v4059_v50 }
  0xf9   : > { %v3694_v51 = vpop.f32.mrb[0].mxu0 }
  0xfa   : > { %v3710_v52 = vpop.f32.mrb[0].mxu1  ;;  %v371_v53 = vpop.f32.mrb[1].mxu0  ;;  %v500_v59 = vmax.f32 %v3694_v51, 0.0 }
  0xfb   : > { %v516_v54 = vmax.f32 %v3710_v52, 0.0  ;;  %v435_v55 = vpop.f32.mrb[1].mxu1  ;;  %v3695_v56 = vpop.f32.mrb[2].mxu0  ;;  %v498_v0 = vmax.f32 %v371_v53, 0.0 }
  0xfc   : > { %v514_v57 = vmax.f32 %v435_v55, 0.0  ;;  %v3711_v58 = vpop.f32.mrb[2].mxu1  ;;  %v501_v60 = vmax.f32 %v3695_v56, 0.0  ;;  %v374_v61 = vpop.f32.mrb[3].mxu0 }
  0xfd   : > { %v517_v62 = vmax.f32 %v3711_v58, 0.0  ;;  %v438_v63 = vpop.f32.mrb[3].mxu1  ;;  %v499_v47 = vmax.f32 %v374_v61, 0.0 }
  0xfe   : > { %v515_v1 = vmax.f32 %v438_v63, 0.0  ;;  %v3140_v2 = vpack.c.bf16 %v501_v60, %v500_v59 }
  0xff   : > { %v3180_v3 = vpack.c.bf16 %v517_v62, %v516_v54  ;;  %v3135_v4 = vpack.c.bf16 %v499_v47, %v498_v0 }
 0x100   : > { %v3175_v5 = vpack.c.bf16 %v515_v1, %v514_v57  ;;  %3492 = vst [vmem:[%s4327_s20 + $0x8] sm:$0xff] %v3140_v2  }
 0x101   : > { %3500 = vst [vmem:[%s4327_s20 + $0x48] sm:$0xff] %v3180_v3   ;;  %3136 = vst [vmem:[%s4327_s20] sm:$0xff] %v3135_v4   ;;  %v3698_v6 = vpop.f32.mrb[4].mxu0 }
 0x102   : > { %3499 = vst [vmem:[%s4327_s20 + $0x40] sm:$0xff] %v3175_v5   ;;  %v3714_v7 = vpop.f32.mrb[4].mxu1  ;;  %v387_v8 = vpop.f32.mrb[5].mxu0  ;;  %v504_v14 = vmax.f32 %v3698_v6, 0.0 }
 0x103   : > { %v520_v9 = vmax.f32 %v3714_v7, 0.0  ;;  %v451_v10 = vpop.f32.mrb[5].mxu1  ;;  %v3699_v11 = vpop.f32.mrb[6].mxu0  ;;  %v502_v19 = vmax.f32 %v387_v8, 0.0 }
 0x104   : > { %v518_v12 = vmax.f32 %v451_v10, 0.0  ;;  %v3715_v13 = vpop.f32.mrb[6].mxu1  ;;  %v505_v15 = vmax.f32 %v3699_v11, 0.0  ;;  %v390_v16 = vpop.f32.mrb[7].mxu0 }
 0x105   : > { %v521_v17 = vmax.f32 %v3715_v13, 0.0  ;;  %v454_v18 = vpop.f32.mrb[7].mxu1  ;;  %v503_v20 = vmax.f32 %v390_v16, 0.0 }
 0x106   : > { %v519_v21 = vmax.f32 %v454_v18, 0.0  ;;  %v3150_v22 = vpack.c.bf16 %v505_v15, %v504_v14 }
 0x107   : > { %v3190_v23 = vpack.c.bf16 %v521_v17, %v520_v9  ;;  %v3145_v24 = vpack.c.bf16 %v503_v20, %v502_v19 }
 0x108   : > { %v3185_v25 = vpack.c.bf16 %v519_v21, %v518_v12  ;;  %3494 = vst [vmem:[%s4327_s20 + $0x18] sm:$0xff] %v3150_v22  }
 0x109   : > { %3502 = vst [vmem:[%s4327_s20 + $0x58] sm:$0xff] %v3190_v23   ;;  %3493 = vst [vmem:[%s4327_s20 + $0x10] sm:$0xff] %v3145_v24   ;;  %v3702_v26 = vpop.f32.mrb[8].mxu0 }
 0x10a   : > { %3501 = vst [vmem:[%s4327_s20 + $0x50] sm:$0xff] %v3185_v25   ;;  %v3718_v27 = vpop.f32.mrb[8].mxu1  ;;  %v403_v28 = vpop.f32.mrb[9].mxu0  ;;  %v508_v34 = vmax.f32 %v3702_v26, 0.0 }
 0x10b   : > { %v524_v29 = vmax.f32 %v3718_v27, 0.0  ;;  %v467_v30 = vpop.f32.mrb[9].mxu1  ;;  %v3703_v31 = vpop.f32.mrb[10].mxu0  ;;  %v506_v39 = vmax.f32 %v403_v28, 0.0 }
 0x10c   : > { %v522_v32 = vmax.f32 %v467_v30, 0.0  ;;  %v3719_v33 = vpop.f32.mrb[10].mxu1  ;;  %v509_v35 = vmax.f32 %v3703_v31, 0.0  ;;  %v406_v36 = vpop.f32.mrb[11].mxu0 }
 0x10d   : > { %v525_v37 = vmax.f32 %v3719_v33, 0.0  ;;  %v470_v38 = vpop.f32.mrb[11].mxu1  ;;  %v507_v40 = vmax.f32 %v406_v36, 0.0 }
 0x10e   : > { %v523_v41 = vmax.f32 %v470_v38, 0.0  ;;  %v3160_v42 = vpack.c.bf16 %v509_v35, %v508_v34 }
 0x10f   : > { %v3200_v43 = vpack.c.bf16 %v525_v37, %v524_v29  ;;  %v3155_v44 = vpack.c.bf16 %v507_v40, %v506_v39 }
 0x110   : > { %v3195_v45 = vpack.c.bf16 %v523_v41, %v522_v32  ;;  %3496 = vst [vmem:[%s4327_s20 + $0x28] sm:$0xff] %v3160_v42  }
 0x111   : > { %3504 = vst [vmem:[%s4327_s20 + $0x68] sm:$0xff] %v3200_v43   ;;  %3495 = vst [vmem:[%s4327_s20 + $0x20] sm:$0xff] %v3155_v44   ;;  %v3706_v46 = vpop.f32.mrb[12].mxu0 }
 0x112   : > { %3503 = vst [vmem:[%s4327_s20 + $0x60] sm:$0xff] %v3195_v45   ;;  %v3722_v48 = vpop.f32.mrb[12].mxu1  ;;  %v419_v49 = vpop.f32.mrb[13].mxu0  ;;  %v512_v55 = vmax.f32 %v3706_v46, 0.0 }
 0x113   : > { %v528_v50 = vmax.f32 %v3722_v48, 0.0  ;;  %v483_v51 = vpop.f32.mrb[13].mxu1  ;;  %v3707_v52 = vpop.f32.mrb[14].mxu0  ;;  %v510_v60 = vmax.f32 %v419_v49, 0.0 }
 0x114   : > { %v526_v53 = vmax.f32 %v483_v51, 0.0  ;;  %v3723_v54 = vpop.f32.mrb[14].mxu1  ;;  %v513_v56 = vmax.f32 %v3707_v52, 0.0  ;;  %v422_v57 = vpop.f32.mrb[15].mxu0 }
 0x115   : > { %v529_v58 = vmax.f32 %v3723_v54, 0.0  ;;  %v486_v59 = vpop.f32.mrb[15].mxu1  ;;  %v511_v61 = vmax.f32 %v422_v57, 0.0 }
 0x116   : > { %v527_v62 = vmax.f32 %v486_v59, 0.0  ;;  %v3170_v63 = vpack.c.bf16 %v513_v56, %v512_v55 }
 0x117   : > { %v3210_v0 = vpack.c.bf16 %v529_v58, %v528_v50  ;;  %v3165_v47 = vpack.c.bf16 %v511_v61, %v510_v60 }
 0x118   : > { %v3205_v1 = vpack.c.bf16 %v527_v62, %v526_v53  ;;  %3498 = vst [vmem:[%s4327_s20 + $0x38] sm:$0xff] %v3170_v63  }
 0x119   : > { %3506 = vst [vmem:[%s4327_s20 + $0x78] sm:$0xff] %v3210_v0   ;;  %3497 = vst [vmem:[%s4327_s20 + $0x30] sm:$0xff] %v3165_v47   ;;  %v3790_v2 = vpop.f32.mrb[16].mxu0 }
 0x11a   : > { %3505 = vst [vmem:[%s4327_s20 + $0x70] sm:$0xff] %v3205_v1   ;;  %v3742_v3 = vpop.f32.mrb[16].mxu1  ;;  %v1461_v4 = vpop.f32.mrb[17].mxu0  ;;  %v1590_v10 = vmax.f32 %v3790_v2, 0.0 }
 0x11b   : > { %v1045_v5 = vmax.f32 %v3742_v3, 0.0  ;;  %v916_v6 = vpop.f32.mrb[17].mxu1  ;;  %v3791_v7 = vpop.f32.mrb[18].mxu0  ;;  %v1588_v15 = vmax.f32 %v1461_v4, 0.0 }
 0x11c   : > { %v1043_v8 = vmax.f32 %v916_v6, 0.0  ;;  %v3743_v9 = vpop.f32.mrb[18].mxu1  ;;  %v1591_v11 = vmax.f32 %v3791_v7, 0.0  ;;  %v1464_v12 = vpop.f32.mrb[19].mxu0 }
 0x11d   : > { %v1046_v13 = vmax.f32 %v3743_v9, 0.0  ;;  %v919_v14 = vpop.f32.mrb[19].mxu1  ;;  %v1589_v16 = vmax.f32 %v1464_v12, 0.0 }
 0x11e   : > { %v1044_v17 = vmax.f32 %v919_v14, 0.0  ;;  %v3300_v18 = vpack.c.bf16 %v1591_v11, %v1590_v10 }
 0x11f   : > { %v3220_v19 = vpack.c.bf16 %v1046_v13, %v1045_v5  ;;  %v3295_v20 = vpack.c.bf16 %v1589_v16, %v1588_v15 }
 0x120   : > { %v3215_v21 = vpack.c.bf16 %v1044_v17, %v1043_v8  ;;  %3524 = vst [vmem:[%s4327_s20 + $0x108] sm:$0xff] %v3300_v18  }
 0x121   : > { %3508 = vst [vmem:[%s4327_s20 + $0x88] sm:$0xff] %v3220_v19   ;;  %3523 = vst [vmem:[%s4327_s20 + $0x100] sm:$0xff] %v3295_v20   ;;  %v3794_v22 = vpop.f32.mrb[20].mxu0 }
 0x122   : > { %3507 = vst [vmem:[%s4327_s20 + $0x80] sm:$0xff] %v3215_v21   ;;  %v3746_v23 = vpop.f32.mrb[20].mxu1  ;;  %v1477_v24 = vpop.f32.mrb[21].mxu0  ;;  %v1594_v30 = vmax.f32 %v3794_v22, 0.0 }
 0x123   : > { %v1049_v25 = vmax.f32 %v3746_v23, 0.0  ;;  %v932_v26 = vpop.f32.mrb[21].mxu1  ;;  %v3795_v27 = vpop.f32.mrb[22].mxu0  ;;  %v1592_v35 = vmax.f32 %v1477_v24, 0.0 }
 0x124   : > { %v1047_v28 = vmax.f32 %v932_v26, 0.0  ;;  %v3747_v29 = vpop.f32.mrb[22].mxu1  ;;  %v1595_v31 = vmax.f32 %v3795_v27, 0.0  ;;  %v1480_v32 = vpop.f32.mrb[23].mxu0 }
 0x125   : > { %v1050_v33 = vmax.f32 %v3747_v29, 0.0  ;;  %v935_v34 = vpop.f32.mrb[23].mxu1  ;;  %v1593_v36 = vmax.f32 %v1480_v32, 0.0 }
 0x126   : > { %v1048_v37 = vmax.f32 %v935_v34, 0.0  ;;  %v3310_v38 = vpack.c.bf16 %v1595_v31, %v1594_v30 }
 0x127   : > { %v3230_v39 = vpack.c.bf16 %v1050_v33, %v1049_v25  ;;  %v3305_v40 = vpack.c.bf16 %v1593_v36, %v1592_v35 }
 0x128   : > { %v3225_v41 = vpack.c.bf16 %v1048_v37, %v1047_v28  ;;  %3526 = vst [vmem:[%s4327_s20 + $0x118] sm:$0xff] %v3310_v38  }
 0x129   : > { %3510 = vst [vmem:[%s4327_s20 + $0x98] sm:$0xff] %v3230_v39   ;;  %3525 = vst [vmem:[%s4327_s20 + $0x110] sm:$0xff] %v3305_v40   ;;  %v3798_v42 = vpop.f32.mrb[24].mxu0 }
 0x12a   : > { %3509 = vst [vmem:[%s4327_s20 + $0x90] sm:$0xff] %v3225_v41   ;;  %v3750_v43 = vpop.f32.mrb[24].mxu1  ;;  %v1493_v44 = vpop.f32.mrb[25].mxu0  ;;  %v1598_v51 = vmax.f32 %v3798_v42, 0.0 }
 0x12b   : > { %v1053_v45 = vmax.f32 %v3750_v43, 0.0  ;;  %v948_v46 = vpop.f32.mrb[25].mxu1  ;;  %v3799_v48 = vpop.f32.mrb[26].mxu0  ;;  %v1596_v56 = vmax.f32 %v1493_v44, 0.0 }
 0x12c   : > { %v1051_v49 = vmax.f32 %v948_v46, 0.0  ;;  %v3751_v50 = vpop.f32.mrb[26].mxu1  ;;  %v1599_v52 = vmax.f32 %v3799_v48, 0.0  ;;  %v1496_v53 = vpop.f32.mrb[27].mxu0 }
 0x12d   : > { %v1054_v54 = vmax.f32 %v3751_v50, 0.0  ;;  %v951_v55 = vpop.f32.mrb[27].mxu1  ;;  %v1597_v57 = vmax.f32 %v1496_v53, 0.0 }
 0x12e   : > { %v1052_v58 = vmax.f32 %v951_v55, 0.0  ;;  %v3320_v59 = vpack.c.bf16 %v1599_v52, %v1598_v51 }
 0x12f   : > { %v3240_v60 = vpack.c.bf16 %v1054_v54, %v1053_v45  ;;  %v3315_v61 = vpack.c.bf16 %v1597_v57, %v1596_v56 }
 0x130   : > { %v3235_v62 = vpack.c.bf16 %v1052_v58, %v1051_v49  ;;  %3528 = vst [vmem:[%s4327_s20 + $0x128] sm:$0xff] %v3320_v59  }
 0x131   : > { %3512 = vst [vmem:[%s4327_s20 + $0xa8] sm:$0xff] %v3240_v60   ;;  %3527 = vst [vmem:[%s4327_s20 + $0x120] sm:$0xff] %v3315_v61   ;;  %v3802_v63 = vpop.f32.mrb[28].mxu0 }
 0x132   : > { %3511 = vst [vmem:[%s4327_s20 + $0xa0] sm:$0xff] %v3235_v62   ;;  %v3754_v0 = vpop.f32.mrb[28].mxu1  ;;  %v1509_v47 = vpop.f32.mrb[29].mxu0  ;;  %v1602_v6 = vmax.f32 %v3802_v63, 0.0 }
 0x133   : > { %v1057_v1 = vmax.f32 %v3754_v0, 0.0  ;;  %v964_v2 = vpop.f32.mrb[29].mxu1  ;;  %v3803_v3 = vpop.f32.mrb[30].mxu0  ;;  %v1600_v11 = vmax.f32 %v1509_v47, 0.0 }
 0x134   : > { %v1055_v4 = vmax.f32 %v964_v2, 0.0  ;;  %v3755_v5 = vpop.f32.mrb[30].mxu1  ;;  %v1603_v7 = vmax.f32 %v3803_v3, 0.0  ;;  %v1512_v8 = vpop.f32.mrb[31].mxu0 }
 0x135   : > { %v1058_v9 = vmax.f32 %v3755_v5, 0.0  ;;  %v967_v10 = vpop.f32.mrb[31].mxu1  ;;  %v1601_v12 = vmax.f32 %v1512_v8, 0.0 }
 0x136   : > { %v1056_v13 = vmax.f32 %v967_v10, 0.0  ;;  %v3330_v14 = vpack.c.bf16 %v1603_v7, %v1602_v6 }
 0x137   : > { %v3250_v15 = vpack.c.bf16 %v1058_v9, %v1057_v1  ;;  %v3325_v16 = vpack.c.bf16 %v1601_v12, %v1600_v11 }
 0x138   : > { %v3245_v17 = vpack.c.bf16 %v1056_v13, %v1055_v4  ;;  %3530 = vst [vmem:[%s4327_s20 + $0x138] sm:$0xff] %v3330_v14  }
 0x139   : > { %3514 = vst [vmem:[%s4327_s20 + $0xb8] sm:$0xff] %v3250_v15   ;;  %3529 = vst [vmem:[%s4327_s20 + $0x130] sm:$0xff] %v3325_v16   ;;  %v3806_v18 = vpop.f32.mrb[32].mxu0 }
 0x13a   : > { %3513 = vst [vmem:[%s4327_s20 + $0xb0] sm:$0xff] %v3245_v17   ;;  %v3758_v19 = vpop.f32.mrb[32].mxu1  ;;  %v1525_v20 = vpop.f32.mrb[33].mxu0  ;;  %v1606_v26 = vmax.f32 %v3806_v18, 0.0 }
 0x13b   : > { %v1061_v21 = vmax.f32 %v3758_v19, 0.0  ;;  %v980_v22 = vpop.f32.mrb[33].mxu1  ;;  %v3807_v23 = vpop.f32.mrb[34].mxu0  ;;  %v1604_v31 = vmax.f32 %v1525_v20, 0.0 }
 0x13c   : > { %v1059_v24 = vmax.f32 %v980_v22, 0.0  ;;  %v3759_v25 = vpop.f32.mrb[34].mxu1  ;;  %v1607_v27 = vmax.f32 %v3807_v23, 0.0  ;;  %v1528_v28 = vpop.f32.mrb[35].mxu0 }
 0x13d   : > { %v1062_v29 = vmax.f32 %v3759_v25, 0.0  ;;  %v983_v30 = vpop.f32.mrb[35].mxu1  ;;  %v1605_v32 = vmax.f32 %v1528_v28, 0.0 }
 0x13e   : > { %v1060_v33 = vmax.f32 %v983_v30, 0.0  ;;  %v3340_v34 = vpack.c.bf16 %v1607_v27, %v1606_v26 }
 0x13f   : > { %v3260_v35 = vpack.c.bf16 %v1062_v29, %v1061_v21  ;;  %v3335_v36 = vpack.c.bf16 %v1605_v32, %v1604_v31 }
 0x140   : > { %v3255_v37 = vpack.c.bf16 %v1060_v33, %v1059_v24  ;;  %3532 = vst [vmem:[%s4327_s20 + $0x148] sm:$0xff] %v3340_v34  }
 0x141   : > { %3516 = vst [vmem:[%s4327_s20 + $0xc8] sm:$0xff] %v3260_v35   ;;  %3531 = vst [vmem:[%s4327_s20 + $0x140] sm:$0xff] %v3335_v36   ;;  %v3810_v38 = vpop.f32.mrb[36].mxu0 }
 0x142   : > { %3515 = vst [vmem:[%s4327_s20 + $0xc0] sm:$0xff] %v3255_v37   ;;  %v3762_v39 = vpop.f32.mrb[36].mxu1  ;;  %v1541_v40 = vpop.f32.mrb[37].mxu0  ;;  %v1610_v46 = vmax.f32 %v3810_v38, 0.0 }
 0x143   : > { %v1065_v41 = vmax.f32 %v3762_v39, 0.0  ;;  %v996_v42 = vpop.f32.mrb[37].mxu1  ;;  %v3811_v43 = vpop.f32.mrb[38].mxu0  ;;  %v1608_v52 = vmax.f32 %v1541_v40, 0.0 }
 0x144   : > { %v1063_v44 = vmax.f32 %v996_v42, 0.0  ;;  %v3763_v45 = vpop.f32.mrb[38].mxu1  ;;  %v1611_v48 = vmax.f32 %v3811_v43, 0.0  ;;  %v1544_v49 = vpop.f32.mrb[39].mxu0 }
 0x145   : > { %v1066_v50 = vmax.f32 %v3763_v45, 0.0  ;;  %v999_v51 = vpop.f32.mrb[39].mxu1  ;;  %v1609_v53 = vmax.f32 %v1544_v49, 0.0 }
 0x146   : > { %v1064_v54 = vmax.f32 %v999_v51, 0.0  ;;  %v3350_v55 = vpack.c.bf16 %v1611_v48, %v1610_v46 }
 0x147   : > { %v3270_v56 = vpack.c.bf16 %v1066_v50, %v1065_v41  ;;  %v3345_v57 = vpack.c.bf16 %v1609_v53, %v1608_v52 }
 0x148   : > { %v3265_v58 = vpack.c.bf16 %v1064_v54, %v1063_v44  ;;  %3534 = vst [vmem:[%s4327_s20 + $0x158] sm:$0xff] %v3350_v55  }
 0x149   : > { %3518 = vst [vmem:[%s4327_s20 + $0xd8] sm:$0xff] %v3270_v56   ;;  %3533 = vst [vmem:[%s4327_s20 + $0x150] sm:$0xff] %v3345_v57   ;;  %v3814_v59 = vpop.f32.mrb[40].mxu0 }
 0x14a   : > { %3517 = vst [vmem:[%s4327_s20 + $0xd0] sm:$0xff] %v3265_v58   ;;  %v3766_v60 = vpop.f32.mrb[40].mxu1  ;;  %v1557_v61 = vpop.f32.mrb[41].mxu0  ;;  %v1614_v2 = vmax.f32 %v3814_v59, 0.0 }
 0x14b   : > { %v1069_v62 = vmax.f32 %v3766_v60, 0.0  ;;  %v1012_v63 = vpop.f32.mrb[41].mxu1  ;;  %v3815_v0 = vpop.f32.mrb[42].mxu0  ;;  %v1612_v7 = vmax.f32 %v1557_v61, 0.0 }
 0x14c   : > { %v1067_v47 = vmax.f32 %v1012_v63, 0.0  ;;  %v3767_v1 = vpop.f32.mrb[42].mxu1  ;;  %v1615_v3 = vmax.f32 %v3815_v0, 0.0  ;;  %v1560_v4 = vpop.f32.mrb[43].mxu0 }
 0x14d   : > { %v1070_v5 = vmax.f32 %v3767_v1, 0.0  ;;  %v1015_v6 = vpop.f32.mrb[43].mxu1  ;;  %v1613_v8 = vmax.f32 %v1560_v4, 0.0 }
 0x14e   : > { %v1068_v9 = vmax.f32 %v1015_v6, 0.0  ;;  %v3360_v10 = vpack.c.bf16 %v1615_v3, %v1614_v2 }
 0x14f   : > { %v3280_v11 = vpack.c.bf16 %v1070_v5, %v1069_v62  ;;  %v3355_v12 = vpack.c.bf16 %v1613_v8, %v1612_v7 }
 0x150   : > { %v3275_v13 = vpack.c.bf16 %v1068_v9, %v1067_v47  ;;  %3536 = vst [vmem:[%s4327_s20 + $0x168] sm:$0xff] %v3360_v10  }
 0x151   : > { %3520 = vst [vmem:[%s4327_s20 + $0xe8] sm:$0xff] %v3280_v11   ;;  %3535 = vst [vmem:[%s4327_s20 + $0x160] sm:$0xff] %v3355_v12   ;;  %v3818_v14 = vpop.f32.mrb[44].mxu0 }
 0x152   : > { %3519 = vst [vmem:[%s4327_s20 + $0xe0] sm:$0xff] %v3275_v13   ;;  %v3770_v15 = vpop.f32.mrb[44].mxu1  ;;  %v1573_v16 = vpop.f32.mrb[45].mxu0  ;;  %v1618_v22 = vmax.f32 %v3818_v14, 0.0 }
 0x153   : > { %v1073_v17 = vmax.f32 %v3770_v15, 0.0  ;;  %v1028_v18 = vpop.f32.mrb[45].mxu1  ;;  %v3819_v19 = vpop.f32.mrb[46].mxu0  ;;  %v1616_v27 = vmax.f32 %v1573_v16, 0.0 }
 0x154   : > { %v1071_v20 = vmax.f32 %v1028_v18, 0.0  ;;  %v3771_v21 = vpop.f32.mrb[46].mxu1  ;;  %v1619_v23 = vmax.f32 %v3819_v19, 0.0  ;;  %v1576_v24 = vpop.f32.mrb[47].mxu0 }
 0x155   : > { %v1074_v25 = vmax.f32 %v3771_v21, 0.0  ;;  %v1031_v26 = vpop.f32.mrb[47].mxu1  ;;  %v1617_v28 = vmax.f32 %v1576_v24, 0.0 }
 0x156   : > { %v1072_v29 = vmax.f32 %v1031_v26, 0.0  ;;  %v3370_v30 = vpack.c.bf16 %v1619_v23, %v1618_v22 }
 0x157   : > { %v3290_v31 = vpack.c.bf16 %v1074_v25, %v1073_v17  ;;  %v3365_v32 = vpack.c.bf16 %v1617_v28, %v1616_v27 }
 0x158   : > { %v3285_v33 = vpack.c.bf16 %v1072_v29, %v1071_v20  ;;  %3538 = vst [vmem:[%s4327_s20 + $0x178] sm:$0xff] %v3370_v30  }
 0x159   : > { %3522 = vst [vmem:[%s4327_s20 + $0xf8] sm:$0xff] %v3290_v31   ;;  %3537 = vst [vmem:[%s4327_s20 + $0x170] sm:$0xff] %v3365_v32   ;;  %v2492_v34 = vpop.f32.mrb[48].mxu0 }
 0x15a   : > { %3521 = vst [vmem:[%s4327_s20 + $0xf0] sm:$0xff] %v3285_v33   ;;  %v3838_v35 = vpop.f32.mrb[48].mxu1  ;;  %v3886_v36 = vpop.f32.mrb[49].mxu0  ;;  %v2562_v42 = vmax.f32 %v2492_v34, 0.0 }
 0x15b   : > { %v2135_v37 = vmax.f32 %v3838_v35, 0.0  ;;  %v2006_v38 = vpop.f32.mrb[49].mxu1  ;;  %v2495_v39 = vpop.f32.mrb[50].mxu0 }
 0x15c   : > { %v2133_v40 = vmax.f32 %v2006_v38, 0.0  ;;  %v3839_v41 = vpop.f32.mrb[50].mxu1  ;;  %v2563_v43 = vmax.f32 %v2495_v39, 0.0  ;;  %v3887_v44 = vpop.f32.mrb[51].mxu0 }
 0x15d   : > { %v2136_v45 = vmax.f32 %v3839_v41, 0.0  ;;  %v2009_v46 = vpop.f32.mrb[51].mxu1 }
 0x15e   : > { %v2134_v48 = vmax.f32 %v2009_v46, 0.0  ;;  %v3455_v49 = vpack.c.bf16 %v2563_v43, %v2562_v42 }
 0x15f   : > { %v3380_v50 = vpack.c.bf16 %v2136_v45, %v2135_v37 }
 0x160   : > { %v3375_v51 = vpack.c.bf16 %v2134_v48, %v2133_v40  ;;  %3555 = vst [vmem:[%s4327_s20 + $0x200] sm:$0xff] %v3455_v49  }
 0x161   : > { %3540 = vst [vmem:[%s4327_s20 + $0x188] sm:$0xff] %v3380_v50   ;;  %v2500_v52 = vpop.f32.mrb[52].mxu0 }
 0x162   : > { %3539 = vst [vmem:[%s4327_s20 + $0x180] sm:$0xff] %v3375_v51   ;;  %v3842_v53 = vpop.f32.mrb[52].mxu1  ;;  %v3890_v54 = vpop.f32.mrb[53].mxu0  ;;  %v2564_v60 = vmax.f32 %v2500_v52, 0.0 }
 0x163   : > { %v2139_v55 = vmax.f32 %v3842_v53, 0.0  ;;  %v2022_v56 = vpop.f32.mrb[53].mxu1  ;;  %v2503_v57 = vpop.f32.mrb[54].mxu0 }
 0x164   : > { %v2137_v58 = vmax.f32 %v2022_v56, 0.0  ;;  %v3843_v59 = vpop.f32.mrb[54].mxu1  ;;  %v2565_v61 = vmax.f32 %v2503_v57, 0.0  ;;  %v3891_v62 = vpop.f32.mrb[55].mxu0 }
 0x165   : > { %v2140_v63 = vmax.f32 %v3843_v59, 0.0  ;;  %v2025_v0 = vpop.f32.mrb[55].mxu1 }
 0x166   : > { %v2138_v47 = vmax.f32 %v2025_v0, 0.0  ;;  %v3460_v1 = vpack.c.bf16 %v2565_v61, %v2564_v60 }
 0x167   : > { %v3390_v2 = vpack.c.bf16 %v2140_v63, %v2139_v55 }
 0x168   : > { %v3385_v3 = vpack.c.bf16 %v2138_v47, %v2137_v58  ;;  %3556 = vst [vmem:[%s4327_s20 + $0x208] sm:$0xff] %v3460_v1  }
 0x169   : > { %3542 = vst [vmem:[%s4327_s20 + $0x198] sm:$0xff] %v3390_v2   ;;  %v2508_v4 = vpop.f32.mrb[56].mxu0 }
 0x16a   : > { %3541 = vst [vmem:[%s4327_s20 + $0x190] sm:$0xff] %v3385_v3   ;;  %v3846_v5 = vpop.f32.mrb[56].mxu1  ;;  %v3894_v6 = vpop.f32.mrb[57].mxu0  ;;  %v2566_v12 = vmax.f32 %v2508_v4, 0.0 }
 0x16b   : > { %v2143_v7 = vmax.f32 %v3846_v5, 0.0  ;;  %v2038_v8 = vpop.f32.mrb[57].mxu1  ;;  %v2511_v9 = vpop.f32.mrb[58].mxu0 }
 0x16c   : > { %v2141_v10 = vmax.f32 %v2038_v8, 0.0  ;;  %v3847_v11 = vpop.f32.mrb[58].mxu1  ;;  %v2567_v13 = vmax.f32 %v2511_v9, 0.0  ;;  %v3895_v14 = vpop.f32.mrb[59].mxu0 }
 0x16d   : > { %v2144_v15 = vmax.f32 %v3847_v11, 0.0  ;;  %v2041_v16 = vpop.f32.mrb[59].mxu1 }
 0x16e   : > { %v2142_v17 = vmax.f32 %v2041_v16, 0.0  ;;  %v3465_v18 = vpack.c.bf16 %v2567_v13, %v2566_v12 }
 0x16f   : > { %v3400_v19 = vpack.c.bf16 %v2144_v15, %v2143_v7 }
 0x170   : > { %v3395_v20 = vpack.c.bf16 %v2142_v17, %v2141_v10  ;;  %3557 = vst [vmem:[%s4327_s20 + $0x210] sm:$0xff] %v3465_v18  }
 0x171   : > { %3544 = vst [vmem:[%s4327_s20 + $0x1a8] sm:$0xff] %v3400_v19   ;;  %v2516_v21 = vpop.f32.mrb[60].mxu0 }
 0x172   : > { %3543 = vst [vmem:[%s4327_s20 + $0x1a0] sm:$0xff] %v3395_v20   ;;  %v3850_v22 = vpop.f32.mrb[60].mxu1  ;;  %v3898_v23 = vpop.f32.mrb[61].mxu0  ;;  %v2568_v29 = vmax.f32 %v2516_v21, 0.0 }
 0x173   : > { %v2147_v24 = vmax.f32 %v3850_v22, 0.0  ;;  %v2054_v25 = vpop.f32.mrb[61].mxu1  ;;  %v2519_v26 = vpop.f32.mrb[62].mxu0 }
 0x174   : > { %v2145_v27 = vmax.f32 %v2054_v25, 0.0  ;;  %v3851_v28 = vpop.f32.mrb[62].mxu1  ;;  %v2569_v30 = vmax.f32 %v2519_v26, 0.0  ;;  %v3899_v31 = vpop.f32.mrb[63].mxu0 }
 0x175   : > { %v2148_v32 = vmax.f32 %v3851_v28, 0.0  ;;  %v2057_v33 = vpop.f32.mrb[63].mxu1 }
 0x176   : > { %v2146_v34 = vmax.f32 %v2057_v33, 0.0  ;;  %v3470_v35 = vpack.c.bf16 %v2569_v30, %v2568_v29 }
 0x177   : > { %v3410_v36 = vpack.c.bf16 %v2148_v32, %v2147_v24 }
 0x178   : > { %v3405_v37 = vpack.c.bf16 %v2146_v34, %v2145_v27  ;;  %3558 = vst [vmem:[%s4327_s20 + $0x218] sm:$0xff] %v3470_v35  }
 0x179   : > { %3546 = vst [vmem:[%s4327_s20 + $0x1b8] sm:$0xff] %v3410_v36   ;;  %v2524_v38 = vpop.f32.mrb[64].mxu0 }
 0x17a   : > { %3545 = vst [vmem:[%s4327_s20 + $0x1b0] sm:$0xff] %v3405_v37   ;;  %v3854_v39 = vpop.f32.mrb[64].mxu1  ;;  %v3902_v40 = vpop.f32.mrb[65].mxu0  ;;  %v2570_v46 = vmax.f32 %v2524_v38, 0.0 }
 0x17b   : > { %v2151_v41 = vmax.f32 %v3854_v39, 0.0  ;;  %v2070_v42 = vpop.f32.mrb[65].mxu1  ;;  %v2527_v43 = vpop.f32.mrb[66].mxu0 }
 0x17c   : > { %v2149_v44 = vmax.f32 %v2070_v42, 0.0  ;;  %v3855_v45 = vpop.f32.mrb[66].mxu1  ;;  %v2571_v48 = vmax.f32 %v2527_v43, 0.0  ;;  %v3903_v49 = vpop.f32.mrb[67].mxu0 }
 0x17d   : > { %v2152_v50 = vmax.f32 %v3855_v45, 0.0  ;;  %v2073_v51 = vpop.f32.mrb[67].mxu1 }
 0x17e   : > { %v2150_v52 = vmax.f32 %v2073_v51, 0.0  ;;  %v3475_v53 = vpack.c.bf16 %v2571_v48, %v2570_v46 }
 0x17f   : > { %v3420_v54 = vpack.c.bf16 %v2152_v50, %v2151_v41 }
 0x180   : > { %v3415_v55 = vpack.c.bf16 %v2150_v52, %v2149_v44  ;;  %3559 = vst [vmem:[%s4327_s20 + $0x220] sm:$0xff] %v3475_v53  }
 0x181   : > { %3548 = vst [vmem:[%s4327_s20 + $0x1c8] sm:$0xff] %v3420_v54   ;;  %v2532_v56 = vpop.f32.mrb[68].mxu0 }
 0x182   : > { %3547 = vst [vmem:[%s4327_s20 + $0x1c0] sm:$0xff] %v3415_v55   ;;  %v3858_v57 = vpop.f32.mrb[68].mxu1  ;;  %v3906_v58 = vpop.f32.mrb[69].mxu0  ;;  %v2572_v0 = vmax.f32 %v2532_v56, 0.0 }
 0x183   : > { %v2155_v59 = vmax.f32 %v3858_v57, 0.0  ;;  %v2086_v60 = vpop.f32.mrb[69].mxu1  ;;  %v2535_v61 = vpop.f32.mrb[70].mxu0 }
 0x184   : > { %v2153_v62 = vmax.f32 %v2086_v60, 0.0  ;;  %v3859_v63 = vpop.f32.mrb[70].mxu1  ;;  %v2573_v47 = vmax.f32 %v2535_v61, 0.0  ;;  %v3907_v1 = vpop.f32.mrb[71].mxu0 }
 0x185   : > { %v2156_v2 = vmax.f32 %v3859_v63, 0.0  ;;  %v2089_v3 = vpop.f32.mrb[71].mxu1 }
 0x186   : > { %v2154_v4 = vmax.f32 %v2089_v3, 0.0  ;;  %v3480_v5 = vpack.c.bf16 %v2573_v47, %v2572_v0 }
 0x187   : > { %v3430_v6 = vpack.c.bf16 %v2156_v2, %v2155_v59 }
 0x188   : > { %v3425_v7 = vpack.c.bf16 %v2154_v4, %v2153_v62  ;;  %3560 = vst [vmem:[%s4327_s20 + $0x228] sm:$0xff] %v3480_v5  }
 0x189   : > { %3550 = vst [vmem:[%s4327_s20 + $0x1d8] sm:$0xff] %v3430_v6   ;;  %v2540_v8 = vpop.f32.mrb[72].mxu0 }
 0x18a   : > { %3549 = vst [vmem:[%s4327_s20 + $0x1d0] sm:$0xff] %v3425_v7   ;;  %v3862_v9 = vpop.f32.mrb[72].mxu1  ;;  %v3910_v10 = vpop.f32.mrb[73].mxu0  ;;  %v2574_v16 = vmax.f32 %v2540_v8, 0.0 }
 0x18b   : > { %v2159_v11 = vmax.f32 %v3862_v9, 0.0  ;;  %v2102_v12 = vpop.f32.mrb[73].mxu1  ;;  %v2543_v13 = vpop.f32.mrb[74].mxu0 }
 0x18c   : > { %v2157_v14 = vmax.f32 %v2102_v12, 0.0  ;;  %v3863_v15 = vpop.f32.mrb[74].mxu1  ;;  %v2575_v17 = vmax.f32 %v2543_v13, 0.0  ;;  %v3911_v18 = vpop.f32.mrb[75].mxu0 }
 0x18d   : > { %v2160_v19 = vmax.f32 %v3863_v15, 0.0  ;;  %v2105_v20 = vpop.f32.mrb[75].mxu1 }
 0x18e   : > { %v2158_v21 = vmax.f32 %v2105_v20, 0.0  ;;  %v3485_v22 = vpack.c.bf16 %v2575_v17, %v2574_v16 }
 0x18f   : > { %v3440_v23 = vpack.c.bf16 %v2160_v19, %v2159_v11 }
 0x190   : > { %v3435_v24 = vpack.c.bf16 %v2158_v21, %v2157_v14  ;;  %3561 = vst [vmem:[%s4327_s20 + $0x230] sm:$0xff] %v3485_v22  }
 0x191   : > { %3552 = vst [vmem:[%s4327_s20 + $0x1e8] sm:$0xff] %v3440_v23   ;;  %v2548_v25 = vpop.f32.mrb[76].mxu0 }
 0x192   : > { %3551 = vst [vmem:[%s4327_s20 + $0x1e0] sm:$0xff] %v3435_v24   ;;  %v3866_v26 = vpop.f32.mrb[76].mxu1  ;;  %v3914_v27 = vpop.f32.mrb[77].mxu0  ;;  %v2576_v33 = vmax.f32 %v2548_v25, 0.0 }
 0x193   : > { %v2163_v28 = vmax.f32 %v3866_v26, 0.0  ;;  %v2118_v29 = vpop.f32.mrb[77].mxu1  ;;  %v2551_v30 = vpop.f32.mrb[78].mxu0 }
 0x194   : > { %v2161_v31 = vmax.f32 %v2118_v29, 0.0  ;;  %v3867_v32 = vpop.f32.mrb[78].mxu1  ;;  %v2577_v34 = vmax.f32 %v2551_v30, 0.0  ;;  %v3915_v35 = vpop.f32.mrb[79].mxu0 }
 0x195   : > { %v2164_v36 = vmax.f32 %v3867_v32, 0.0  ;;  %v2121_v37 = vpop.f32.mrb[79].mxu1 }
 0x196   : > { %v2162_v38 = vmax.f32 %v2121_v37, 0.0  ;;  %v3490_v39 = vpack.c.bf16 %v2577_v34, %v2576_v33 }
 0x197   : > { %v3450_v40 = vpack.c.bf16 %v2164_v36, %v2163_v28 }
 0x198   : > { %v3445_v41 = vpack.c.bf16 %v2162_v38, %v2161_v31  ;;  %3562 = vst [vmem:[%s4327_s20 + $0x238] sm:$0xff] %v3490_v39  }
 0x199   : > { %3554 = vst [vmem:[%s4327_s20 + $0x1f8] sm:$0xff] %v3450_v40   ;;  %v2556_v42 = vpop.f32.mrb[80].mxu0 }
 0x19a   : > { %3553 = vst [vmem:[%s4327_s20 + $0x1f0] sm:$0xff] %v3445_v41   ;;  %v2578_v43 = vmax.f32 %v2556_v42, 0.0  ;;  %v3918_v44 = vpop.f32.mrb[81].mxu0 }
 0x19b   : > { %v2559_v45 = vpop.f32.mrb[82].mxu0 }
 0x19c   : > { %v3131_v46 = vpack.c.bf16 %v2578_v43, %v2578_v43  ;;  %v3919_v48 = vpop.f32.mrb[83].mxu0 }
 0x19e   : > { %2664 = vst [vmem:[%s4327_s20 + $0x240] sm:$0x3] %v3131_v46 }
 0x19f PF: > { %s12_s9 = sadd.s32 1, %s4066_s9  }
 0x1a0   : > { %p9_p4 = scmp.ge.s32.totalorder %s12_s9, 4  }
 0x1a2   :  { %11 = sbr.rel (!%p9_p4) target bundleno = 1 (0x1), region = 58 }

// kernel: resnet_forward.10
= control target key start
LH: loop header
LB: loop body
LE: loop exit
PB: predicated region body
PF: predicated region fallthrough
CT: control target
= control target key end

     0   :  { %s4799_s12 = smov 0   ;;  %s5195_s0 = inlined_call_operand.vmem [shape: bf16[2,1156,128], index: 0, kind: input, shape index: {}]   ;;  %s5196_s1 = inlined_call_operand.vmem [shape: bf16[128,128], index: 1, kind: input, shape index: {}]   ;;  %s5197_s2 = inlined_call_operand.vmem [shape: bf16[2,1156,128], index: 2, kind: input, shape index: {}]   ;;  %s5198_s3 = inlined_call_operand.vmem [shape: bf16[2,1156,128], index: 3, kind: output, shape index: {}]  }
   0x1 LB: > { %s3069_s13 = sadd.s32 4294967295, %s4775_s12   ;;  %p3073_p0 = scmp.ge.s32.totalorder %s4775_s12, 1  ;;  %s4775_s12 = sphi %s4799_s12, %s13_s12  }
   0x2   : > { %p147_p1 = scmp.lt.s32.totalorder %s4775_s12, 3 }
   0x4   : > { %p148_p2 = pnand %p3073_p0, %p147_p1 }
   0x5   : > { %v4656_v0 = vld [vmem:[%s5196_s1] sm:$0xff] (!%p148_p2)   ;;  %p176_p3 = scmp.lt.s32.totalorder (!%p148_p2), %s3069_s13, 1  ;;  %v4657_v1 = vld [vmem:[%s5196_s1 + $0x8] sm:$0xff] (!%p148_p2)   ;;  %v4658_v2 = vld [vmem:[%s5196_s1 + $0x10] sm:$0xff] (!%p148_p2)   ;;  %v4777_v47 = vmov (!%p148_p2), 0.0   ;;  %vm4778_vm0 = vmmov (!%p148_p2), 0  }
   0x6   : > { %151 = sbr.rel (%p148_p2) target bundleno = 417 (0x1a1), region = 32  ;;  %4385 = vmatprep.subr.bf16.mxu0 (!%p148_p2), %v4656_v0  ;;  %4629 = vmatprep.subr.bf16.mxu1 (!%p148_p2), %v4656_v0  ;;  %v4659_v3 = vld [vmem:[%s5196_s1 + $0x18] sm:$0xff] (!%p148_p2)   ;;  %v4660_v6 = vld [vmem:[%s5196_s1 + $0x20] sm:$0xff] (!%p148_p2)   ;;  %v4661_v7 = vld [vmem:[%s5196_s1 + $0x28] sm:$0xff] (!%p148_p2)  }
   0x7   : > { %4386 = vmatpush3.bf16.msra.mxu0 (!%p148_p2), %v4656_v0  ;;  %4637 = vmatpush3.bf16.msra.mxu1 (!%p148_p2), %v4656_v0  ;;  %v4662_v8 = vld [vmem:[%s5196_s1 + $0x30] sm:$0xff] (!%p148_p2)   ;;  %v4663_v9 = vld [vmem:[%s5196_s1 + $0x38] sm:$0xff] (!%p148_p2)   ;;  %v4666_v10 = vld [vmem:[%s5196_s1] sm:$0xff] (!%p148_p2)  }
   0x8   : > { %4387 = vmatprep.subr.bf16.mxu0 (!%p148_p2), %v4657_v1  ;;  %4630 = vmatprep.subr.bf16.mxu1 (!%p148_p2), %v4657_v1  ;;  %v4669_v12 = vld [vmem:[%s5196_s1] sm:$0xff] (!%p148_p2)   ;;  %v4670_v14 = vld [vmem:[%s5196_s1 + $0x8] sm:$0xff] (!%p148_p2)   ;;  %v4674_v18 = vld [vmem:[%s5196_s1 + $0x10] sm:$0xff] (!%p148_p2)  }
   0x9   : > { %v4672_v16 = vld [vmem:[%s5196_s1 + $0x8] sm:$0xff] (!%p148_p2)   ;;  %v4677_v20 = vld [vmem:[%s5196_s1 + $0x10] sm:$0xff] (!%p148_p2)   ;;  %v4678_v22 = vld [vmem:[%s5196_s1 + $0x18] sm:$0xff] (!%p148_p2)  }
   0xa   : > { %v4680_v24 = vld [vmem:[%s5196_s1 + $0x18] sm:$0xff] (!%p148_p2)   ;;  %v4682_v26 = vld [vmem:[%s5196_s1 + $0x20] sm:$0xff] (!%p148_p2)   ;;  %v4686_v30 = vld [vmem:[%s5196_s1 + $0x28] sm:$0xff] (!%p148_p2)  }
   0xb   : > { %4388 = vmatpush3.bf16.msra.mxu0 (!%p148_p2), %v4657_v1  ;;  %4638 = vmatpush3.bf16.msra.mxu1 (!%p148_p2), %v4657_v1  ;;  %v4685_v28 = vld [vmem:[%s5196_s1 + $0x20] sm:$0xff] (!%p148_p2)   ;;  %v4688_v32 = vld [vmem:[%s5196_s1 + $0x28] sm:$0xff] (!%p148_p2)   ;;  %v4690_v34 = vld [vmem:[%s5196_s1 + $0x30] sm:$0xff] (!%p148_p2)  }
   0xc   : > { %4389 = vmatprep.subr.bf16.mxu0 (!%p148_p2), %v4658_v2  ;;  %4631 = vmatprep.subr.bf16.mxu1 (!%p148_p2), %v4658_v2  ;;  %v4693_v36 = vld [vmem:[%s5196_s1 + $0x30] sm:$0xff] (!%p148_p2)   ;;  %v4694_v38 = vld [vmem:[%s5196_s1 + $0x38] sm:$0xff] (!%p148_p2)   ;;  %v4701_v43 = vld [vmem:[%s5196_s1] sm:$0xff] (!%p148_p2)  }
   0xd   : > { %s5200_s13 = smov (!%p176_p3, %s3069_s13), 1  ;;  %v4695_v39 = vld [vmem:[%s5196_s1 + $0x38] sm:$0xff]   ;;  %v4698_v44 = vld [vmem:[%s5196_s1] sm:$0xff]   ;;  %v4707_v49 = vld [vmem:[%s5196_s1 + $0x8] sm:$0xff]  }
   0xe   : > { %s4816_s20 = smul.u32 580, %s5200_s13  ;;  %v4704_v50 = vld [vmem:[%s5196_s1 + $0x8] sm:$0xff]   ;;  %v4713_v52 = vld [vmem:[%s5196_s1 + $0x10] sm:$0xff]   ;;  %v4719_v57 = vld [vmem:[%s5196_s1 + $0x18] sm:$0xff]  }
   0xf   : > { %4390 = vmatpush3.bf16.msra.mxu0 %v4658_v2  ;;  %4639 = vmatpush3.bf16.msra.mxu1 %v4658_v2  ;;  %v4710_v55 = vld [vmem:[%s5196_s1 + $0x10] sm:$0xff]   ;;  %v4716_v58 = vld [vmem:[%s5196_s1 + $0x18] sm:$0xff]   ;;  %v4725_v61 = vld [vmem:[%s5196_s1 + $0x20] sm:$0xff]  }
  0x10   : > { %s4822_s23 = scalar_lea.vmem %s5195_s0, %s4816_s20  ;;  %4391 = vmatprep.subr.bf16.mxu0 %v4659_v3  ;;  %4632 = vmatprep.subr.bf16.mxu1 %v4659_v3  ;;  %v4722_v0 = vld [vmem:[%s5196_s1 + $0x20] sm:$0xff]   ;;  %v4731_v1 = vld [vmem:[%s5196_s1 + $0x28] sm:$0xff]   ;;  %s5038_s28 = scalar_lea.vmem %s5197_s2, %s4816_s20 }
  0x11   : > { %v4664_v4 = vld [vmem:[%s4822_s23] sm:$0xff]   ;;  %v4665_v11 = vld [vmem:[%s4822_s23 + $0x8] sm:$0xff]   ;;  %v4671_v15 = vld [vmem:[%s4822_s23 + $0x10] sm:$0xff]   ;;  %s5052_s30 = scalar_lea.vmem %s5198_s3, %s4816_s20 }
  0x12   : > { %4401 = vmatprep.mubr.bf16.mxu0 %v4664_v4  ;;  %v4667_v5 = vld [vmem:[%s4822_s23 + $0x40] sm:$0xff]   ;;  %v4668_v13 = vld [vmem:[%s4822_s23 + $0x48] sm:$0xff]   ;;  %v4675_v17 = vld [vmem:[%s4822_s23 + $0x50] sm:$0xff]  }
  0x13   : > { %4417 = vmatprep.mubr.bf16.mxu1 %v4667_v5  ;;  %4392 = vmatpush3.bf16.msra.mxu0 %v4659_v3  ;;  %v4673_v19 = vld [vmem:[%s4822_s23 + $0x18] sm:$0xff]   ;;  %v4679_v23 = vld [vmem:[%s4822_s23 + $0x20] sm:$0xff]   ;;  %v4681_v27 = vld [vmem:[%s4822_s23 + $0x28] sm:$0xff]  }
  0x14   : > { %4640 = vmatpush3.bf16.msra.mxu1 %v4659_v3  ;;  %4393 = vmatprep.subr.bf16.mxu0 %v4660_v6  ;;  %v4676_v21 = vld [vmem:[%s4822_s23 + $0x58] sm:$0xff]   ;;  %v4683_v25 = vld [vmem:[%s4822_s23 + $0x60] sm:$0xff]   ;;  %v4684_v29 = vld [vmem:[%s4822_s23 + $0x68] sm:$0xff]  }
  0x15   : > { %4633 = vmatprep.subr.bf16.mxu1 %v4660_v6  ;;  %v4687_v31 = vld [vmem:[%s4822_s23 + $0x30] sm:$0xff]   ;;  %v4689_v35 = vld [vmem:[%s4822_s23 + $0x38] sm:$0xff]   ;;  %v4696_v40 = vld [vmem:[%s4822_s23 + $0x100] sm:$0xff]  }
  0x16   : > { %v4691_v33 = vld [vmem:[%s4822_s23 + $0x70] sm:$0xff]   ;;  %v4692_v37 = vld [vmem:[%s4822_s23 + $0x78] sm:$0xff]   ;;  %v4699_v41 = vld [vmem:[%s4822_s23 + $0x80] sm:$0xff]  }
  0x17   : > { %4394 = vmatpush3.bf16.msra.mxu0 %v4660_v6  ;;  %v4697_v42 = vld [vmem:[%s4822_s23 + $0x108] sm:$0xff]   ;;  %v4702_v46 = vld [vmem:[%s4822_s23 + $0x110] sm:$0xff]   ;;  %v4703_v51 = vld [vmem:[%s4822_s23 + $0x118] sm:$0xff]  }
  0x18   : > { %4641 = vmatpush3.bf16.msra.mxu1 %v4660_v6  ;;  %4395 = vmatprep.subr.bf16.mxu0 %v4661_v7  ;;  %v4700_v45 = vld [vmem:[%s4822_s23 + $0x88] sm:$0xff]   ;;  %v4705_v48 = vld [vmem:[%s4822_s23 + $0x90] sm:$0xff]   ;;  %v4706_v53 = vld [vmem:[%s4822_s23 + $0x98] sm:$0xff]  }
  0x19   : > { %4634 = vmatprep.subr.bf16.mxu1 %v4661_v7  ;;  %v4708_v54 = vld [vmem:[%s4822_s23 + $0x120] sm:$0xff]   ;;  %v4709_v59 = vld [vmem:[%s4822_s23 + $0x128] sm:$0xff]   ;;  %v4714_v62 = vld [vmem:[%s4822_s23 + $0x130] sm:$0xff]  }
  0x1a   : > { %v4711_v56 = vld [vmem:[%s4822_s23 + $0xa0] sm:$0xff]   ;;  %v4712_v60 = vld [vmem:[%s4822_s23 + $0xa8] sm:$0xff]   ;;  %v4717_v63 = vld [vmem:[%s4822_s23 + $0xb0] sm:$0xff]  }
  0x1b   : > { %4396 = vmatpush3.bf16.msra.mxu0 %v4661_v7  ;;  %v4715_v2 = vld [vmem:[%s4822_s23 + $0x138] sm:$0xff]   ;;  %v4728_v4 = vld [vmem:[%s5196_s1 + $0x28] sm:$0xff]   ;;  %v4737_v5 = vld [vmem:[%s5196_s1 + $0x30] sm:$0xff]  }
  0x1c   : > { %4642 = vmatpush3.bf16.msra.mxu1 %v4661_v7  ;;  %4397 = vmatprep.subr.bf16.mxu0 %v4662_v8  ;;  %v4718_v3 = vld [vmem:[%s4822_s23 + $0xb8] sm:$0xff]   ;;  %v4720_v6 = vld [vmem:[%s4822_s23 + $0x140] sm:$0xff]  }
  0x1d   : > { %4635 = vmatprep.subr.bf16.mxu1 %v4662_v8  ;;  %v4723_v7 = vld [vmem:[%s4822_s23 + $0xc0] sm:$0xff]  }
  0x1f   : > { %4398 = vmatpush3.bf16.msra.mxu0 %v4662_v8 }
  0x20   : > { %4643 = vmatpush3.bf16.msra.mxu1 %v4662_v8  ;;  %4399 = vmatprep.subr.bf16.mxu0 %v4663_v9  ;;  %v4734_v8 = vld [vmem:[%s5196_s1 + $0x30] sm:$0xff]  }
  0x21   : > { %4636 = vmatprep.subr.bf16.mxu1 %v4663_v9 }
  0x23   : > { %4400 = vmatpush3.bf16.msra.mxu0 %v4663_v9 }
  0x24   : > { %4644 = vmatpush3.bf16.msra.mxu1 %v4663_v9  ;;  %4481 = vmatprep.subr.bf16.mxu0 %v4666_v10  ;;  %v4743_v9 = vld [vmem:[%s5196_s1 + $0x38] sm:$0xff]  }
  0x25   : > { %4433 = vmatprep.subr.bf16.mxu1 %v4669_v12 }
  0x26   : > { %4402 = vmatmul.mubr.bf16.vlgmr.msra.gmra.mrb[0].mxu0 %v4665_v11  ;;  %v4740_v11 = vld [vmem:[%s5196_s1 + $0x38] sm:$0xff]  }
  0x27   : > { %4418 = vmatmul.mubr.bf16.vlgmr.msra.gmra.mrb[0].mxu1 %v4668_v13  ;;  %4482 = vmatpush3.bf16.msra.mxu0 %v4666_v10  ;;  %v4721_v10 = vld [vmem:[%s4822_s23 + $0x148] sm:$0xff]   ;;  %v4726_v13 = vld [vmem:[%s4822_s23 + $0x150] sm:$0xff]  }
  0x28   : > { %4434 = vmatpush3.bf16.msra.mxu1 %v4669_v12  ;;  %4483 = vmatprep.subr.bf16.mxu0 %v4670_v14  ;;  %v4724_v12 = vld [vmem:[%s4822_s23 + $0xc8] sm:$0xff]  }
  0x29   : > { %4405 = vmatprep.mubr.bf16.mxu0 %v4671_v15  ;;  %4435 = vmatprep.subr.bf16.mxu1 %v4672_v16  ;;  %v4727_v15 = vld [vmem:[%s4822_s23 + $0x158] sm:$0xff]  }
  0x2a   : > { %4421 = vmatprep.mubr.bf16.mxu1 %v4675_v17  ;;  %v4732_v17 = vld [vmem:[%s4822_s23 + $0x160] sm:$0xff]  }
  0x2b   : > { %4484 = vmatpush3.bf16.msra.mxu0 %v4670_v14  ;;  %v4729_v14 = vld [vmem:[%s4822_s23 + $0xd0] sm:$0xff]  }
  0x2c   : > { %4436 = vmatpush3.bf16.msra.mxu1 %v4672_v16  ;;  %4485 = vmatprep.subr.bf16.mxu0 %v4674_v18  ;;  %v4730_v16 = vld [vmem:[%s4822_s23 + $0xd8] sm:$0xff]  }
  0x2d   : > { %4437 = vmatprep.subr.bf16.mxu1 %v4677_v20 }
  0x2e   : > { %4406 = vmatmul.mubr.bf16.gmra.mrb[4].mxu0 %v4673_v19  ;;  %v4733_v19 = vld [vmem:[%s4822_s23 + $0x168] sm:$0xff]  }
  0x2f   : > { %4422 = vmatmul.mubr.bf16.gmra.mrb[4].mxu1 %v4676_v21  ;;  %4486 = vmatpush3.bf16.msra.mxu0 %v4674_v18  ;;  %v4735_v18 = vld [vmem:[%s4822_s23 + $0xe0] sm:$0xff]   ;;  %v4738_v21 = vld [vmem:[%s4822_s23 + $0x170] sm:$0xff]  }
  0x30   : > { %4438 = vmatpush3.bf16.msra.mxu1 %v4677_v20  ;;  %4487 = vmatprep.subr.bf16.mxu0 %v4678_v22  ;;  %v4736_v20 = vld [vmem:[%s4822_s23 + $0xe8] sm:$0xff]  }
  0x31   : > { %4409 = vmatprep.mubr.bf16.mxu0 %v4679_v23  ;;  %4439 = vmatprep.subr.bf16.mxu1 %v4680_v24  ;;  %v4739_v23 = vld [vmem:[%s4822_s23 + $0x178] sm:$0xff]  }
  0x32   : > { %4425 = vmatprep.mubr.bf16.mxu1 %v4683_v25  ;;  %v4745_v25 = vld [vmem:[%s4822_s23 + $0x180] sm:$0xff]  }
  0x33   : > { %4488 = vmatpush3.bf16.msra.mxu0 %v4678_v22  ;;  %v4741_v22 = vld [vmem:[%s4822_s23 + $0xf0] sm:$0xff]  }
  0x34   : > { %4440 = vmatpush3.bf16.msra.mxu1 %v4680_v24  ;;  %4489 = vmatprep.subr.bf16.mxu0 %v4682_v26  ;;  %v4742_v24 = vld [vmem:[%s4822_s23 + $0xf8] sm:$0xff]  }
  0x35   : > { %4441 = vmatprep.subr.bf16.mxu1 %v4685_v28 }
  0x36   : > { %4410 = vmatmul.mubr.bf16.gmra.mrb[8].mxu0 %v4681_v27  ;;  %v4746_v27 = vld [vmem:[%s4822_s23 + $0x188] sm:$0xff]  }
  0x37   : > { %4426 = vmatmul.mubr.bf16.gmra.mrb[8].mxu1 %v4684_v29  ;;  %4490 = vmatpush3.bf16.msra.mxu0 %v4682_v26  ;;  %v4744_v26 = vld [vmem:[%s4822_s23 + $0x200] sm:$0xff]   ;;  %v4747_v29 = vld [vmem:[%s4822_s23 + $0x208] sm:$0xff]  }
  0x38   : > { %4442 = vmatpush3.bf16.msra.mxu1 %v4685_v28  ;;  %4491 = vmatprep.subr.bf16.mxu0 %v4686_v30  ;;  %v4748_v28 = vld [vmem:[%s4822_s23 + $0x190] sm:$0xff]  }
  0x39   : > { %4413 = vmatprep.mubr.bf16.mxu0 %v4687_v31  ;;  %4443 = vmatprep.subr.bf16.mxu1 %v4688_v32  ;;  %v4751_v31 = vld [vmem:[%s4822_s23 + $0x1a0] sm:$0xff]  }
  0x3a   : > { %4429 = vmatprep.mubr.bf16.mxu1 %v4691_v33  ;;  %v4752_v33 = vld [vmem:[%s4822_s23 + $0x1a8] sm:$0xff]  }
  0x3b   : > { %4492 = vmatpush3.bf16.msra.mxu0 %v4686_v30  ;;  %v4749_v30 = vld [vmem:[%s4822_s23 + $0x198] sm:$0xff]  }
  0x3c   : > { %4444 = vmatpush3.bf16.msra.mxu1 %v4688_v32  ;;  %4493 = vmatprep.subr.bf16.mxu0 %v4690_v34  ;;  %v4750_v32 = vld [vmem:[%s4822_s23 + $0x210] sm:$0xff]  }
  0x3d   : > { %4445 = vmatprep.subr.bf16.mxu1 %v4693_v36 }
  0x3e   : > { %4414 = vmatmul.mubr.bf16.gmra.mrb[12].mxu0 %v4689_v35  ;;  %v4753_v35 = vld [vmem:[%s4822_s23 + $0x218] sm:$0xff]  }
  0x3f   : > { %4430 = vmatmul.mubr.bf16.gmra.mrb[12].mxu1 %v4692_v37  ;;  %4494 = vmatpush3.bf16.msra.mxu0 %v4690_v34  ;;  %v4754_v34 = vld [vmem:[%s4822_s23 + $0x1b0] sm:$0xff]   ;;  %v4757_v37 = vld [vmem:[%s4822_s23 + $0x1c0] sm:$0xff]  }
  0x40   : > { %4446 = vmatpush3.bf16.msra.mxu1 %v4693_v36  ;;  %4495 = vmatprep.subr.bf16.mxu0 %v4694_v38  ;;  %v4755_v36 = vld [vmem:[%s4822_s23 + $0x1b8] sm:$0xff]  }
  0x41   : > { %4447 = vmatprep.subr.bf16.mxu1 %v4695_v39  ;;  %4497 = vmatprep.mubr.bf16.mxu0 %v4696_v40  ;;  %v4760_v40 = vld [vmem:[%s4822_s23 + $0x1d0] sm:$0xff]  }
  0x42   : > { %4449 = vmatprep.mubr.bf16.mxu1 %v4699_v41  ;;  %v4759_v41 = vld [vmem:[%s4822_s23 + $0x228] sm:$0xff]  }
  0x43   : > { %4496 = vmatpush3.bf16.msra.mxu0 %v4694_v38  ;;  %v4756_v38 = vld [vmem:[%s4822_s23 + $0x220] sm:$0xff]  }
  0x44   : > { %4448 = vmatpush3.bf16.msra.mxu1 %v4695_v39  ;;  %4577 = vmatprep.subr.bf16.mxu0 %v4777_v47  ;;  %v4758_v39 = vld [vmem:[%s4822_s23 + $0x1c8] sm:$0xff]  }
  0x45   : > { %4529 = vmatprep.subr.bf16.mxu1 %v4701_v43 }
  0x46   : > { %4498 = vmatmul.mubr.bf16.vlgmr.msra.gmra.mrb[16].mxu0 %v4697_v42  ;;  %v4761_v42 = vld [vmem:[%s4822_s23 + $0x1d8] sm:$0xff]  }
  0x47   : > { %4450 = vmatmul.mubr.bf16.vlgmr.msra.gmra.mrb[16].mxu1 %v4700_v45  ;;  %4578 = vmatpush3.bf16.msra.mxu0 %v4698_v44  ;;  %v4762_v44 = vld [vmem:[%s4822_s23 + $0x230] sm:$0xff]   ;;  %v4764_v45 = vld [vmem:[%s4822_s23 + $0x1e8] sm:$0xff]  }
  0x48   : > { %4530 = vmatpush3.bf16.msra.mxu1 %v4701_v43  ;;  %4501 = vmatprep.mubr.bf16.mxu0 %v4702_v46  ;;  %v4763_v43 = vld [vmem:[%s4822_s23 + $0x1e0] sm:$0xff]   ;;  %v4766_v46 = vld [vmem:[%s4822_s23 + $0x1f0] sm:$0xff]  }
  0x49   : > { %4579 = vmatprep.subr.bf16.mxu0 %v4777_v47  ;;  %4453 = vmatprep.mubr.bf16.mxu1 %v4705_v48  ;;  %v4765_v48 = vld [vmem:[%s4822_s23 + $0x238] sm:$0xff]  }
  0x4a   : > { %4531 = vmatprep.subr.bf16.mxu1 %v4707_v49 }
  0x4b   : > { %4580 = vmatpush3.bf16.msra.mxu0 %v4704_v50  ;;  %v4768_v50 = vld [vmem:[%s4822_s23 + $0x240] ss:$0 sps:$4 sm:$0x33]  }
  0x4c   : > { %4532 = vmatpush3.bf16.msra.mxu1 %v4707_v49  ;;  %4581 = vmatprep.subr.bf16.mxu0 %v4777_v47  ;;  %v4767_v49 = vld [vmem:[%s4822_s23 + $0x1f8] sm:$0xff]  }
  0x4d   : > { %4533 = vmatprep.subr.bf16.mxu1 %v4713_v52 }
  0x4e   : > { %4502 = vmatmul.mubr.bf16.gmra.mrb[20].mxu0 %v4703_v51  ;;  %v4130_v51 = vld [vmem:[%s5038_s28 + $0x8] sm:$0xff]  }
  0x4f   : > { %4454 = vmatmul.mubr.bf16.gmra.mrb[20].mxu1 %v4706_v53  ;;  %4505 = vmatprep.mubr.bf16.mxu0 %v4708_v54  ;;  %v3483_v53 = vld [vmem:[%s5038_s28] sm:$0xff]  }
  0x50   : > { %4582 = vmatpush3.bf16.msra.mxu0 %v4710_v55  ;;  %4457 = vmatprep.mubr.bf16.mxu1 %v4711_v56  ;;  %v4137_v54 = vld [vmem:[%s5038_s28 + $0x40] sm:$0xff]   ;;  %v3488_v55 = vunpack.c.l.bf16 %v4130_v51 }
  0x51   : > { %4534 = vmatpush3.bf16.msra.mxu1 %v4713_v52  ;;  %4583 = vmatprep.subr.bf16.mxu0 %v4777_v47  ;;  %v4138_v52 = vld [vmem:[%s5038_s28 + $0x48] sm:$0xff]  }
  0x52   : > { %4535 = vmatprep.subr.bf16.mxu1 %v4719_v57  ;;  %v3520_v56 = vunpack.c.l.bf16 %v4138_v52 }
  0x54   : > { %4584 = vmatpush3.bf16.msra.mxu0 %v4716_v58  ;;  %v3489_v58 = vunpack.c.h.bf16 %v4130_v51  ;;  %v4142_v51 = vld [vmem:[%s5038_s28 + $0x68] sm:$0xff]  }
  0x55   : > { %4536 = vmatpush3.bf16.msra.mxu1 %v4719_v57  ;;  %4585 = vmatprep.subr.bf16.mxu0 %v4777_v47  ;;  %v3516_v57 = vunpack.c.l.bf16 %v4137_v54 }
  0x56   : > { %4537 = vmatprep.subr.bf16.mxu1 %v4725_v61  ;;  %4506 = vmatmul.mubr.bf16.gmra.mrb[24].mxu0 %v4709_v59  ;;  %v3521_v59 = vunpack.c.h.bf16 %v4138_v52 }
  0x57   : > { %4458 = vmatmul.mubr.bf16.gmra.mrb[24].mxu1 %v4712_v60  ;;  %4509 = vmatprep.mubr.bf16.mxu0 %v4714_v62 }
  0x58   : > { %4461 = vmatprep.mubr.bf16.mxu1 %v4717_v63  ;;  %4586 = vmatpush3.bf16.msra.mxu0 %v4722_v0  ;;  %v3517_v63 = vunpack.c.h.bf16 %v4137_v54  ;;  %v4132_v0 = vld [vmem:[%s5038_s28 + $0x18] sm:$0xff]  }
  0x59   : > { %4538 = vmatpush3.bf16.msra.mxu1 %v4725_v61  ;;  %4587 = vmatprep.subr.bf16.mxu0 %v4777_v47  ;;  %v3485_v61 = vunpack.c.h.bf16 %v3483_v53 }
  0x5a   : > { %4539 = vmatprep.subr.bf16.mxu1 %v4731_v1 }
  0x5c   : > { %4588 = vmatpush3.bf16.msra.mxu0 %v4728_v4 }
  0x5d   : > { %4540 = vmatpush3.bf16.msra.mxu1 %v4731_v1  ;;  %4589 = vmatprep.subr.bf16.mxu0 %v4777_v47 }
  0x5e   : > { %4541 = vmatprep.subr.bf16.mxu1 %v4737_v5  ;;  %4510 = vmatmul.mubr.bf16.gmra.mrb[28].mxu0 %v4715_v2 }
  0x5f   : > { %4462 = vmatmul.mubr.bf16.gmra.mrb[28].mxu1 %v4718_v3  ;;  %4513 = vmatprep.mubr.bf16.mxu0 %v4720_v6 }
  0x60   : > { %4465 = vmatprep.mubr.bf16.mxu1 %v4723_v7  ;;  %4590 = vmatpush3.bf16.msra.mxu0 %v4734_v8 }
  0x61   : > { %4542 = vmatpush3.bf16.msra.mxu1 %v4737_v5  ;;  %4591 = vmatprep.subr.bf16.mxu0 %v4777_v47  ;;  %v4131_v5 = vld [vmem:[%s5038_s28 + $0x10] sm:$0xff]  }
  0x62   : > { %4543 = vmatprep.subr.bf16.mxu1 %v4743_v9 }
  0x64   : > { %4592 = vmatpush3.bf16.msra.mxu0 %v4740_v11 }
  0x65   : > { %4544 = vmatpush3.bf16.msra.mxu1 %v4743_v9 }
  0x66   : > { %4514 = vmatmul.mubr.bf16.gmra.mrb[32].mxu0 %v4721_v10  ;;  %v4140_v10 = vld [vmem:[%s5038_s28 + $0x58] sm:$0xff]  }
  0x67   : > { %4466 = vmatmul.mubr.bf16.gmra.mrb[32].mxu1 %v4724_v12  ;;  %4517 = vmatprep.mubr.bf16.mxu0 %v4726_v13 }
  0x68   : > { %4469 = vmatprep.mubr.bf16.mxu1 %v4729_v14 }
  0x6e   : > { %4518 = vmatmul.mubr.bf16.gmra.mrb[36].mxu0 %v4727_v15 }
  0x6f   : > { %4470 = vmatmul.mubr.bf16.gmra.mrb[36].mxu1 %v4730_v16  ;;  %4521 = vmatprep.mubr.bf16.mxu0 %v4732_v17  ;;  %v3496_v16 = vunpack.c.l.bf16 %v4132_v0  ;;  %v4139_v17 = vld [vmem:[%s5038_s28 + $0x50] sm:$0xff]  }
  0x70   : > { %4473 = vmatprep.mubr.bf16.mxu1 %v4735_v18 }
  0x76   : > { %4522 = vmatmul.mubr.bf16.gmra.mrb[40].mxu0 %v4733_v19 }
  0x77   : > { %4474 = vmatmul.mubr.bf16.gmra.mrb[40].mxu1 %v4736_v20  ;;  %4525 = vmatprep.mubr.bf16.mxu0 %v4738_v21  ;;  %v3492_v21 = vunpack.c.l.bf16 %v4131_v5 }
  0x78   : > { %4477 = vmatprep.mubr.bf16.mxu1 %v4741_v22 }
  0x7e   : > { %4526 = vmatmul.mubr.bf16.gmra.mrb[44].mxu0 %v4739_v23 }
  0x7f   : > { %4478 = vmatmul.mubr.bf16.gmra.mrb[44].mxu1 %v4742_v24  ;;  %4593 = vmatprep.mubr.msk.bf16.mxu0 %vm4778_vm0, %v4777_v47 }
  0x80   : > { %4545 = vmatprep.mubr.bf16.mxu1 %v4745_v25  ;;  %v3528_v25 = vunpack.c.l.bf16 %v4140_v10 }
  0x86   : > { %4594 = vmatmul.mubr.bf16.vlgmr.msra.gmra.mrb[48].mxu0 %v4744_v26 }
  0x87   : > { %4546 = vmatmul.mubr.bf16.vlgmr.msra.gmra.mrb[48].mxu1 %v4746_v27  ;;  %4597 = vmatprep.mubr.msk.bf16.mxu0 %vm4778_vm0, %v4777_v47 }
  0x88   : > { %4549 = vmatprep.mubr.bf16.mxu1 %v4748_v28 }
  0x8e   : > { %4598 = vmatmul.mubr.bf16.gmra.mrb[52].mxu0 %v4747_v29  ;;  %v3524_v29 = vunpack.c.l.bf16 %v4139_v17 }
  0x8f   : > { %4550 = vmatmul.mubr.bf16.gmra.mrb[52].mxu1 %v4749_v30  ;;  %4601 = vmatprep.mubr.msk.bf16.mxu0 %vm4778_vm0, %v4777_v47 }
  0x90   : > { %4553 = vmatprep.mubr.bf16.mxu1 %v4751_v31 }
  0x96   : > { %4602 = vmatmul.mubr.bf16.gmra.mrb[56].mxu0 %v4750_v32  ;;  %v3497_v32 = vunpack.c.h.bf16 %v4132_v0 }
  0x97   : > { %4554 = vmatmul.mubr.bf16.gmra.mrb[56].mxu1 %v4752_v33  ;;  %4605 = vmatprep.mubr.msk.bf16.mxu0 %vm4778_vm0, %v4777_v47  ;;  %v3529_v33 = vunpack.c.h.bf16 %v4140_v10 }
  0x98   : > { %4557 = vmatprep.mubr.bf16.mxu1 %v4754_v34 }
  0x9e   : > { %4606 = vmatmul.mubr.bf16.gmra.mrb[60].mxu0 %v4753_v35 }
  0x9f   : > { %4558 = vmatmul.mubr.bf16.gmra.mrb[60].mxu1 %v4755_v36  ;;  %4609 = vmatprep.mubr.msk.bf16.mxu0 %vm4778_vm0, %v4777_v47 }
  0xa0   : > { %4561 = vmatprep.mubr.bf16.mxu1 %v4757_v37  ;;  %v3493_v37 = vunpack.c.h.bf16 %v4131_v5 }
  0xa6   : > { %4610 = vmatmul.mubr.bf16.gmra.mrb[64].mxu0 %v4756_v38 }
  0xa7   : > { %4562 = vmatmul.mubr.bf16.gmra.mrb[64].mxu1 %v4758_v39  ;;  %4613 = vmatprep.mubr.msk.bf16.mxu0 %vm4778_vm0, %v4777_v47  ;;  %v3525_v39 = vunpack.c.h.bf16 %v4139_v17 }
  0xa8   : > { %4565 = vmatprep.mubr.bf16.mxu1 %v4760_v40  ;;  %v4134_v40 = vld [vmem:[%s5038_s28 + $0x28] sm:$0xff]  }
  0xae   : > { %4614 = vmatmul.mubr.bf16.gmra.mrb[68].mxu0 %v4759_v41 }
  0xaf   : > { %4566 = vmatmul.mubr.bf16.gmra.mrb[68].mxu1 %v4761_v42  ;;  %4617 = vmatprep.mubr.msk.bf16.mxu0 %vm4778_vm0, %v4777_v47 }
  0xb0   : > { %4569 = vmatprep.mubr.bf16.mxu1 %v4763_v43 }
  0xb6   : > { %4618 = vmatmul.mubr.bf16.gmra.mrb[72].mxu0 %v4762_v44 }
  0xb7   : > { %4570 = vmatmul.mubr.bf16.gmra.mrb[72].mxu1 %v4764_v45  ;;  %4621 = vmatprep.mubr.msk.bf16.mxu0 %vm4778_vm0, %v4777_v47  ;;  %v4133_v45 = vld [vmem:[%s5038_s28 + $0x20] sm:$0xff]  }
  0xb8   : > { %4573 = vmatprep.mubr.bf16.mxu1 %v4766_v46 }
  0xbe   : > { %4622 = vmatmul.mubr.bf16.gmra.mrb[76].mxu0 %v4765_v48 }
  0xbf   : > { %4574 = vmatmul.mubr.bf16.gmra.mrb[76].mxu1 %v4767_v49  ;;  %4625 = vmatprep.mubr.msk.bf16.mxu0 %vm4778_vm0, %v4777_v47  ;;  %v3484_v47 = vunpack.c.l.bf16 %v3483_v53 }
  0xc6   : > { %4626 = vmatmul.mubr.bf16.gmra.mrb[80].mxu0 %v4768_v50 }
  0xf9   : > { %v4403_v60 = vpop.f32.mrb[0].mxu0 }
  0xfa   : > { %v4419_v62 = vpop.f32.mrb[0].mxu1  ;;  %v491_v1 = vadd.f32 %v4403_v60, %v3488_v55  ;;  %v482_v2 = vpop.f32.mrb[1].mxu0 }
  0xfb   : > { %v555_v3 = vadd.f32 %v4419_v62, %v3520_v56  ;;  %v546_v4 = vpop.f32.mrb[1].mxu1  ;;  %v483_v6 = vadd.f32 %v3484_v47, %v482_v2  ;;  %v4404_v7 = vpop.f32.mrb[2].mxu0  ;;  %v3504_v47 = vunpack.c.l.bf16 %v4134_v40 }
  0xfc   : > { %v547_v8 = vadd.f32 %v3516_v57, %v546_v4  ;;  %v4420_v9 = vpop.f32.mrb[2].mxu1  ;;  %v494_v11 = vadd.f32 %v4404_v7, %v3489_v58  ;;  %v485_v12 = vpop.f32.mrb[3].mxu0  ;;  %v611_v22 = vmax.f32 %v491_v1, 0.0  ;;  %v4141_v57 = vld [vmem:[%s5038_s28 + $0x60] sm:$0xff]   ;;  %v3536_v1 = vunpack.c.l.bf16 %v4142_v51 }
  0xfd   : > { %v627_v13 = vmax.f32 %v555_v3, 0.0  ;;  %v558_v14 = vadd.f32 %v4420_v9, %v3521_v59  ;;  %v549_v15 = vpop.f32.mrb[3].mxu1  ;;  %v486_v18 = vadd.f32 %v3485_v61, %v485_v12  ;;  %v609_v26 = vmax.f32 %v483_v6, 0.0 }
  0xfe   : > { %v625_v19 = vmax.f32 %v547_v8, 0.0  ;;  %v550_v20 = vadd.f32 %v3517_v63, %v549_v15  ;;  %v612_v23 = vmax.f32 %v494_v11, 0.0  ;;  %v3500_v61 = vunpack.c.l.bf16 %v4133_v45 }
  0xff   : > { %v628_v24 = vmax.f32 %v558_v14, 0.0  ;;  %v610_v27 = vmax.f32 %v486_v18, 0.0  ;;  %v3532_v5 = vunpack.c.l.bf16 %v4141_v57  ;;  %v3505_v8 = vunpack.c.h.bf16 %v4134_v40 }
 0x100   : > { %v626_v28 = vmax.f32 %v550_v20, 0.0  ;;  %v3554_v30 = vpack.c.bf16 %v612_v23, %v611_v22  ;;  %v3537_v9 = vunpack.c.h.bf16 %v4142_v51  ;;  %v3533_v15 = vunpack.c.h.bf16 %v4141_v57 }
 0x101   : > { %v3594_v31 = vpack.c.bf16 %v628_v24, %v627_v13  ;;  %v3549_v34 = vpack.c.bf16 %v610_v27, %v609_v26  ;;  %v4407_v36 = vpop.f32.mrb[4].mxu0  ;;  %v3501_v13 = vunpack.c.h.bf16 %v4133_v45  ;;  %v4144_v26 = vld [vmem:[%s5038_s28 + $0x78] sm:$0xff]  }
 0x102   : > { %v3589_v35 = vpack.c.bf16 %v626_v28, %v625_v19  ;;  %v4423_v38 = vpop.f32.mrb[4].mxu1  ;;  %4145 = vst [vmem:[%s5052_s30 + $0x8] sm:$0xff] %v3554_v30   ;;  %v507_v41 = vadd.f32 %v4407_v36, %v3496_v16  ;;  %v498_v42 = vpop.f32.mrb[5].mxu0  ;;  %v4136_v16 = vld [vmem:[%s5038_s28 + $0x38] sm:$0xff]  }
 0x103   : > { %4153 = vst [vmem:[%s5052_s30 + $0x48] sm:$0xff] %v3594_v31   ;;  %v571_v43 = vadd.f32 %v4423_v38, %v3528_v25  ;;  %v562_v44 = vpop.f32.mrb[5].mxu1  ;;  %3550 = vst [vmem:[%s5052_s30] sm:$0xff] %v3549_v34   ;;  %v499_v46 = vadd.f32 %v3492_v21, %v498_v42  ;;  %v4408_v48 = vpop.f32.mrb[6].mxu0  ;;  %v4135_v21 = vld [vmem:[%s5038_s28 + $0x30] sm:$0xff]  }
 0x104   : > { %4152 = vst [vmem:[%s5052_s30 + $0x40] sm:$0xff] %v3589_v35   ;;  %v563_v49 = vadd.f32 %v3524_v29, %v562_v44  ;;  %v4424_v50 = vpop.f32.mrb[6].mxu1  ;;  %v510_v52 = vadd.f32 %v4408_v48, %v3497_v32  ;;  %v501_v53 = vpop.f32.mrb[7].mxu0  ;;  %v615_v62 = vmax.f32 %v507_v41, 0.0  ;;  %v3512_v32 = vunpack.c.l.bf16 %v4136_v16 }
 0x105   : > { %v631_v54 = vmax.f32 %v571_v43, 0.0  ;;  %v574_v55 = vadd.f32 %v4424_v50, %v3529_v33  ;;  %v565_v56 = vpop.f32.mrb[7].mxu1  ;;  %v502_v58 = vadd.f32 %v3493_v37, %v501_v53  ;;  %v613_v2 = vmax.f32 %v499_v46, 0.0  ;;  %v4143_v33 = vld [vmem:[%s5038_s28 + $0x70] sm:$0xff]  }
 0x106   : > { %v629_v59 = vmax.f32 %v563_v49, 0.0  ;;  %v566_v60 = vadd.f32 %v3525_v39, %v565_v56  ;;  %v616_v63 = vmax.f32 %v510_v52, 0.0  ;;  %v3508_v37 = vunpack.c.l.bf16 %v4135_v21 }
 0x107   : > { %v632_v0 = vmax.f32 %v574_v55, 0.0  ;;  %v614_v3 = vmax.f32 %v502_v58, 0.0  ;;  %v3544_v41 = vunpack.c.l.bf16 %v4144_v26  ;;  %v3540_v45 = vunpack.c.l.bf16 %v4143_v33 }
 0x108   : > { %v630_v4 = vmax.f32 %v566_v60, 0.0  ;;  %v3564_v6 = vpack.c.bf16 %v616_v63, %v615_v62  ;;  %v3513_v49 = vunpack.c.h.bf16 %v4136_v16  ;;  %v3545_v50 = vunpack.c.h.bf16 %v4144_v26 }
 0x109   : > { %v3604_v7 = vpack.c.bf16 %v632_v0, %v631_v54  ;;  %v3559_v10 = vpack.c.bf16 %v614_v3, %v613_v2  ;;  %v4411_v12 = vpop.f32.mrb[8].mxu0  ;;  %v3509_v54 = vunpack.c.h.bf16 %v4135_v21  ;;  %v3541_v56 = vunpack.c.h.bf16 %v4143_v33  ;;  %v4161_v2 = vld [vmem:[%s5038_s28 + $0x88] sm:$0xff]  }
 0x10a   : > { %v3599_v11 = vpack.c.bf16 %v630_v4, %v629_v59  ;;  %v4427_v14 = vpop.f32.mrb[8].mxu1  ;;  %4147 = vst [vmem:[%s5052_s30 + $0x18] sm:$0xff] %v3564_v6   ;;  %v523_v17 = vadd.f32 %v4411_v12, %v3504_v47  ;;  %v514_v18 = vpop.f32.mrb[9].mxu0  ;;  %v4193_v47 = vld [vmem:[%s5038_s28 + $0x108] sm:$0xff]  }
 0x10b   : > { %4155 = vst [vmem:[%s5052_s30 + $0x58] sm:$0xff] %v3604_v7   ;;  %v587_v19 = vadd.f32 %v4427_v14, %v3536_v1  ;;  %v578_v20 = vpop.f32.mrb[9].mxu1  ;;  %4146 = vst [vmem:[%s5052_s30 + $0x10] sm:$0xff] %v3559_v10   ;;  %v515_v22 = vadd.f32 %v3500_v61, %v514_v18  ;;  %v4412_v23 = vpop.f32.mrb[10].mxu0  ;;  %v4192_v61 = vld [vmem:[%s5038_s28 + $0x100] sm:$0xff]  }
 0x10c   : > { %4154 = vst [vmem:[%s5052_s30 + $0x50] sm:$0xff] %v3599_v11   ;;  %v579_v24 = vadd.f32 %v3532_v5, %v578_v20  ;;  %v4428_v25 = vpop.f32.mrb[10].mxu1  ;;  %v526_v27 = vadd.f32 %v4412_v23, %v3505_v8  ;;  %v517_v28 = vpop.f32.mrb[11].mxu0  ;;  %v619_v38 = vmax.f32 %v523_v17, 0.0  ;;  %v3776_v8 = vunpack.c.l.bf16 %v4193_v47 }
 0x10d   : > { %v635_v29 = vmax.f32 %v587_v19, 0.0  ;;  %v590_v30 = vadd.f32 %v4428_v25, %v3537_v9  ;;  %v581_v31 = vpop.f32.mrb[11].mxu1  ;;  %v518_v34 = vadd.f32 %v3501_v13, %v517_v28  ;;  %v617_v42 = vmax.f32 %v515_v22, 0.0  ;;  %v4160_v9 = vld [vmem:[%s5038_s28 + $0x80] sm:$0xff]  }
 0x10e   : > { %v633_v35 = vmax.f32 %v579_v24, 0.0  ;;  %v582_v36 = vadd.f32 %v3533_v15, %v581_v31  ;;  %v620_v39 = vmax.f32 %v526_v27, 0.0  ;;  %v3772_v13 = vunpack.c.l.bf16 %v4192_v61 }
 0x10f   : > { %v636_v40 = vmax.f32 %v590_v30, 0.0  ;;  %v618_v43 = vmax.f32 %v518_v34, 0.0  ;;  %v3632_v17 = vunpack.c.l.bf16 %v4161_v2  ;;  %v3628_v21 = vunpack.c.l.bf16 %v4160_v9 }
 0x110   : > { %v634_v44 = vmax.f32 %v582_v36, 0.0  ;;  %v3574_v46 = vpack.c.bf16 %v620_v39, %v619_v38  ;;  %v3777_v24 = vunpack.c.h.bf16 %v4193_v47  ;;  %v3633_v25 = vunpack.c.h.bf16 %v4161_v2 }
 0x111   : > { %v3614_v48 = vpack.c.bf16 %v636_v40, %v635_v29  ;;  %v3569_v51 = vpack.c.bf16 %v618_v43, %v617_v42  ;;  %v4415_v53 = vpop.f32.mrb[12].mxu0  ;;  %v3773_v30 = vunpack.c.h.bf16 %v4192_v61  ;;  %v3629_v31 = vunpack.c.h.bf16 %v4160_v9  ;;  %v4163_v42 = vld [vmem:[%s5038_s28 + $0x98] sm:$0xff]  }
 0x112   : > { %v3609_v52 = vpack.c.bf16 %v634_v44, %v633_v35  ;;  %v4431_v55 = vpop.f32.mrb[12].mxu1  ;;  %4149 = vst [vmem:[%s5052_s30 + $0x28] sm:$0xff] %v3574_v46   ;;  %v539_v57 = vadd.f32 %v4415_v53, %v3512_v32  ;;  %v530_v58 = vpop.f32.mrb[13].mxu0  ;;  %v4195_v32 = vld [vmem:[%s5038_s28 + $0x118] sm:$0xff]  }
 0x113   : > { %4157 = vst [vmem:[%s5052_s30 + $0x68] sm:$0xff] %v3614_v48   ;;  %v603_v59 = vadd.f32 %v4431_v55, %v3544_v41  ;;  %v594_v60 = vpop.f32.mrb[13].mxu1  ;;  %4148 = vst [vmem:[%s5052_s30 + $0x20] sm:$0xff] %v3569_v51   ;;  %v531_v62 = vadd.f32 %v3508_v37, %v530_v58  ;;  %v4416_v63 = vpop.f32.mrb[14].mxu0  ;;  %v4194_v37 = vld [vmem:[%s5038_s28 + $0x110] sm:$0xff]  }
 0x114   : > { %4156 = vst [vmem:[%s5052_s30 + $0x60] sm:$0xff] %v3609_v52   ;;  %v595_v0 = vadd.f32 %v3540_v45, %v594_v60  ;;  %v4432_v1 = vpop.f32.mrb[14].mxu1  ;;  %v542_v3 = vadd.f32 %v4416_v63, %v3513_v49  ;;  %v533_v4 = vpop.f32.mrb[15].mxu0  ;;  %v623_v14 = vmax.f32 %v539_v57, 0.0  ;;  %v3784_v49 = vunpack.c.l.bf16 %v4195_v32 }
 0x115   : > { %v639_v5 = vmax.f32 %v603_v59, 0.0  ;;  %v606_v6 = vadd.f32 %v4432_v1, %v3545_v50  ;;  %v597_v7 = vpop.f32.mrb[15].mxu1  ;;  %v534_v10 = vadd.f32 %v3509_v54, %v533_v4  ;;  %v621_v18 = vmax.f32 %v531_v62, 0.0  ;;  %v4162_v50 = vld [vmem:[%s5038_s28 + $0x90] sm:$0xff]  }
 0x116   : > { %v637_v11 = vmax.f32 %v595_v0, 0.0  ;;  %v598_v12 = vadd.f32 %v3541_v56, %v597_v7  ;;  %v624_v15 = vmax.f32 %v542_v3, 0.0  ;;  %v3780_v54 = vunpack.c.l.bf16 %v4194_v37 }
 0x117   : > { %v640_v16 = vmax.f32 %v606_v6, 0.0  ;;  %v622_v19 = vmax.f32 %v534_v10, 0.0  ;;  %v3640_v57 = vunpack.c.l.bf16 %v4163_v42  ;;  %v3636_v61 = vunpack.c.l.bf16 %v4162_v50 }
 0x118   : > { %v638_v20 = vmax.f32 %v598_v12, 0.0  ;;  %v3584_v22 = vpack.c.bf16 %v624_v15, %v623_v14  ;;  %v3785_v0 = vunpack.c.h.bf16 %v4195_v32  ;;  %v3641_v1 = vunpack.c.h.bf16 %v4163_v42 }
 0x119   : > { %v3624_v23 = vpack.c.bf16 %v640_v16, %v639_v5  ;;  %v3579_v26 = vpack.c.bf16 %v622_v19, %v621_v18  ;;  %v4499_v28 = vpop.f32.mrb[16].mxu0  ;;  %v3781_v6 = vunpack.c.h.bf16 %v4194_v37  ;;  %v3637_v7 = vunpack.c.h.bf16 %v4162_v50  ;;  %v4165_v18 = vld [vmem:[%s5038_s28 + $0xa8] sm:$0xff]  }
 0x11a   : > { %v3619_v27 = vpack.c.bf16 %v638_v20, %v637_v11  ;;  %v4451_v29 = vpop.f32.mrb[16].mxu1  ;;  %4151 = vst [vmem:[%s5052_s30 + $0x38] sm:$0xff] %v3584_v22   ;;  %v1709_v33 = vadd.f32 %v4499_v28, %v3776_v8  ;;  %v1700_v34 = vpop.f32.mrb[17].mxu0  ;;  %v4197_v8 = vld [vmem:[%s5038_s28 + $0x128] sm:$0xff]  }
 0x11b   : > { %4159 = vst [vmem:[%s5052_s30 + $0x78] sm:$0xff] %v3624_v23   ;;  %v1100_v35 = vadd.f32 %v4451_v29, %v3632_v17  ;;  %v1091_v36 = vpop.f32.mrb[17].mxu1  ;;  %4150 = vst [vmem:[%s5052_s30 + $0x30] sm:$0xff] %v3579_v26   ;;  %v1701_v38 = vadd.f32 %v3772_v13, %v1700_v34  ;;  %v4500_v39 = vpop.f32.mrb[18].mxu0  ;;  %v4196_v13 = vld [vmem:[%s5038_s28 + $0x120] sm:$0xff]  }
 0x11c   : > { %4158 = vst [vmem:[%s5052_s30 + $0x70] sm:$0xff] %v3619_v27   ;;  %v1092_v40 = vadd.f32 %v3628_v21, %v1091_v36  ;;  %v4452_v41 = vpop.f32.mrb[18].mxu1  ;;  %v1712_v43 = vadd.f32 %v4500_v39, %v3777_v24  ;;  %v1703_v45 = vpop.f32.mrb[19].mxu0  ;;  %v1829_v55 = vmax.f32 %v1709_v33, 0.0  ;;  %v3792_v24 = vunpack.c.l.bf16 %v4197_v8 }
 0x11d   : > { %v1220_v44 = vmax.f32 %v1100_v35, 0.0  ;;  %v1103_v46 = vadd.f32 %v4452_v41, %v3633_v25  ;;  %v1094_v48 = vpop.f32.mrb[19].mxu1  ;;  %v1704_v51 = vadd.f32 %v3773_v30, %v1703_v45  ;;  %v1827_v58 = vmax.f32 %v1701_v38, 0.0  ;;  %v4164_v25 = vld [vmem:[%s5038_s28 + $0xa0] sm:$0xff]  }
 0x11e   : > { %v1218_v52 = vmax.f32 %v1092_v40, 0.0  ;;  %v1095_v53 = vadd.f32 %v3629_v31, %v1094_v48  ;;  %v1830_v56 = vmax.f32 %v1712_v43, 0.0  ;;  %v3788_v29 = vunpack.c.l.bf16 %v4196_v13 }
 0x11f   : > { %v1221_v47 = vmax.f32 %v1103_v46, 0.0  ;;  %v1828_v59 = vmax.f32 %v1704_v51, 0.0  ;;  %v3648_v33 = vunpack.c.l.bf16 %v4165_v18  ;;  %v3644_v37 = vunpack.c.l.bf16 %v4164_v25 }
 0x120   : > { %v1219_v60 = vmax.f32 %v1095_v53, 0.0  ;;  %v3842_v62 = vpack.c.bf16 %v1830_v56, %v1829_v55  ;;  %v3793_v40 = vunpack.c.h.bf16 %v4197_v8  ;;  %v3649_v41 = vunpack.c.h.bf16 %v4165_v18 }
 0x121   : > { %v3698_v63 = vpack.c.bf16 %v1221_v47, %v1220_v44  ;;  %v3837_v2 = vpack.c.bf16 %v1828_v59, %v1827_v58  ;;  %v4503_v4 = vpop.f32.mrb[20].mxu0  ;;  %v3789_v46 = vunpack.c.h.bf16 %v4196_v13  ;;  %v3645_v48 = vunpack.c.h.bf16 %v4164_v25  ;;  %v4167_v58 = vld [vmem:[%s5038_s28 + $0xb8] sm:$0xff]  }
 0x122   : > { %v3693_v3 = vpack.c.bf16 %v1219_v60, %v1218_v52  ;;  %v4455_v5 = vpop.f32.mrb[20].mxu1  ;;  %4209 = vst [vmem:[%s5052_s30 + $0x108] sm:$0xff] %v3842_v62   ;;  %v1725_v9 = vadd.f32 %v4503_v4, %v3784_v49  ;;  %v1716_v10 = vpop.f32.mrb[21].mxu0  ;;  %v4199_v49 = vld [vmem:[%s5038_s28 + $0x138] sm:$0xff]  }
 0x123   : > { %4177 = vst [vmem:[%s5052_s30 + $0x88] sm:$0xff] %v3698_v63   ;;  %v1116_v11 = vadd.f32 %v4455_v5, %v3640_v57  ;;  %v1107_v12 = vpop.f32.mrb[21].mxu1  ;;  %4208 = vst [vmem:[%s5052_s30 + $0x100] sm:$0xff] %v3837_v2   ;;  %v1717_v14 = vadd.f32 %v3780_v54, %v1716_v10  ;;  %v4504_v15 = vpop.f32.mrb[22].mxu0  ;;  %v4198_v54 = vld [vmem:[%s5038_s28 + $0x130] sm:$0xff]  }
 0x124   : > { %4176 = vst [vmem:[%s5052_s30 + $0x80] sm:$0xff] %v3693_v3   ;;  %v1108_v16 = vadd.f32 %v3636_v61, %v1107_v12  ;;  %v4456_v17 = vpop.f32.mrb[22].mxu1  ;;  %v1728_v19 = vadd.f32 %v4504_v15, %v3785_v0  ;;  %v1719_v21 = vpop.f32.mrb[23].mxu0  ;;  %v1833_v30 = vmax.f32 %v1725_v9, 0.0  ;;  %v3800_v0 = vunpack.c.l.bf16 %v4199_v49 }
 0x125   : > { %v1224_v20 = vmax.f32 %v1116_v11, 0.0  ;;  %v1119_v22 = vadd.f32 %v4456_v17, %v3641_v1  ;;  %v1110_v23 = vpop.f32.mrb[23].mxu1  ;;  %v1720_v26 = vadd.f32 %v3781_v6, %v1719_v21  ;;  %v1831_v34 = vmax.f32 %v1717_v14, 0.0  ;;  %v4166_v1 = vld [vmem:[%s5038_s28 + $0xb0] sm:$0xff]  }
 0x126   : > { %v1222_v27 = vmax.f32 %v1108_v16, 0.0  ;;  %v1111_v28 = vadd.f32 %v3637_v7, %v1110_v23  ;;  %v1834_v31 = vmax.f32 %v1728_v19, 0.0  ;;  %v3796_v5 = vunpack.c.l.bf16 %v4198_v54 }
 0x127   : > { %v1225_v32 = vmax.f32 %v1119_v22, 0.0  ;;  %v1832_v35 = vmax.f32 %v1720_v26, 0.0  ;;  %v3656_v9 = vunpack.c.l.bf16 %v4167_v58  ;;  %v3652_v13 = vunpack.c.l.bf16 %v4166_v1 }
 0x128   : > { %v1223_v36 = vmax.f32 %v1111_v28, 0.0  ;;  %v3852_v38 = vpack.c.bf16 %v1834_v31, %v1833_v30  ;;  %v3801_v16 = vunpack.c.h.bf16 %v4199_v49  ;;  %v3657_v17 = vunpack.c.h.bf16 %v4167_v58 }
 0x129   : > { %v3708_v39 = vpack.c.bf16 %v1225_v32, %v1224_v20  ;;  %v3847_v42 = vpack.c.bf16 %v1832_v35, %v1831_v34  ;;  %v4507_v44 = vpop.f32.mrb[24].mxu0  ;;  %v3797_v22 = vunpack.c.h.bf16 %v4198_v54  ;;  %v3653_v23 = vunpack.c.h.bf16 %v4166_v1  ;;  %v4169_v34 = vld [vmem:[%s5038_s28 + $0xc8] sm:$0xff]  }
 0x12a   : > { %v3703_v43 = vpack.c.bf16 %v1223_v36, %v1222_v27  ;;  %v4459_v45 = vpop.f32.mrb[24].mxu1  ;;  %4211 = vst [vmem:[%s5052_s30 + $0x118] sm:$0xff] %v3852_v38   ;;  %v1741_v50 = vadd.f32 %v4507_v44, %v3792_v24  ;;  %v1732_v51 = vpop.f32.mrb[25].mxu0  ;;  %v4201_v24 = vld [vmem:[%s5038_s28 + $0x148] sm:$0xff]  }
 0x12b   : > { %4179 = vst [vmem:[%s5052_s30 + $0x98] sm:$0xff] %v3708_v39   ;;  %v1132_v52 = vadd.f32 %v4459_v45, %v3648_v33  ;;  %v1123_v53 = vpop.f32.mrb[25].mxu1  ;;  %4210 = vst [vmem:[%s5052_s30 + $0x110] sm:$0xff] %v3847_v42   ;;  %v1733_v55 = vadd.f32 %v3788_v29, %v1732_v51  ;;  %v4508_v56 = vpop.f32.mrb[26].mxu0  ;;  %v4200_v29 = vld [vmem:[%s5038_s28 + $0x140] sm:$0xff]  }
 0x12c   : > { %4178 = vst [vmem:[%s5052_s30 + $0x90] sm:$0xff] %v3703_v43   ;;  %v1124_v47 = vadd.f32 %v3644_v37, %v1123_v53  ;;  %v4460_v57 = vpop.f32.mrb[26].mxu1  ;;  %v1744_v59 = vadd.f32 %v4508_v56, %v3793_v40  ;;  %v1735_v61 = vpop.f32.mrb[27].mxu0  ;;  %v1837_v6 = vmax.f32 %v1741_v50, 0.0  ;;  %v3808_v40 = vunpack.c.l.bf16 %v4201_v24 }
 0x12d   : > { %v1228_v60 = vmax.f32 %v1132_v52, 0.0  ;;  %v1135_v62 = vadd.f32 %v4460_v57, %v3649_v41  ;;  %v1126_v63 = vpop.f32.mrb[27].mxu1  ;;  %v1736_v2 = vadd.f32 %v3789_v46, %v1735_v61  ;;  %v1835_v10 = vmax.f32 %v1733_v55, 0.0  ;;  %v4168_v41 = vld [vmem:[%s5038_s28 + $0xc0] sm:$0xff]  }
 0x12e   : > { %v1226_v3 = vmax.f32 %v1124_v47, 0.0  ;;  %v1127_v4 = vadd.f32 %v3645_v48, %v1126_v63  ;;  %v1838_v7 = vmax.f32 %v1744_v59, 0.0  ;;  %v3804_v45 = vunpack.c.l.bf16 %v4200_v29 }
 0x12f   : > { %v1229_v8 = vmax.f32 %v1135_v62, 0.0  ;;  %v1836_v11 = vmax.f32 %v1736_v2, 0.0  ;;  %v3664_v50 = vunpack.c.l.bf16 %v4169_v34  ;;  %v3660_v54 = vunpack.c.l.bf16 %v4168_v41 }
 0x130   : > { %v1227_v12 = vmax.f32 %v1127_v4, 0.0  ;;  %v3862_v14 = vpack.c.bf16 %v1838_v7, %v1837_v6  ;;  %v3809_v47 = vunpack.c.h.bf16 %v4201_v24  ;;  %v3665_v57 = vunpack.c.h.bf16 %v4169_v34 }
 0x131   : > { %v3718_v15 = vpack.c.bf16 %v1229_v8, %v1228_v60  ;;  %v3857_v18 = vpack.c.bf16 %v1836_v11, %v1835_v10  ;;  %v4511_v20 = vpop.f32.mrb[28].mxu0  ;;  %v3805_v62 = vunpack.c.h.bf16 %v4200_v29  ;;  %v3661_v63 = vunpack.c.h.bf16 %v4168_v41  ;;  %v4171_v10 = vld [vmem:[%s5038_s28 + $0xd8] sm:$0xff]  }
 0x132   : > { %v3713_v19 = vpack.c.bf16 %v1227_v12, %v1226_v3  ;;  %v4463_v21 = vpop.f32.mrb[28].mxu1  ;;  %4213 = vst [vmem:[%s5052_s30 + $0x128] sm:$0xff] %v3862_v14   ;;  %v1757_v25 = vadd.f32 %v4511_v20, %v3800_v0  ;;  %v1748_v26 = vpop.f32.mrb[29].mxu0  ;;  %v4203_v0 = vld [vmem:[%s5038_s28 + $0x158] sm:$0xff]  }
 0x133   : > { %4181 = vst [vmem:[%s5052_s30 + $0xa8] sm:$0xff] %v3718_v15   ;;  %v1148_v27 = vadd.f32 %v4463_v21, %v3656_v9  ;;  %v1139_v28 = vpop.f32.mrb[29].mxu1  ;;  %4212 = vst [vmem:[%s5052_s30 + $0x120] sm:$0xff] %v3857_v18   ;;  %v1749_v30 = vadd.f32 %v3796_v5, %v1748_v26  ;;  %v4512_v31 = vpop.f32.mrb[30].mxu0  ;;  %v4202_v5 = vld [vmem:[%s5038_s28 + $0x150] sm:$0xff]  }
 0x134   : > { %4180 = vst [vmem:[%s5052_s30 + $0xa0] sm:$0xff] %v3713_v19   ;;  %v1140_v32 = vadd.f32 %v3652_v13, %v1139_v28  ;;  %v4464_v33 = vpop.f32.mrb[30].mxu1  ;;  %v1760_v35 = vadd.f32 %v4512_v31, %v3801_v16  ;;  %v1751_v37 = vpop.f32.mrb[31].mxu0  ;;  %v1841_v46 = vmax.f32 %v1757_v25, 0.0  ;;  %v3816_v16 = vunpack.c.l.bf16 %v4203_v0 }
 0x135   : > { %v1232_v36 = vmax.f32 %v1148_v27, 0.0  ;;  %v1151_v38 = vadd.f32 %v4464_v33, %v3657_v17  ;;  %v1142_v39 = vpop.f32.mrb[31].mxu1  ;;  %v1752_v42 = vadd.f32 %v3797_v22, %v1751_v37  ;;  %v1839_v51 = vmax.f32 %v1749_v30, 0.0  ;;  %v4170_v17 = vld [vmem:[%s5038_s28 + $0xd0] sm:$0xff]  }
 0x136   : > { %v1230_v43 = vmax.f32 %v1140_v32, 0.0  ;;  %v1143_v44 = vadd.f32 %v3653_v23, %v1142_v39  ;;  %v1842_v48 = vmax.f32 %v1760_v35, 0.0  ;;  %v3812_v21 = vunpack.c.l.bf16 %v4202_v5 }
 0x137   : > { %v1233_v49 = vmax.f32 %v1151_v38, 0.0  ;;  %v1840_v52 = vmax.f32 %v1752_v42, 0.0  ;;  %v3672_v25 = vunpack.c.l.bf16 %v4171_v10  ;;  %v3668_v29 = vunpack.c.l.bf16 %v4170_v17 }
 0x138   : > { %v1231_v53 = vmax.f32 %v1143_v44, 0.0  ;;  %v3872_v55 = vpack.c.bf16 %v1842_v48, %v1841_v46  ;;  %v3817_v32 = vunpack.c.h.bf16 %v4203_v0  ;;  %v3673_v33 = vunpack.c.h.bf16 %v4171_v10 }
 0x139   : > { %v3728_v56 = vpack.c.bf16 %v1233_v49, %v1232_v36  ;;  %v3867_v58 = vpack.c.bf16 %v1840_v52, %v1839_v51  ;;  %v4515_v60 = vpop.f32.mrb[32].mxu0  ;;  %v3813_v38 = vunpack.c.h.bf16 %v4202_v5  ;;  %v3669_v39 = vunpack.c.h.bf16 %v4170_v17  ;;  %v4173_v51 = vld [vmem:[%s5038_s28 + $0xe8] sm:$0xff]  }
 0x13a   : > { %v3723_v59 = vpack.c.bf16 %v1231_v53, %v1230_v43  ;;  %v4467_v61 = vpop.f32.mrb[32].mxu1  ;;  %4215 = vst [vmem:[%s5052_s30 + $0x138] sm:$0xff] %v3872_v55   ;;  %v1773_v1 = vadd.f32 %v4515_v60, %v3808_v40  ;;  %v1764_v2 = vpop.f32.mrb[33].mxu0  ;;  %v4205_v40 = vld [vmem:[%s5038_s28 + $0x168] sm:$0xff]  }
 0x13b   : > { %4183 = vst [vmem:[%s5052_s30 + $0xb8] sm:$0xff] %v3728_v56   ;;  %v1164_v3 = vadd.f32 %v4467_v61, %v3664_v50  ;;  %v1155_v4 = vpop.f32.mrb[33].mxu1  ;;  %4214 = vst [vmem:[%s5052_s30 + $0x130] sm:$0xff] %v3867_v58   ;;  %v1765_v6 = vadd.f32 %v3804_v45, %v1764_v2  ;;  %v4516_v7 = vpop.f32.mrb[34].mxu0  ;;  %v4204_v45 = vld [vmem:[%s5038_s28 + $0x160] sm:$0xff]  }
 0x13c   : > { %4182 = vst [vmem:[%s5052_s30 + $0xb0] sm:$0xff] %v3723_v59   ;;  %v1156_v8 = vadd.f32 %v3660_v54, %v1155_v4  ;;  %v4468_v9 = vpop.f32.mrb[34].mxu1  ;;  %v1776_v11 = vadd.f32 %v4516_v7, %v3809_v47  ;;  %v1767_v13 = vpop.f32.mrb[35].mxu0  ;;  %v1845_v22 = vmax.f32 %v1773_v1, 0.0  ;;  %v3824_v47 = vunpack.c.l.bf16 %v4205_v40 }
 0x13d   : > { %v1236_v12 = vmax.f32 %v1164_v3, 0.0  ;;  %v1167_v14 = vadd.f32 %v4468_v9, %v3665_v57  ;;  %v1158_v15 = vpop.f32.mrb[35].mxu1  ;;  %v1768_v18 = vadd.f32 %v3805_v62, %v1767_v13  ;;  %v1843_v26 = vmax.f32 %v1765_v6, 0.0  ;;  %v4172_v57 = vld [vmem:[%s5038_s28 + $0xe0] sm:$0xff]  }
 0x13e   : > { %v1234_v19 = vmax.f32 %v1156_v8, 0.0  ;;  %v1159_v20 = vadd.f32 %v3661_v63, %v1158_v15  ;;  %v1846_v23 = vmax.f32 %v1776_v11, 0.0  ;;  %v3820_v61 = vunpack.c.l.bf16 %v4204_v45 }
 0x13f   : > { %v1237_v24 = vmax.f32 %v1167_v14, 0.0  ;;  %v1844_v27 = vmax.f32 %v1768_v18, 0.0  ;;  %v3680_v1 = vunpack.c.l.bf16 %v4173_v51  ;;  %v3676_v5 = vunpack.c.l.bf16 %v4172_v57 }
 0x140   : > { %v1235_v28 = vmax.f32 %v1159_v20, 0.0  ;;  %v3882_v30 = vpack.c.bf16 %v1846_v23, %v1845_v22  ;;  %v3825_v8 = vunpack.c.h.bf16 %v4205_v40  ;;  %v3681_v9 = vunpack.c.h.bf16 %v4173_v51 }
 0x141   : > { %v3738_v31 = vpack.c.bf16 %v1237_v24, %v1236_v12  ;;  %v3877_v34 = vpack.c.bf16 %v1844_v27, %v1843_v26  ;;  %v4519_v36 = vpop.f32.mrb[36].mxu0  ;;  %v3821_v14 = vunpack.c.h.bf16 %v4204_v45  ;;  %v3677_v15 = vunpack.c.h.bf16 %v4172_v57  ;;  %v4175_v26 = vld [vmem:[%s5038_s28 + $0xf8] sm:$0xff]  }
 0x142   : > { %v3733_v35 = vpack.c.bf16 %v1235_v28, %v1234_v19  ;;  %v4471_v37 = vpop.f32.mrb[36].mxu1  ;;  %4217 = vst [vmem:[%s5052_s30 + $0x148] sm:$0xff] %v3882_v30   ;;  %v1789_v41 = vadd.f32 %v4519_v36, %v3816_v16  ;;  %v1780_v42 = vpop.f32.mrb[37].mxu0  ;;  %v4207_v16 = vld [vmem:[%s5038_s28 + $0x178] sm:$0xff]  }
 0x143   : > { %4185 = vst [vmem:[%s5052_s30 + $0xc8] sm:$0xff] %v3738_v31   ;;  %v1180_v43 = vadd.f32 %v4471_v37, %v3672_v25  ;;  %v1171_v44 = vpop.f32.mrb[37].mxu1  ;;  %4216 = vst [vmem:[%s5052_s30 + $0x140] sm:$0xff] %v3877_v34   ;;  %v1781_v46 = vadd.f32 %v3812_v21, %v1780_v42  ;;  %v4520_v48 = vpop.f32.mrb[38].mxu0  ;;  %v4206_v21 = vld [vmem:[%s5038_s28 + $0x170] sm:$0xff]  }
 0x144   : > { %4184 = vst [vmem:[%s5052_s30 + $0xc0] sm:$0xff] %v3733_v35   ;;  %v1172_v49 = vadd.f32 %v3668_v29, %v1171_v44  ;;  %v4472_v50 = vpop.f32.mrb[38].mxu1  ;;  %v1792_v52 = vadd.f32 %v4520_v48, %v3817_v32  ;;  %v1783_v54 = vpop.f32.mrb[39].mxu0  ;;  %v1849_v62 = vmax.f32 %v1789_v41, 0.0  ;;  %v3832_v32 = vunpack.c.l.bf16 %v4207_v16 }
 0x145   : > { %v1240_v53 = vmax.f32 %v1180_v43, 0.0  ;;  %v1183_v55 = vadd.f32 %v4472_v50, %v3673_v33  ;;  %v1174_v56 = vpop.f32.mrb[39].mxu1  ;;  %v1784_v58 = vadd.f32 %v3813_v38, %v1783_v54  ;;  %v1847_v2 = vmax.f32 %v1781_v46, 0.0  ;;  %v4174_v33 = vld [vmem:[%s5038_s28 + $0xf0] sm:$0xff]  }
 0x146   : > { %v1238_v59 = vmax.f32 %v1172_v49, 0.0  ;;  %v1175_v60 = vadd.f32 %v3669_v39, %v1174_v56  ;;  %v1850_v63 = vmax.f32 %v1792_v52, 0.0  ;;  %v3828_v37 = vunpack.c.l.bf16 %v4206_v21 }
 0x147   : > { %v1241_v0 = vmax.f32 %v1183_v55, 0.0  ;;  %v1848_v3 = vmax.f32 %v1784_v58, 0.0  ;;  %v3688_v41 = vunpack.c.l.bf16 %v4175_v26  ;;  %v3684_v45 = vunpack.c.l.bf16 %v4174_v33 }
 0x148   : > { %v1239_v4 = vmax.f32 %v1175_v60, 0.0  ;;  %v3892_v6 = vpack.c.bf16 %v1850_v63, %v1849_v62  ;;  %v3833_v49 = vunpack.c.h.bf16 %v4207_v16  ;;  %v3689_v50 = vunpack.c.h.bf16 %v4175_v26  ;;  %v4256_v60 = vld [vmem:[%s5038_s28 + $0x200] sm:$0xff]  }
 0x149   : > { %v3748_v7 = vpack.c.bf16 %v1241_v0, %v1240_v53  ;;  %v3887_v10 = vpack.c.bf16 %v1848_v3, %v1847_v2  ;;  %v4523_v12 = vpop.f32.mrb[40].mxu0  ;;  %v3829_v55 = vunpack.c.h.bf16 %v4206_v21  ;;  %v3685_v56 = vunpack.c.h.bf16 %v4174_v33  ;;  %v4257_v33 = vld [vmem:[%s5038_s28 + $0x208] sm:$0xff]  }
 0x14a   : > { %v3743_v11 = vpack.c.bf16 %v1239_v4, %v1238_v59  ;;  %v4475_v13 = vpop.f32.mrb[40].mxu1  ;;  %4219 = vst [vmem:[%s5052_s30 + $0x158] sm:$0xff] %v3892_v6   ;;  %v1805_v17 = vadd.f32 %v4523_v12, %v3824_v47  ;;  %v1796_v18 = vpop.f32.mrb[41].mxu0 }
 0x14b   : > { %4187 = vst [vmem:[%s5052_s30 + $0xd8] sm:$0xff] %v3748_v7   ;;  %v1196_v19 = vadd.f32 %v4475_v13, %v3680_v1  ;;  %v1187_v20 = vpop.f32.mrb[41].mxu1  ;;  %4218 = vst [vmem:[%s5052_s30 + $0x150] sm:$0xff] %v3887_v10   ;;  %v1797_v22 = vadd.f32 %v3820_v61, %v1796_v18  ;;  %v4524_v23 = vpop.f32.mrb[42].mxu0  ;;  %v4225_v1 = vld [vmem:[%s5038_s28 + $0x188] sm:$0xff]   ;;  %v4224_v7 = vld [vmem:[%s5038_s28 + $0x180] sm:$0xff]  }
 0x14c   : > { %4186 = vst [vmem:[%s5052_s30 + $0xd0] sm:$0xff] %v3743_v11   ;;  %v1188_v24 = vadd.f32 %v3676_v5, %v1187_v20  ;;  %v4476_v25 = vpop.f32.mrb[42].mxu1  ;;  %v1808_v27 = vadd.f32 %v4524_v23, %v3825_v8  ;;  %v1799_v29 = vpop.f32.mrb[43].mxu0  ;;  %v1853_v38 = vmax.f32 %v1805_v17, 0.0  ;;  %v4060_v11 = vunpack.c.l.bf16 %v4256_v60 }
 0x14d   : > { %v1244_v28 = vmax.f32 %v1196_v19, 0.0  ;;  %v1199_v30 = vadd.f32 %v4476_v25, %v3681_v9  ;;  %v1190_v31 = vpop.f32.mrb[43].mxu1  ;;  %v1800_v34 = vadd.f32 %v3821_v14, %v1799_v29  ;;  %v1851_v42 = vmax.f32 %v1797_v22, 0.0 }
 0x14e   : > { %v1242_v35 = vmax.f32 %v1188_v24, 0.0  ;;  %v1191_v36 = vadd.f32 %v3677_v15, %v1190_v31  ;;  %v1854_v39 = vmax.f32 %v1808_v27, 0.0  ;;  %v3920_v15 = vunpack.c.l.bf16 %v4225_v1 }
 0x14f   : > { %v1245_v40 = vmax.f32 %v1199_v30, 0.0  ;;  %v1852_v43 = vmax.f32 %v1800_v34, 0.0  ;;  %v3916_v19 = vunpack.c.l.bf16 %v4224_v7  ;;  %v4061_v22 = vunpack.c.h.bf16 %v4256_v60 }
 0x150   : > { %v1243_v44 = vmax.f32 %v1191_v36, 0.0  ;;  %v3902_v46 = vpack.c.bf16 %v1854_v39, %v1853_v38  ;;  %v3921_v23 = vunpack.c.h.bf16 %v4225_v1  ;;  %v4258_v1 = vld [vmem:[%s5038_s28 + $0x210] sm:$0xff]  }
 0x151   : > { %v3758_v48 = vpack.c.bf16 %v1245_v40, %v1244_v28  ;;  %v3897_v51 = vpack.c.bf16 %v1852_v43, %v1851_v42  ;;  %v4527_v53 = vpop.f32.mrb[44].mxu0  ;;  %v3917_v28 = vunpack.c.h.bf16 %v4224_v7  ;;  %v4226_v43 = vld [vmem:[%s5038_s28 + $0x190] sm:$0xff]  }
 0x152   : > { %v3753_v52 = vpack.c.bf16 %v1243_v44, %v1242_v35  ;;  %v4479_v54 = vpop.f32.mrb[44].mxu1  ;;  %4221 = vst [vmem:[%s5052_s30 + $0x168] sm:$0xff] %v3902_v46   ;;  %v1821_v47 = vadd.f32 %v4527_v53, %v3832_v32  ;;  %v1812_v57 = vpop.f32.mrb[45].mxu0  ;;  %v4064_v46 = vunpack.c.l.bf16 %v4257_v33  ;;  %v3924_v53 = vunpack.c.l.bf16 %v4226_v43 }
 0x153   : > { %4189 = vst [vmem:[%s5052_s30 + $0xe8] sm:$0xff] %v3758_v48   ;;  %v1212_v58 = vadd.f32 %v4479_v54, %v3688_v41  ;;  %v1203_v59 = vpop.f32.mrb[45].mxu1  ;;  %4220 = vst [vmem:[%s5052_s30 + $0x160] sm:$0xff] %v3897_v51   ;;  %v1813_v61 = vadd.f32 %v3828_v37, %v1812_v57  ;;  %v4528_v62 = vpop.f32.mrb[46].mxu0  ;;  %v4227_v37 = vld [vmem:[%s5038_s28 + $0x198] sm:$0xff]   ;;  %v3925_v60 = vunpack.c.h.bf16 %v4226_v43  ;;  %v4230_v43 = vld [vmem:[%s5038_s28 + $0x1b0] sm:$0xff]  }
 0x154   : > { %4188 = vst [vmem:[%s5052_s30 + $0xe0] sm:$0xff] %v3753_v52   ;;  %v1204_v63 = vadd.f32 %v3684_v45, %v1203_v59  ;;  %v4480_v0 = vpop.f32.mrb[46].mxu1  ;;  %v1824_v2 = vadd.f32 %v4528_v62, %v3833_v49  ;;  %v1815_v4 = vpop.f32.mrb[47].mxu0  ;;  %v1857_v12 = vmax.f32 %v1821_v47, 0.0  ;;  %v3928_v51 = vunpack.c.l.bf16 %v4227_v37 }
 0x155   : > { %v1248_v3 = vmax.f32 %v1212_v58, 0.0  ;;  %v1215_v5 = vadd.f32 %v4480_v0, %v3689_v50  ;;  %v1206_v6 = vpop.f32.mrb[47].mxu1  ;;  %v1816_v8 = vadd.f32 %v3829_v55, %v1815_v4  ;;  %v1855_v16 = vmax.f32 %v1813_v61, 0.0 }
 0x156   : > { %v1246_v9 = vmax.f32 %v1204_v63, 0.0  ;;  %v1207_v10 = vadd.f32 %v3685_v56, %v1206_v6  ;;  %v1858_v13 = vmax.f32 %v1824_v2, 0.0  ;;  %v4065_v56 = vunpack.c.h.bf16 %v4257_v33  ;;  %v4259_v33 = vld [vmem:[%s5038_s28 + $0x218] sm:$0xff]  }
 0x157   : > { %v1249_v14 = vmax.f32 %v1215_v5, 0.0  ;;  %v1856_v17 = vmax.f32 %v1816_v8, 0.0  ;;  %v3929_v47 = vunpack.c.h.bf16 %v4227_v37  ;;  %v4229_v5 = vld [vmem:[%s5038_s28 + $0x1a8] sm:$0xff]   ;;  %v4231_v37 = vld [vmem:[%s5038_s28 + $0x1b8] sm:$0xff]  }
 0x158   : > { %v1247_v18 = vmax.f32 %v1207_v10, 0.0  ;;  %v3912_v20 = vpack.c.bf16 %v1858_v13, %v1857_v12 }
 0x159   : > { %v3768_v21 = vpack.c.bf16 %v1249_v14, %v1248_v3  ;;  %v3907_v24 = vpack.c.bf16 %v1856_v17, %v1855_v16  ;;  %v2829_v26 = vpop.f32.mrb[48].mxu0  ;;  %v4068_v14 = vunpack.c.l.bf16 %v4258_v1 }
 0x15a   : > { %v3763_v25 = vpack.c.bf16 %v1247_v18, %v1246_v9  ;;  %v4547_v27 = vpop.f32.mrb[48].mxu1  ;;  %4223 = vst [vmem:[%s5052_s30 + $0x178] sm:$0xff] %v3912_v20   ;;  %v2830_v29 = vadd.f32 %v4060_v11, %v2829_v26  ;;  %v4595_v30 = vpop.f32.mrb[49].mxu0  ;;  %v4228_v11 = vld [vmem:[%s5038_s28 + $0x1a0] sm:$0xff]   ;;  %v3936_v18 = vunpack.c.l.bf16 %v4229_v5 }
 0x15b   : > { %4191 = vst [vmem:[%s5052_s30 + $0xf8] sm:$0xff] %v3768_v21   ;;  %v2318_v31 = vadd.f32 %v4547_v27, %v3920_v15  ;;  %v2309_v32 = vpop.f32.mrb[49].mxu1  ;;  %4222 = vst [vmem:[%s5052_s30 + $0x170] sm:$0xff] %v3907_v24   ;;  %v2832_v34 = vpop.f32.mrb[50].mxu0  ;;  %v3932_v20 = vunpack.c.l.bf16 %v4228_v11  ;;  %v3937_v24 = vunpack.c.h.bf16 %v4229_v5  ;;  %v4233_v5 = vld [vmem:[%s5038_s28 + $0x1c8] sm:$0xff]  }
 0x15c   : > { %4190 = vst [vmem:[%s5052_s30 + $0xf0] sm:$0xff] %v3763_v25   ;;  %v2310_v35 = vadd.f32 %v3916_v19, %v2309_v32  ;;  %v4548_v36 = vpop.f32.mrb[50].mxu1  ;;  %v2833_v38 = vadd.f32 %v4061_v22, %v2832_v34  ;;  %v4596_v40 = vpop.f32.mrb[51].mxu0  ;;  %v2899_v48 = vmax.f32 %v2830_v29, 0.0 }
 0x15d   : > { %v2438_v39 = vmax.f32 %v2318_v31, 0.0  ;;  %v2321_v41 = vadd.f32 %v4548_v36, %v3921_v23  ;;  %v2312_v42 = vpop.f32.mrb[51].mxu1  ;;  %v4069_v23 = vunpack.c.h.bf16 %v4258_v1  ;;  %v4260_v1 = vld [vmem:[%s5038_s28 + $0x220] sm:$0xff]  }
 0x15e   : > { %v2436_v44 = vmax.f32 %v2310_v35, 0.0  ;;  %v2313_v45 = vadd.f32 %v3917_v28, %v2312_v42  ;;  %v2900_v49 = vmax.f32 %v2833_v38, 0.0  ;;  %v3933_v28 = vunpack.c.h.bf16 %v4228_v11  ;;  %v4232_v11 = vld [vmem:[%s5038_s28 + $0x1c0] sm:$0xff]  }
 0x15f   : > { %v2439_v50 = vmax.f32 %v2321_v41, 0.0 }
 0x160   : > { %v2437_v52 = vmax.f32 %v2313_v45, 0.0  ;;  %v4093_v54 = vpack.c.bf16 %v2900_v49, %v2899_v48 }
 0x161   : > { %v3986_v55 = vpack.c.bf16 %v2439_v50, %v2438_v39  ;;  %v2837_v58 = vpop.f32.mrb[52].mxu0 }
 0x162   : > { %v3981_v57 = vpack.c.bf16 %v2437_v52, %v2436_v44  ;;  %v4551_v59 = vpop.f32.mrb[52].mxu1  ;;  %4264 = vst [vmem:[%s5052_s30 + $0x200] sm:$0xff] %v4093_v54   ;;  %v2838_v61 = vadd.f32 %v4064_v46, %v2837_v58  ;;  %v4599_v62 = vpop.f32.mrb[53].mxu0  ;;  %v4072_v46 = vunpack.c.l.bf16 %v4259_v33 }
 0x163   : > { %4241 = vst [vmem:[%s5052_s30 + $0x188] sm:$0xff] %v3986_v55   ;;  %v2334_v63 = vadd.f32 %v4551_v59, %v3928_v51  ;;  %v2325_v0 = vpop.f32.mrb[53].mxu1  ;;  %v2840_v2 = vpop.f32.mrb[54].mxu0  ;;  %v3944_v51 = vunpack.c.l.bf16 %v4231_v37 }
 0x164   : > { %4240 = vst [vmem:[%s5052_s30 + $0x180] sm:$0xff] %v3981_v57   ;;  %v2326_v3 = vadd.f32 %v3924_v53, %v2325_v0  ;;  %v4552_v4 = vpop.f32.mrb[54].mxu1  ;;  %v2841_v6 = vadd.f32 %v4065_v56, %v2840_v2  ;;  %v4600_v8 = vpop.f32.mrb[55].mxu0  ;;  %v2901_v15 = vmax.f32 %v2838_v61, 0.0  ;;  %v3940_v53 = vunpack.c.l.bf16 %v4230_v43 }
 0x165   : > { %v2442_v7 = vmax.f32 %v2334_v63, 0.0  ;;  %v2337_v9 = vadd.f32 %v4552_v4, %v3929_v47  ;;  %v2328_v10 = vpop.f32.mrb[55].mxu1  ;;  %v4073_v56 = vunpack.c.h.bf16 %v4259_v33  ;;  %v3945_v47 = vunpack.c.h.bf16 %v4231_v37  ;;  %v4261_v33 = vld [vmem:[%s5038_s28 + $0x228] sm:$0xff]   ;;  %v4235_v37 = vld [vmem:[%s5038_s28 + $0x1d8] sm:$0xff]  }
 0x166   : > { %v2440_v12 = vmax.f32 %v2326_v3, 0.0  ;;  %v2329_v13 = vadd.f32 %v3925_v60, %v2328_v10  ;;  %v2902_v16 = vmax.f32 %v2841_v6, 0.0  ;;  %v3941_v60 = vunpack.c.h.bf16 %v4230_v43  ;;  %v4234_v43 = vld [vmem:[%s5038_s28 + $0x1d0] sm:$0xff]  }
 0x167   : > { %v2443_v17 = vmax.f32 %v2337_v9, 0.0 }
 0x168   : > { %v2441_v19 = vmax.f32 %v2329_v13, 0.0  ;;  %v4098_v21 = vpack.c.bf16 %v2902_v16, %v2901_v15 }
 0x169   : > { %v3996_v22 = vpack.c.bf16 %v2443_v17, %v2442_v7  ;;  %v2845_v26 = vpop.f32.mrb[56].mxu0 }
 0x16a   : > { %v3991_v25 = vpack.c.bf16 %v2441_v19, %v2440_v12  ;;  %v4555_v27 = vpop.f32.mrb[56].mxu1  ;;  %4265 = vst [vmem:[%s5052_s30 + $0x208] sm:$0xff] %v4098_v21   ;;  %v2846_v29 = vadd.f32 %v4068_v14, %v2845_v26  ;;  %v4603_v30 = vpop.f32.mrb[57].mxu0  ;;  %v4076_v14 = vunpack.c.l.bf16 %v4260_v1 }
 0x16b   : > { %4243 = vst [vmem:[%s5052_s30 + $0x198] sm:$0xff] %v3996_v22   ;;  %v2350_v31 = vadd.f32 %v4555_v27, %v3936_v18  ;;  %v2341_v32 = vpop.f32.mrb[57].mxu1  ;;  %v2848_v34 = vpop.f32.mrb[58].mxu0  ;;  %v3952_v18 = vunpack.c.l.bf16 %v4233_v5 }
 0x16c   : > { %4242 = vst [vmem:[%s5052_s30 + $0x190] sm:$0xff] %v3991_v25   ;;  %v2342_v35 = vadd.f32 %v3932_v20, %v2341_v32  ;;  %v4556_v36 = vpop.f32.mrb[58].mxu1  ;;  %v2849_v38 = vadd.f32 %v4069_v23, %v2848_v34  ;;  %v4604_v40 = vpop.f32.mrb[59].mxu0  ;;  %v2903_v48 = vmax.f32 %v2846_v29, 0.0  ;;  %v3948_v20 = vunpack.c.l.bf16 %v4232_v11 }
 0x16d   : > { %v2446_v39 = vmax.f32 %v2350_v31, 0.0  ;;  %v2353_v41 = vadd.f32 %v4556_v36, %v3937_v24  ;;  %v2344_v42 = vpop.f32.mrb[59].mxu1  ;;  %v4077_v23 = vunpack.c.h.bf16 %v4260_v1  ;;  %v3953_v24 = vunpack.c.h.bf16 %v4233_v5  ;;  %v4262_v1 = vld [vmem:[%s5038_s28 + $0x230] sm:$0xff]   ;;  %v4237_v5 = vld [vmem:[%s5038_s28 + $0x1e8] sm:$0xff]  }
 0x16e   : > { %v2444_v44 = vmax.f32 %v2342_v35, 0.0  ;;  %v2345_v45 = vadd.f32 %v3933_v28, %v2344_v42  ;;  %v2904_v49 = vmax.f32 %v2849_v38, 0.0  ;;  %v3949_v28 = vunpack.c.h.bf16 %v4232_v11  ;;  %v4236_v11 = vld [vmem:[%s5038_s28 + $0x1e0] sm:$0xff]  }
 0x16f   : > { %v2447_v50 = vmax.f32 %v2353_v41, 0.0 }
 0x170   : > { %v2445_v52 = vmax.f32 %v2345_v45, 0.0  ;;  %v4103_v54 = vpack.c.bf16 %v2904_v49, %v2903_v48 }
 0x171   : > { %v4006_v55 = vpack.c.bf16 %v2447_v50, %v2446_v39  ;;  %v2853_v58 = vpop.f32.mrb[60].mxu0 }
 0x172   : > { %v4001_v57 = vpack.c.bf16 %v2445_v52, %v2444_v44  ;;  %v4559_v59 = vpop.f32.mrb[60].mxu1  ;;  %4266 = vst [vmem:[%s5052_s30 + $0x210] sm:$0xff] %v4103_v54   ;;  %v2854_v61 = vadd.f32 %v4072_v46, %v2853_v58  ;;  %v4607_v62 = vpop.f32.mrb[61].mxu0  ;;  %v4080_v46 = vunpack.c.l.bf16 %v4261_v33 }
 0x173   : > { %4245 = vst [vmem:[%s5052_s30 + $0x1a8] sm:$0xff] %v4006_v55   ;;  %v2366_v63 = vadd.f32 %v4559_v59, %v3944_v51  ;;  %v2357_v0 = vpop.f32.mrb[61].mxu1  ;;  %v2856_v2 = vpop.f32.mrb[62].mxu0  ;;  %v3960_v51 = vunpack.c.l.bf16 %v4235_v37 }
 0x174   : > { %4244 = vst [vmem:[%s5052_s30 + $0x1a0] sm:$0xff] %v4001_v57   ;;  %v2358_v3 = vadd.f32 %v3940_v53, %v2357_v0  ;;  %v4560_v4 = vpop.f32.mrb[62].mxu1  ;;  %v2857_v6 = vadd.f32 %v4073_v56, %v2856_v2  ;;  %v4608_v8 = vpop.f32.mrb[63].mxu0  ;;  %v2905_v15 = vmax.f32 %v2854_v61, 0.0  ;;  %v3956_v53 = vunpack.c.l.bf16 %v4234_v43 }
 0x175   : > { %v2450_v7 = vmax.f32 %v2366_v63, 0.0  ;;  %v2369_v9 = vadd.f32 %v4560_v4, %v3945_v47  ;;  %v2360_v10 = vpop.f32.mrb[63].mxu1  ;;  %v4081_v56 = vunpack.c.h.bf16 %v4261_v33  ;;  %v3961_v47 = vunpack.c.h.bf16 %v4235_v37  ;;  %v4263_v33 = vld [vmem:[%s5038_s28 + $0x238] sm:$0xff]  }
 0x176   : > { %v2448_v12 = vmax.f32 %v2358_v3, 0.0  ;;  %v2361_v13 = vadd.f32 %v3941_v60, %v2360_v10  ;;  %v2906_v16 = vmax.f32 %v2857_v6, 0.0  ;;  %v3957_v60 = vunpack.c.h.bf16 %v4234_v43  ;;  %v4239_v37 = vld [vmem:[%s5038_s28 + $0x1f8] sm:$0xff]   ;;  %v4238_v43 = vld [vmem:[%s5038_s28 + $0x1f0] sm:$0xff]  }
 0x177   : > { %v2451_v17 = vmax.f32 %v2369_v9, 0.0 }
 0x178   : > { %v2449_v19 = vmax.f32 %v2361_v13, 0.0  ;;  %v4108_v21 = vpack.c.bf16 %v2906_v16, %v2905_v15 }
 0x179   : > { %v4016_v22 = vpack.c.bf16 %v2451_v17, %v2450_v7  ;;  %v2861_v26 = vpop.f32.mrb[64].mxu0 }
 0x17a   : > { %v4011_v25 = vpack.c.bf16 %v2449_v19, %v2448_v12  ;;  %v4563_v27 = vpop.f32.mrb[64].mxu1  ;;  %4267 = vst [vmem:[%s5052_s30 + $0x218] sm:$0xff] %v4108_v21   ;;  %v2862_v29 = vadd.f32 %v4076_v14, %v2861_v26  ;;  %v4611_v30 = vpop.f32.mrb[65].mxu0  ;;  %v4084_v14 = vunpack.c.l.bf16 %v4262_v1 }
 0x17b   : > { %4247 = vst [vmem:[%s5052_s30 + $0x1b8] sm:$0xff] %v4016_v22   ;;  %v2382_v31 = vadd.f32 %v4563_v27, %v3952_v18  ;;  %v2373_v32 = vpop.f32.mrb[65].mxu1  ;;  %v2864_v34 = vpop.f32.mrb[66].mxu0  ;;  %v3968_v18 = vunpack.c.l.bf16 %v4237_v5 }
 0x17c   : > { %4246 = vst [vmem:[%s5052_s30 + $0x1b0] sm:$0xff] %v4011_v25   ;;  %v2374_v35 = vadd.f32 %v3948_v20, %v2373_v32  ;;  %v4564_v36 = vpop.f32.mrb[66].mxu1  ;;  %v2865_v38 = vadd.f32 %v4077_v23, %v2864_v34  ;;  %v4612_v40 = vpop.f32.mrb[67].mxu0  ;;  %v2907_v48 = vmax.f32 %v2862_v29, 0.0  ;;  %v3964_v20 = vunpack.c.l.bf16 %v4236_v11 }
 0x17d   : > { %v2454_v39 = vmax.f32 %v2382_v31, 0.0  ;;  %v2385_v41 = vadd.f32 %v4564_v36, %v3953_v24  ;;  %v2376_v42 = vpop.f32.mrb[67].mxu1  ;;  %v4085_v23 = vunpack.c.h.bf16 %v4262_v1  ;;  %v3969_v24 = vunpack.c.h.bf16 %v4237_v5 }
 0x17e   : > { %v2452_v44 = vmax.f32 %v2374_v35, 0.0  ;;  %v2377_v45 = vadd.f32 %v3949_v28, %v2376_v42  ;;  %v2908_v49 = vmax.f32 %v2865_v38, 0.0  ;;  %v3965_v28 = vunpack.c.h.bf16 %v4236_v11 }
 0x17f   : > { %v2455_v50 = vmax.f32 %v2385_v41, 0.0 }
 0x180   : > { %v2453_v52 = vmax.f32 %v2377_v45, 0.0  ;;  %v4113_v54 = vpack.c.bf16 %v2908_v49, %v2907_v48 }
 0x181   : > { %v4026_v55 = vpack.c.bf16 %v2455_v50, %v2454_v39  ;;  %v2869_v58 = vpop.f32.mrb[68].mxu0 }
 0x182   : > { %v4021_v57 = vpack.c.bf16 %v2453_v52, %v2452_v44  ;;  %v4567_v59 = vpop.f32.mrb[68].mxu1  ;;  %4268 = vst [vmem:[%s5052_s30 + $0x220] sm:$0xff] %v4113_v54   ;;  %v2870_v61 = vadd.f32 %v4080_v46, %v2869_v58  ;;  %v4615_v62 = vpop.f32.mrb[69].mxu0  ;;  %v4088_v46 = vunpack.c.l.bf16 %v4263_v33 }
 0x183   : > { %4249 = vst [vmem:[%s5052_s30 + $0x1c8] sm:$0xff] %v4026_v55   ;;  %v2398_v63 = vadd.f32 %v4567_v59, %v3960_v51  ;;  %v2389_v0 = vpop.f32.mrb[69].mxu1  ;;  %v2872_v2 = vpop.f32.mrb[70].mxu0  ;;  %v3976_v51 = vunpack.c.l.bf16 %v4239_v37 }
 0x184   : > { %4248 = vst [vmem:[%s5052_s30 + $0x1c0] sm:$0xff] %v4021_v57   ;;  %v2390_v3 = vadd.f32 %v3956_v53, %v2389_v0  ;;  %v4568_v4 = vpop.f32.mrb[70].mxu1  ;;  %v2873_v6 = vadd.f32 %v4081_v56, %v2872_v2  ;;  %v4616_v8 = vpop.f32.mrb[71].mxu0  ;;  %v2909_v15 = vmax.f32 %v2870_v61, 0.0  ;;  %v3972_v53 = vunpack.c.l.bf16 %v4238_v43 }
 0x185   : > { %v2458_v7 = vmax.f32 %v2398_v63, 0.0  ;;  %v2401_v9 = vadd.f32 %v4568_v4, %v3961_v47  ;;  %v2392_v10 = vpop.f32.mrb[71].mxu1  ;;  %v4089_v56 = vunpack.c.h.bf16 %v4263_v33  ;;  %v3977_v47 = vunpack.c.h.bf16 %v4239_v37  ;;  %v2677_v4 = vld [vmem:[%s5038_s28 + $0x240] sm:$0x3] }
 0x186   : > { %v2456_v12 = vmax.f32 %v2390_v3, 0.0  ;;  %v2393_v13 = vadd.f32 %v3957_v60, %v2392_v10  ;;  %v2910_v16 = vmax.f32 %v2873_v6, 0.0  ;;  %v3973_v60 = vunpack.c.h.bf16 %v4238_v43 }
 0x187   : > { %v2459_v17 = vmax.f32 %v2401_v9, 0.0 }
 0x188   : > { %v2457_v19 = vmax.f32 %v2393_v13, 0.0  ;;  %v4118_v21 = vpack.c.bf16 %v2910_v16, %v2909_v15  ;;  %v2694_v15 = vunpack.c.l.bf16 %v2677_v4 }
 0x189   : > { %v4036_v22 = vpack.c.bf16 %v2459_v17, %v2458_v7  ;;  %v2877_v26 = vpop.f32.mrb[72].mxu0 }
 0x18a   : > { %v4031_v25 = vpack.c.bf16 %v2457_v19, %v2456_v12  ;;  %v4571_v27 = vpop.f32.mrb[72].mxu1  ;;  %4269 = vst [vmem:[%s5052_s30 + $0x228] sm:$0xff] %v4118_v21   ;;  %v2878_v29 = vadd.f32 %v4084_v14, %v2877_v26  ;;  %v4619_v30 = vpop.f32.mrb[73].mxu0 }
 0x18b   : > { %4251 = vst [vmem:[%s5052_s30 + $0x1d8] sm:$0xff] %v4036_v22   ;;  %v2414_v31 = vadd.f32 %v4571_v27, %v3968_v18  ;;  %v2405_v32 = vpop.f32.mrb[73].mxu1  ;;  %v2880_v34 = vpop.f32.mrb[74].mxu0 }
 0x18c   : > { %4250 = vst [vmem:[%s5052_s30 + $0x1d0] sm:$0xff] %v4031_v25   ;;  %v2406_v35 = vadd.f32 %v3964_v20, %v2405_v32  ;;  %v4572_v36 = vpop.f32.mrb[74].mxu1  ;;  %v2881_v38 = vadd.f32 %v4085_v23, %v2880_v34  ;;  %v4620_v40 = vpop.f32.mrb[75].mxu0  ;;  %v2911_v48 = vmax.f32 %v2878_v29, 0.0 }
 0x18d   : > { %v2462_v39 = vmax.f32 %v2414_v31, 0.0  ;;  %v2417_v41 = vadd.f32 %v4572_v36, %v3969_v24  ;;  %v2408_v42 = vpop.f32.mrb[75].mxu1 }
 0x18e   : > { %v2460_v44 = vmax.f32 %v2406_v35, 0.0  ;;  %v2409_v45 = vadd.f32 %v3965_v28, %v2408_v42  ;;  %v2912_v49 = vmax.f32 %v2881_v38, 0.0 }
 0x18f   : > { %v2463_v50 = vmax.f32 %v2417_v41, 0.0 }
 0x190   : > { %v2461_v52 = vmax.f32 %v2409_v45, 0.0  ;;  %v4123_v54 = vpack.c.bf16 %v2912_v49, %v2911_v48 }
 0x191   : > { %v4046_v55 = vpack.c.bf16 %v2463_v50, %v2462_v39  ;;  %v2885_v58 = vpop.f32.mrb[76].mxu0 }
 0x192   : > { %v4041_v57 = vpack.c.bf16 %v2461_v52, %v2460_v44  ;;  %v4575_v59 = vpop.f32.mrb[76].mxu1  ;;  %4270 = vst [vmem:[%s5052_s30 + $0x230] sm:$0xff] %v4123_v54   ;;  %v2886_v61 = vadd.f32 %v4088_v46, %v2885_v58  ;;  %v4623_v62 = vpop.f32.mrb[77].mxu0 }
 0x193   : > { %4253 = vst [vmem:[%s5052_s30 + $0x1e8] sm:$0xff] %v4046_v55   ;;  %v2430_v63 = vadd.f32 %v4575_v59, %v3976_v51  ;;  %v2421_v0 = vpop.f32.mrb[77].mxu1  ;;  %v2888_v1 = vpop.f32.mrb[78].mxu0 }
 0x194   : > { %4252 = vst [vmem:[%s5052_s30 + $0x1e0] sm:$0xff] %v4041_v57   ;;  %v2422_v2 = vadd.f32 %v3972_v53, %v2421_v0  ;;  %v4576_v3 = vpop.f32.mrb[78].mxu1  ;;  %v2889_v5 = vadd.f32 %v4089_v56, %v2888_v1  ;;  %v4624_v7 = vpop.f32.mrb[79].mxu0  ;;  %v2913_v12 = vmax.f32 %v2886_v61, 0.0 }
 0x195   : > { %v2466_v6 = vmax.f32 %v2430_v63, 0.0  ;;  %v2433_v8 = vadd.f32 %v4576_v3, %v3977_v47  ;;  %v2424_v9 = vpop.f32.mrb[79].mxu1 }
 0x196   : > { %v2464_v10 = vmax.f32 %v2422_v2, 0.0  ;;  %v2425_v11 = vadd.f32 %v3973_v60, %v2424_v9  ;;  %v2914_v13 = vmax.f32 %v2889_v5, 0.0 }
 0x197   : > { %v2467_v14 = vmax.f32 %v2433_v8, 0.0 }
 0x198   : > { %v2465_v16 = vmax.f32 %v2425_v11, 0.0  ;;  %v4128_v17 = vpack.c.bf16 %v2914_v13, %v2913_v12 }
 0x199   : > { %v4056_v18 = vpack.c.bf16 %v2467_v14, %v2466_v6  ;;  %v2893_v20 = vpop.f32.mrb[80].mxu0 }
 0x19a   : > { %v4051_v19 = vpack.c.bf16 %v2465_v16, %v2464_v10  ;;  %4271 = vst [vmem:[%s5052_s30 + $0x238] sm:$0xff] %v4128_v17   ;;  %v2894_v21 = vadd.f32 %v2893_v20, %v2694_v15  ;;  %v4627_v22 = vpop.f32.mrb[81].mxu0 }
 0x19b   : > { %4255 = vst [vmem:[%s5052_s30 + $0x1f8] sm:$0xff] %v4056_v18   ;;  %v2896_v23 = vpop.f32.mrb[82].mxu0 }
 0x19c   : > { %4254 = vst [vmem:[%s5052_s30 + $0x1f0] sm:$0xff] %v4051_v19   ;;  %v2915_v24 = vmax.f32 %v2894_v21, 0.0  ;;  %v4628_v25 = vpop.f32.mrb[83].mxu0 }
 0x19e   : > { %v3481_v26 = vpack.c.bf16 %v2915_v24, %v2915_v24 }
 0x1a0   : > { %3001 = vst [vmem:[%s5052_s30 + $0x240] sm:$0x3] %v3481_v26 }
 0x1a1 PF: > { %s13_s12 = sadd.s32 1, %s4775_s12  }
 0x1a2   : > { %p10_p4 = scmp.ge.s32.totalorder %s13_s12, 4  }
 0x1a4   :  { %12 = sbr.rel (!%p10_p4) target bundleno = 1 (0x1), region = 65 }

// kernel: resnet_forward.11
= control target key start
LH: loop header
LB: loop body
LE: loop exit
PB: predicated region body
PF: predicated region fallthrough
CT: control target
= control target key end

     0   :  { %s1414_s9 = smov 0   ;;  %s1550_s0 = inlined_call_operand.vmem [shape: bf16[2,324,128], index: 0, kind: input, shape index: {}]   ;;  %s1551_s1 = inlined_call_operand.vmem [shape: bf16[128,128], index: 1, kind: input, shape index: {}]   ;;  %s1552_s2 = inlined_call_operand.vmem [shape: bf16[2,324,128], index: 2, kind: output, shape index: {}]  }
   0x1 LB: > { %s973_s10 = sadd.s32 4294967295, %s1395_s9   ;;  %p977_p0 = scmp.ge.s32.totalorder %s1395_s9, 1  ;;  %s1395_s9 = sphi %s1414_s9, %s12_s9  }
   0x2   : > { %p112_p1 = scmp.lt.s32.totalorder %s1395_s9, 3 }
   0x4   : > { %p113_p2 = pnand %p977_p0, %p112_p1 }
   0x5   : > { %v1352_v0 = vld [vmem:[%s1551_s1] sm:$0xff] (!%p113_p2)   ;;  %v1353_v1 = vld [vmem:[%s1551_s1 + $0x8] sm:$0xff] (!%p113_p2)   ;;  %v1397_v2 = vmov (!%p113_p2), 0.0   ;;  %p134_p3 = scmp.lt.s32.totalorder (!%p113_p2), %s973_s10, 1  ;;  %vm1398_vm0 = vmmov (!%p113_p2), 0   ;;  %v1354_v3 = vld [vmem:[%s1551_s1 + $0x10] sm:$0xff] (!%p113_p2)  }
   0x6   : > { %116 = sbr.rel (%p113_p2) target bundleno = 314 (0x13a), region = 28  ;;  %1305 = vmatprep.subr.bf16.mxu1 (!%p113_p2), %v1397_v2  ;;  %1257 = vmatprep.subr.bf16.mxu0 (!%p113_p2), %v1352_v0  ;;  %v1359_v4 = vld [vmem:[%s1551_s1] sm:$0xff] (!%p113_p2)   ;;  %v1355_v5 = vld [vmem:[%s1551_s1 + $0x18] sm:$0xff] (!%p113_p2)   ;;  %v1361_v6 = vld [vmem:[%s1551_s1 + $0x8] sm:$0xff] (!%p113_p2)  }
   0x7   : > { %1258 = vmatpush3.bf16.msra.mxu0 (!%p113_p2), %v1352_v0  ;;  %1321 = vmatprep.mubr.msk.bf16.mxu1 (!%p113_p2), %vm1398_vm0, %v1397_v2  ;;  %v1356_v8 = vld [vmem:[%s1551_s1 + $0x20] sm:$0xff] (!%p113_p2)   ;;  %v1364_v9 = vld [vmem:[%s1551_s1 + $0x10] sm:$0xff] (!%p113_p2)   ;;  %v1357_v10 = vld [vmem:[%s1551_s1 + $0x28] sm:$0xff] (!%p113_p2)  }
   0x8   : > { %1259 = vmatprep.subr.bf16.mxu0 (!%p113_p2), %v1353_v1  ;;  %1306 = vmatpush3.bf16.msra.mxu1 (!%p113_p2), %v1359_v4  ;;  %v1365_v11 = vld [vmem:[%s1551_s1 + $0x18] sm:$0xff] (!%p113_p2)   ;;  %v1358_v12 = vld [vmem:[%s1551_s1 + $0x30] sm:$0xff] (!%p113_p2)   ;;  %v1368_v13 = vld [vmem:[%s1551_s1 + $0x20] sm:$0xff] (!%p113_p2)  }
   0x9   : > { %1307 = vmatprep.subr.bf16.mxu1 (!%p113_p2), %v1397_v2  ;;  %v1360_v14 = vld [vmem:[%s1551_s1 + $0x38] sm:$0xff] (!%p113_p2)   ;;  %v1369_v15 = vld [vmem:[%s1551_s1 + $0x28] sm:$0xff] (!%p113_p2)   ;;  %v1372_v16 = vld [vmem:[%s1551_s1 + $0x30] sm:$0xff] (!%p113_p2)  }
   0xa   : > { %v1373_v19 = vld [vmem:[%s1551_s1 + $0x38] sm:$0xff] (!%p113_p2)  }
   0xb   : > { %1260 = vmatpush3.bf16.msra.mxu0 (!%p113_p2), %v1353_v1 }
   0xc   : > { %1261 = vmatprep.subr.bf16.mxu0 (!%p113_p2), %v1354_v3  ;;  %1308 = vmatpush3.bf16.msra.mxu1 (!%p113_p2), %v1361_v6 }
   0xd   : > { %s1554_s10 = smov (!%p134_p3, %s973_s10), 1  ;;  %1309 = vmatprep.subr.bf16.mxu1 %v1397_v2 }
   0xe   : > { %s1341_s17 = smul.u32 164, %s1554_s10 }
   0xf   : > { %1262 = vmatpush3.bf16.msra.mxu0 %v1354_v3 }
  0x10   : > { %s1445_s22 = scalar_lea.vmem %s1550_s0, %s1341_s17  ;;  %1263 = vmatprep.subr.bf16.mxu0 %v1355_v5  ;;  %1310 = vmatpush3.bf16.msra.mxu1 %v1364_v9  ;;  %s1524_s25 = scalar_lea.vmem %s1552_s2, %s1341_s17 }
  0x11   : > { %v1362_v7 = vld [vmem:[%s1445_s22] sm:$0xff]   ;;  %1311 = vmatprep.subr.bf16.mxu1 %v1397_v2  ;;  %v1363_v17 = vld [vmem:[%s1445_s22 + $0x8] sm:$0xff]   ;;  %v1366_v18 = vld [vmem:[%s1445_s22 + $0x10] sm:$0xff]  }
  0x12   : > { %1273 = vmatprep.mubr.bf16.mxu0 %v1362_v7  ;;  %v1376_v20 = vld [vmem:[%s1445_s22 + $0x80] sm:$0xff]   ;;  %v1367_v21 = vld [vmem:[%s1445_s22 + $0x18] sm:$0xff]   ;;  %v1379_v23 = vld [vmem:[%s1445_s22 + $0x88] sm:$0xff]  }
  0x13   : > { %1264 = vmatpush3.bf16.msra.mxu0 %v1355_v5  ;;  %v1370_v22 = vld [vmem:[%s1445_s22 + $0x20] sm:$0xff]   ;;  %v1371_v24 = vld [vmem:[%s1445_s22 + $0x28] sm:$0xff]   ;;  %v1374_v25 = vld [vmem:[%s1445_s22 + $0x30] sm:$0xff]  }
  0x14   : > { %1265 = vmatprep.subr.bf16.mxu0 %v1356_v8  ;;  %1312 = vmatpush3.bf16.msra.mxu1 %v1365_v11  ;;  %v1382_v26 = vld [vmem:[%s1445_s22 + $0x90] sm:$0xff]   ;;  %v1375_v27 = vld [vmem:[%s1445_s22 + $0x38] sm:$0xff]   ;;  %v1377_v28 = vld [vmem:[%s1445_s22 + $0x40] sm:$0xff]  }
  0x15   : > { %1313 = vmatprep.subr.bf16.mxu1 %v1397_v2  ;;  %v1385_v29 = vld [vmem:[%s1445_s22 + $0x98] sm:$0xff]   ;;  %v1378_v30 = vld [vmem:[%s1445_s22 + $0x48] sm:$0xff]   ;;  %v1380_v31 = vld [vmem:[%s1445_s22 + $0x50] sm:$0xff]  }
  0x16   : > { %v1388_v32 = vld [vmem:[%s1445_s22 + $0xa0] ss:$0 sps:$4 sm:$0x33]   ;;  %v1381_v33 = vld [vmem:[%s1445_s22 + $0x58] sm:$0xff]   ;;  %v1384_v35 = vld [vmem:[%s1445_s22 + $0x68] sm:$0xff]  }
  0x17   : > { %1266 = vmatpush3.bf16.msra.mxu0 %v1356_v8  ;;  %v1383_v34 = vld [vmem:[%s1445_s22 + $0x60] sm:$0xff]   ;;  %v1386_v36 = vld [vmem:[%s1445_s22 + $0x70] sm:$0xff]   ;;  %v1387_v37 = vld [vmem:[%s1445_s22 + $0x78] sm:$0xff]  }
  0x18   : > { %1267 = vmatprep.subr.bf16.mxu0 %v1357_v10  ;;  %1314 = vmatpush3.bf16.msra.mxu1 %v1368_v13 }
  0x19   : > { %1315 = vmatprep.subr.bf16.mxu1 %v1397_v2 }
  0x1b   : > { %1268 = vmatpush3.bf16.msra.mxu0 %v1357_v10 }
  0x1c   : > { %1269 = vmatprep.subr.bf16.mxu0 %v1358_v12  ;;  %1316 = vmatpush3.bf16.msra.mxu1 %v1369_v15 }
  0x1d   : > { %1317 = vmatprep.subr.bf16.mxu1 %v1397_v2 }
  0x1f   : > { %1270 = vmatpush3.bf16.msra.mxu0 %v1358_v12 }
  0x20   : > { %1271 = vmatprep.subr.bf16.mxu0 %v1360_v14  ;;  %1318 = vmatpush3.bf16.msra.mxu1 %v1372_v16 }
  0x21   : > { %1319 = vmatprep.subr.bf16.mxu1 %v1397_v2 }
  0x23   : > { %1272 = vmatpush3.bf16.msra.mxu0 %v1360_v14 }
  0x24   : > { %1320 = vmatpush3.bf16.msra.mxu1 %v1373_v19 }
  0x26   : > { %1274 = vmatmul.mubr.bf16.vlgmr.msra.gmra.mrb[0].mxu0 %v1363_v17 }
  0x27   : > { %1277 = vmatprep.mubr.bf16.mxu0 %v1366_v18  ;;  %1322 = vmatmul.mubr.bf16.vlgmr.msra.gmra.mrb[0].mxu1 %v1376_v20 }
  0x28   : > { %1325 = vmatprep.mubr.msk.bf16.mxu1 %vm1398_vm0, %v1397_v2 }
  0x2e   : > { %1278 = vmatmul.mubr.bf16.gmra.mrb[4].mxu0 %v1367_v21 }
  0x2f   : > { %1281 = vmatprep.mubr.bf16.mxu0 %v1370_v22  ;;  %1326 = vmatmul.mubr.bf16.gmra.mrb[4].mxu1 %v1379_v23 }
  0x30   : > { %1329 = vmatprep.mubr.msk.bf16.mxu1 %vm1398_vm0, %v1397_v2 }
  0x36   : > { %1282 = vmatmul.mubr.bf16.gmra.mrb[8].mxu0 %v1371_v24 }
  0x37   : > { %1285 = vmatprep.mubr.bf16.mxu0 %v1374_v25  ;;  %1330 = vmatmul.mubr.bf16.gmra.mrb[8].mxu1 %v1382_v26 }
  0x38   : > { %1333 = vmatprep.mubr.msk.bf16.mxu1 %vm1398_vm0, %v1397_v2 }
  0x3e   : > { %1286 = vmatmul.mubr.bf16.gmra.mrb[12].mxu0 %v1375_v27 }
  0x3f   : > { %1289 = vmatprep.mubr.bf16.mxu0 %v1377_v28  ;;  %1334 = vmatmul.mubr.bf16.gmra.mrb[12].mxu1 %v1385_v29 }
  0x40   : > { %1337 = vmatprep.mubr.msk.bf16.mxu1 %vm1398_vm0, %v1397_v2 }
  0x46   : > { %1290 = vmatmul.mubr.bf16.gmra.mrb[16].mxu0 %v1378_v30 }
  0x47   : > { %1293 = vmatprep.mubr.bf16.mxu0 %v1380_v31  ;;  %1338 = vmatmul.mubr.bf16.gmra.mrb[16].mxu1 %v1388_v32 }
  0x4e   : > { %1294 = vmatmul.mubr.bf16.gmra.mrb[20].mxu0 %v1381_v33 }
  0x4f   : > { %1297 = vmatprep.mubr.bf16.mxu0 %v1383_v34 }
  0x56   : > { %1298 = vmatmul.mubr.bf16.gmra.mrb[24].mxu0 %v1384_v35 }
  0x57   : > { %1301 = vmatprep.mubr.bf16.mxu0 %v1386_v36 }
  0x5e   : > { %1302 = vmatmul.mubr.bf16.gmra.mrb[28].mxu0 %v1387_v37 }
  0xf9   : > { %v1275_v38 = vpop.f32.mrb[0].mxu0 }
  0xfa   : > { %v371_v39 = vpop.f32.mrb[1].mxu0  ;;  %v500_v41 = vmax.f32 %v1275_v38, 0.0  ;;  %v825_v48 = vpop.f32.mrb[0].mxu1 }
  0xfb   : > { %v1276_v40 = vpop.f32.mrb[2].mxu0  ;;  %v498_v44 = vmax.f32 %v371_v39, 0.0  ;;  %v863_v49 = vmax.f32 %v825_v48, 0.0  ;;  %v1323_v50 = vpop.f32.mrb[1].mxu1 }
  0xfc   : > { %v501_v42 = vmax.f32 %v1276_v40, 0.0  ;;  %v374_v43 = vpop.f32.mrb[3].mxu0  ;;  %v828_v52 = vpop.f32.mrb[2].mxu1 }
  0xfd   : > { %v499_v45 = vmax.f32 %v374_v43, 0.0  ;;  %v864_v54 = vmax.f32 %v828_v52, 0.0  ;;  %v1324_v55 = vpop.f32.mrb[3].mxu1 }
  0xfe   : > { %v1109_v46 = vpack.c.bf16 %v501_v42, %v500_v41 }
  0xff   : > { %v1104_v47 = vpack.c.bf16 %v499_v45, %v498_v44  ;;  %v1184_v60 = vpack.c.bf16 %v864_v54, %v863_v49 }
 0x100   : > { %1201 = vst [vmem:[%s1524_s25 + $0x8] sm:$0xff] %v1109_v46  }
 0x101   : > { %1105 = vst [vmem:[%s1524_s25] sm:$0xff] %v1104_v47   ;;  %v1279_v51 = vpop.f32.mrb[4].mxu0  ;;  %1216 = vst [vmem:[%s1524_s25 + $0x80] sm:$0xff] %v1184_v60  }
 0x102   : > { %v387_v53 = vpop.f32.mrb[5].mxu0  ;;  %v504_v57 = vmax.f32 %v1279_v51, 0.0  ;;  %v833_v1 = vpop.f32.mrb[4].mxu1 }
 0x103   : > { %v1280_v56 = vpop.f32.mrb[6].mxu0  ;;  %v502_v61 = vmax.f32 %v387_v53, 0.0  ;;  %v865_v2 = vmax.f32 %v833_v1, 0.0  ;;  %v1327_v3 = vpop.f32.mrb[5].mxu1 }
 0x104   : > { %v505_v58 = vmax.f32 %v1280_v56, 0.0  ;;  %v390_v59 = vpop.f32.mrb[7].mxu0  ;;  %v836_v5 = vpop.f32.mrb[6].mxu1 }
 0x105   : > { %v503_v62 = vmax.f32 %v390_v59, 0.0  ;;  %v866_v7 = vmax.f32 %v836_v5, 0.0  ;;  %v1328_v8 = vpop.f32.mrb[7].mxu1 }
 0x106   : > { %v1119_v63 = vpack.c.bf16 %v505_v58, %v504_v57 }
 0x107   : > { %v1114_v0 = vpack.c.bf16 %v503_v62, %v502_v61  ;;  %v1189_v13 = vpack.c.bf16 %v866_v7, %v865_v2 }
 0x108   : > { %1203 = vst [vmem:[%s1524_s25 + $0x18] sm:$0xff] %v1119_v63  }
 0x109   : > { %1202 = vst [vmem:[%s1524_s25 + $0x10] sm:$0xff] %v1114_v0   ;;  %v1283_v4 = vpop.f32.mrb[8].mxu0  ;;  %1217 = vst [vmem:[%s1524_s25 + $0x88] sm:$0xff] %v1189_v13  }
 0x10a   : > { %v403_v6 = vpop.f32.mrb[9].mxu0  ;;  %v508_v10 = vmax.f32 %v1283_v4, 0.0  ;;  %v841_v18 = vpop.f32.mrb[8].mxu1 }
 0x10b   : > { %v1284_v9 = vpop.f32.mrb[10].mxu0  ;;  %v506_v14 = vmax.f32 %v403_v6, 0.0  ;;  %v867_v19 = vmax.f32 %v841_v18, 0.0  ;;  %v1331_v20 = vpop.f32.mrb[9].mxu1 }
 0x10c   : > { %v509_v11 = vmax.f32 %v1284_v9, 0.0  ;;  %v406_v12 = vpop.f32.mrb[11].mxu0  ;;  %v844_v22 = vpop.f32.mrb[10].mxu1 }
 0x10d   : > { %v507_v15 = vmax.f32 %v406_v12, 0.0  ;;  %v868_v24 = vmax.f32 %v844_v22, 0.0  ;;  %v1332_v25 = vpop.f32.mrb[11].mxu1 }
 0x10e   : > { %v1129_v16 = vpack.c.bf16 %v509_v11, %v508_v10 }
 0x10f   : > { %v1124_v17 = vpack.c.bf16 %v507_v15, %v506_v14  ;;  %v1194_v30 = vpack.c.bf16 %v868_v24, %v867_v19 }
 0x110   : > { %1205 = vst [vmem:[%s1524_s25 + $0x28] sm:$0xff] %v1129_v16  }
 0x111   : > { %1204 = vst [vmem:[%s1524_s25 + $0x20] sm:$0xff] %v1124_v17   ;;  %v1287_v21 = vpop.f32.mrb[12].mxu0  ;;  %1218 = vst [vmem:[%s1524_s25 + $0x90] sm:$0xff] %v1194_v30  }
 0x112   : > { %v419_v23 = vpop.f32.mrb[13].mxu0  ;;  %v512_v27 = vmax.f32 %v1287_v21, 0.0  ;;  %v849_v35 = vpop.f32.mrb[12].mxu1 }
 0x113   : > { %v1288_v26 = vpop.f32.mrb[14].mxu0  ;;  %v510_v31 = vmax.f32 %v419_v23, 0.0  ;;  %v869_v36 = vmax.f32 %v849_v35, 0.0  ;;  %v1335_v37 = vpop.f32.mrb[13].mxu1 }
 0x114   : > { %v513_v28 = vmax.f32 %v1288_v26, 0.0  ;;  %v422_v29 = vpop.f32.mrb[15].mxu0  ;;  %v852_v39 = vpop.f32.mrb[14].mxu1 }
 0x115   : > { %v511_v32 = vmax.f32 %v422_v29, 0.0  ;;  %v870_v41 = vmax.f32 %v852_v39, 0.0  ;;  %v1336_v42 = vpop.f32.mrb[15].mxu1 }
 0x116   : > { %v1139_v33 = vpack.c.bf16 %v513_v28, %v512_v27 }
 0x117   : > { %v1134_v34 = vpack.c.bf16 %v511_v32, %v510_v31  ;;  %v1199_v47 = vpack.c.bf16 %v870_v41, %v869_v36 }
 0x118   : > { %1207 = vst [vmem:[%s1524_s25 + $0x38] sm:$0xff] %v1139_v33  }
 0x119   : > { %1206 = vst [vmem:[%s1524_s25 + $0x30] sm:$0xff] %v1134_v34   ;;  %v1291_v38 = vpop.f32.mrb[16].mxu0  ;;  %1219 = vst [vmem:[%s1524_s25 + $0x98] sm:$0xff] %v1199_v47  }
 0x11a   : > { %v435_v40 = vpop.f32.mrb[17].mxu0  ;;  %v516_v44 = vmax.f32 %v1291_v38, 0.0  ;;  %v857_v52 = vpop.f32.mrb[16].mxu1 }
 0x11b   : > { %v1292_v43 = vpop.f32.mrb[18].mxu0  ;;  %v514_v48 = vmax.f32 %v435_v40, 0.0  ;;  %v871_v53 = vmax.f32 %v857_v52, 0.0  ;;  %v1339_v54 = vpop.f32.mrb[17].mxu1 }
 0x11c   : > { %v517_v45 = vmax.f32 %v1292_v43, 0.0  ;;  %v438_v46 = vpop.f32.mrb[19].mxu0  ;;  %v860_v56 = vpop.f32.mrb[18].mxu1 }
 0x11d   : > { %v515_v49 = vmax.f32 %v438_v46, 0.0  ;;  %v1100_v58 = vpack.c.bf16 %v871_v53, %v871_v53  ;;  %v1340_v59 = vpop.f32.mrb[19].mxu1 }
 0x11e   : > { %v1149_v50 = vpack.c.bf16 %v517_v45, %v516_v44 }
 0x11f   : > { %v1144_v51 = vpack.c.bf16 %v515_v49, %v514_v48  ;;  %917 = vst [vmem:[%s1524_s25 + $0xa0] sm:$0x3] %v1100_v58 }
 0x120   : > { %1209 = vst [vmem:[%s1524_s25 + $0x48] sm:$0xff] %v1149_v50  }
 0x121   : > { %1208 = vst [vmem:[%s1524_s25 + $0x40] sm:$0xff] %v1144_v51   ;;  %v1295_v55 = vpop.f32.mrb[20].mxu0 }
 0x122   : > { %v451_v57 = vpop.f32.mrb[21].mxu0  ;;  %v520_v61 = vmax.f32 %v1295_v55, 0.0 }
 0x123   : > { %v1296_v60 = vpop.f32.mrb[22].mxu0  ;;  %v518_v0 = vmax.f32 %v451_v57, 0.0 }
 0x124   : > { %v521_v62 = vmax.f32 %v1296_v60, 0.0  ;;  %v454_v63 = vpop.f32.mrb[23].mxu0 }
 0x125   : > { %v519_v1 = vmax.f32 %v454_v63, 0.0 }
 0x126   : > { %v1159_v2 = vpack.c.bf16 %v521_v62, %v520_v61 }
 0x127   : > { %v1154_v3 = vpack.c.bf16 %v519_v1, %v518_v0 }
 0x128   : > { %1211 = vst [vmem:[%s1524_s25 + $0x58] sm:$0xff] %v1159_v2  }
 0x129   : > { %1210 = vst [vmem:[%s1524_s25 + $0x50] sm:$0xff] %v1154_v3   ;;  %v1299_v4 = vpop.f32.mrb[24].mxu0 }
 0x12a   : > { %v467_v5 = vpop.f32.mrb[25].mxu0  ;;  %v524_v7 = vmax.f32 %v1299_v4, 0.0 }
 0x12b   : > { %v1300_v6 = vpop.f32.mrb[26].mxu0  ;;  %v522_v10 = vmax.f32 %v467_v5, 0.0 }
 0x12c   : > { %v525_v8 = vmax.f32 %v1300_v6, 0.0  ;;  %v470_v9 = vpop.f32.mrb[27].mxu0 }
 0x12d   : > { %v523_v11 = vmax.f32 %v470_v9, 0.0 }
 0x12e   : > { %v1169_v12 = vpack.c.bf16 %v525_v8, %v524_v7 }
 0x12f   : > { %v1164_v13 = vpack.c.bf16 %v523_v11, %v522_v10 }
 0x130   : > { %1213 = vst [vmem:[%s1524_s25 + $0x68] sm:$0xff] %v1169_v12  }
 0x131   : > { %1212 = vst [vmem:[%s1524_s25 + $0x60] sm:$0xff] %v1164_v13   ;;  %v1303_v14 = vpop.f32.mrb[28].mxu0 }
 0x132   : > { %v483_v15 = vpop.f32.mrb[29].mxu0  ;;  %v528_v17 = vmax.f32 %v1303_v14, 0.0 }
 0x133   : > { %v1304_v16 = vpop.f32.mrb[30].mxu0  ;;  %v526_v20 = vmax.f32 %v483_v15, 0.0 }
 0x134   : > { %v529_v18 = vmax.f32 %v1304_v16, 0.0  ;;  %v486_v19 = vpop.f32.mrb[31].mxu0 }
 0x135   : > { %v527_v21 = vmax.f32 %v486_v19, 0.0 }
 0x136   : > { %v1179_v22 = vpack.c.bf16 %v529_v18, %v528_v17 }
 0x137   : > { %v1174_v23 = vpack.c.bf16 %v527_v21, %v526_v20 }
 0x138   : > { %1215 = vst [vmem:[%s1524_s25 + $0x78] sm:$0xff] %v1179_v22  }
 0x139   : > { %1214 = vst [vmem:[%s1524_s25 + $0x70] sm:$0xff] %v1174_v23  }
 0x13a PF: > { %s12_s9 = sadd.s32 1, %s1395_s9  }
 0x13b   : > { %p9_p4 = scmp.ge.s32.totalorder %s12_s9, 4  }
 0x13d   :  { %11 = sbr.rel (!%p9_p4) target bundleno = 1 (0x1), region = 58 }

// kernel: resnet_forward.12
= control target key start
LH: loop header
LB: loop body
LE: loop exit
PB: predicated region body
PF: predicated region fallthrough
CT: control target
= control target key end

     0   :  { %s1769_s9 = smov 0   ;;  %s1952_s0 = inlined_call_operand.vmem [shape: bf16[2,324,256], index: 0, kind: input, shape index: {}]   ;;  %s1953_s1 = inlined_call_operand.vmem [shape: bf16[256,128], index: 1, kind: input, shape index: {}]   ;;  %s1954_s2 = inlined_call_operand.vmem [shape: bf16[2,324,128], index: 2, kind: output, shape index: {}]  }
   0x1 LB: > { %s1184_s10 = sadd.s32 4294967295, %s1752_s9   ;;  %p1188_p0 = scmp.ge.s32.totalorder %s1752_s9, 1  ;;  %s1752_s9 = sphi %s1769_s9, %s12_s9  }
   0x2   : > { %p112_p1 = scmp.lt.s32.totalorder %s1752_s9, 3 }
   0x4   : > { %p113_p2 = pnand %p1188_p0, %p112_p1 }
   0x5   : > { %v1652_v0 = vld [vmem:[%s1953_s1 + $0x40] sm:$0xff] (!%p113_p2)   ;;  %v1654_v2 = vld [vmem:[%s1953_s1 + $0x48] sm:$0xff] (!%p113_p2)   ;;  %p134_p3 = scmp.lt.s32.totalorder (!%p113_p2), %s1184_s10, 1  ;;  %v1656_v4 = vld [vmem:[%s1953_s1 + $0x50] sm:$0xff] (!%p113_p2)  }
   0x6   : > { %116 = sbr.rel (%p113_p2) target bundleno = 340 (0x154), region = 28  ;;  %v1653_v1 = vld [vmem:[%s1953_s1] sm:$0xff] (!%p113_p2)   ;;  %1468 = vmatprep.subr.bf16.mxu0 (!%p113_p2), %v1652_v0  ;;  %1626 = vmatprep.subr.bf16.mxu1 (!%p113_p2), %v1652_v0  ;;  %v1655_v3 = vld [vmem:[%s1953_s1 + $0x8] sm:$0xff] (!%p113_p2)   ;;  %v1657_v5 = vld [vmem:[%s1953_s1 + $0x10] sm:$0xff] (!%p113_p2)  }
   0x7   : > { %1469 = vmatpush3.bf16.msra.mxu0 (!%p113_p2), %v1653_v1  ;;  %1634 = vmatpush3.bf16.msra.mxu1 (!%p113_p2), %v1653_v1  ;;  %v1658_v6 = vld [vmem:[%s1953_s1 + $0x58] sm:$0xff] (!%p113_p2)   ;;  %v1660_v8 = vld [vmem:[%s1953_s1 + $0x60] sm:$0xff] (!%p113_p2)   ;;  %v1662_v10 = vld [vmem:[%s1953_s1 + $0x68] sm:$0xff] (!%p113_p2)  }
   0x8   : > { %1470 = vmatprep.subr.bf16.mxu0 (!%p113_p2), %v1654_v2  ;;  %1627 = vmatprep.subr.bf16.mxu1 (!%p113_p2), %v1654_v2  ;;  %v1659_v7 = vld [vmem:[%s1953_s1 + $0x18] sm:$0xff] (!%p113_p2)   ;;  %v1661_v9 = vld [vmem:[%s1953_s1 + $0x20] sm:$0xff] (!%p113_p2)   ;;  %v1663_v13 = vld [vmem:[%s1953_s1 + $0x28] sm:$0xff] (!%p113_p2)  }
   0x9   : > { %v1664_v14 = vld [vmem:[%s1953_s1 + $0x70] sm:$0xff] (!%p113_p2)   ;;  %v1666_v16 = vld [vmem:[%s1953_s1 + $0x78] sm:$0xff] (!%p113_p2)   ;;  %v1677_v19 = vld [vmem:[%s1953_s1 + $0x40] sm:$0xff] (!%p113_p2)  }
   0xa   : > { %v1665_v15 = vld [vmem:[%s1953_s1 + $0x30] sm:$0xff] (!%p113_p2)   ;;  %v1667_v17 = vld [vmem:[%s1953_s1 + $0x38] sm:$0xff] (!%p113_p2)   ;;  %v1678_v22 = vld [vmem:[%s1953_s1] sm:$0xff] (!%p113_p2)  }
   0xb   : > { %1471 = vmatpush3.bf16.msra.mxu0 (!%p113_p2), %v1655_v3  ;;  %1635 = vmatpush3.bf16.msra.mxu1 (!%p113_p2), %v1655_v3  ;;  %v1681_v24 = vld [vmem:[%s1953_s1 + $0x48] sm:$0xff] (!%p113_p2)   ;;  %v1687_v26 = vld [vmem:[%s1953_s1 + $0x50] sm:$0xff] (!%p113_p2)   ;;  %v1695_v32 = vld [vmem:[%s1953_s1 + $0x58] sm:$0xff] (!%p113_p2)  }
   0xc   : > { %1472 = vmatprep.subr.bf16.mxu0 (!%p113_p2), %v1656_v4  ;;  %1628 = vmatprep.subr.bf16.mxu1 (!%p113_p2), %v1656_v4  ;;  %v1685_v25 = vld [vmem:[%s1953_s1 + $0x8] sm:$0xff] (!%p113_p2)   ;;  %v1688_v30 = vld [vmem:[%s1953_s1 + $0x10] sm:$0xff] (!%p113_p2)   ;;  %v1696_v33 = vld [vmem:[%s1953_s1 + $0x18] sm:$0xff] (!%p113_p2)  }
   0xd   : > { %s1956_s10 = smov (!%p134_p3, %s1184_s10), 1  ;;  %v1697_v34 = vld [vmem:[%s1953_s1 + $0x60] sm:$0xff]   ;;  %v1705_v40 = vld [vmem:[%s1953_s1 + $0x68] sm:$0xff]   ;;  %v1712_v43 = vld [vmem:[%s1953_s1 + $0x70] sm:$0xff]  }
   0xe   : > { %s1642_s25 = smul.u32 328, %s1956_s10  ;;  %v1700_v39 = vld [vmem:[%s1953_s1 + $0x20] sm:$0xff]   ;;  %v1706_v42 = vld [vmem:[%s1953_s1 + $0x28] sm:$0xff]   ;;  %v1714_v47 = vld [vmem:[%s1953_s1 + $0x30] sm:$0xff]  }
   0xf   : > { %1473 = vmatpush3.bf16.msra.mxu0 %v1657_v5  ;;  %1636 = vmatpush3.bf16.msra.mxu1 %v1657_v5  ;;  %v1715_v48 = vld [vmem:[%s1953_s1 + $0x78] sm:$0xff]   ;;  %s1643_s28 = smul.u32 164, %s1956_s10 }
  0x10   : > { %1474 = vmatprep.subr.bf16.mxu0 %v1658_v6  ;;  %1629 = vmatprep.subr.bf16.mxu1 %v1658_v6  ;;  %s1810_s4 = scalar_lea.vmem %s1952_s0, %s1642_s25  ;;  %v1716_v49 = vld [vmem:[%s1953_s1 + $0x38] sm:$0xff]  }
  0x11   : > { %v1670_v11 = vld [vmem:[%s1810_s4 + $0x4] ss:$8 sps:$4 sm:$0xff]   ;;  %v1673_v12 = vld [vmem:[%s1810_s4 + $0xb4] ss:$8 sps:$4 sm:$0xff]   ;;  %v1668_v18 = vld [vmem:[%s1810_s4] ss:$8 sps:$4 sm:$0xff]   ;;  %s1926_s30 = scalar_lea.vmem %s1954_s2, %s1643_s28 }
  0x12   : > { %497 = vmatprep.mubr.bf16.mxu0 %v1670_v11  ;;  %585 = vmatprep.mubr.bf16.mxu1 %v1673_v12  ;;  %v1671_v20 = vld [vmem:[%s1810_s4 + $0xb0] ss:$8 sps:$4 sm:$0xff]   ;;  %v1674_v21 = vld [vmem:[%s1810_s4 + $0x14] ss:$8 sps:$4 sm:$0xff]   ;;  %v1679_v23 = vld [vmem:[%s1810_s4 + $0xc4] ss:$8 sps:$4 sm:$0xff]  }
  0x13   : > { %1475 = vmatpush3.bf16.msra.mxu0 %v1659_v7  ;;  %1637 = vmatpush3.bf16.msra.mxu1 %v1659_v7  ;;  %v1676_v27 = vld [vmem:[%s1810_s4 + $0x10] ss:$8 sps:$4 sm:$0xff]   ;;  %v1682_v28 = vld [vmem:[%s1810_s4 + $0x24] ss:$8 sps:$4 sm:$0xff]   ;;  %v1684_v29 = vld [vmem:[%s1810_s4 + $0xc0] ss:$8 sps:$4 sm:$0xff]  }
  0x14   : > { %1476 = vmatprep.subr.bf16.mxu0 %v1660_v8  ;;  %1630 = vmatprep.subr.bf16.mxu1 %v1660_v8  ;;  %v1689_v31 = vld [vmem:[%s1810_s4 + $0xd4] ss:$8 sps:$4 sm:$0xff]   ;;  %v1686_v35 = vld [vmem:[%s1810_s4 + $0x20] ss:$8 sps:$4 sm:$0xff]   ;;  %v1693_v36 = vld [vmem:[%s1810_s4 + $0xd0] ss:$8 sps:$4 sm:$0xff]  }
  0x15   : > { %v1691_v37 = vld [vmem:[%s1810_s4 + $0x34] ss:$8 sps:$4 sm:$0xff]   ;;  %v1698_v38 = vld [vmem:[%s1810_s4 + $0xe4] ss:$8 sps:$4 sm:$0xff]   ;;  %v1694_v41 = vld [vmem:[%s1810_s4 + $0x30] ss:$8 sps:$4 sm:$0xff]  }
  0x16   : > { %v1701_v44 = vld [vmem:[%s1810_s4 + $0x44] ss:$8 sps:$4 sm:$0xff]   ;;  %v1703_v45 = vld [vmem:[%s1810_s4 + $0xe0] ss:$8 sps:$4 sm:$0xff]   ;;  %v1707_v46 = vld [vmem:[%s1810_s4 + $0xf4] ss:$8 sps:$4 sm:$0xff]  }
  0x17   : > { %1477 = vmatpush3.bf16.msra.mxu0 %v1661_v9  ;;  %1638 = vmatpush3.bf16.msra.mxu1 %v1661_v9  ;;  %v1704_v50 = vld [vmem:[%s1810_s4 + $0x40] ss:$8 sps:$4 sm:$0xff]   ;;  %v1711_v51 = vld [vmem:[%s1810_s4 + $0xf0] ss:$8 sps:$4 sm:$0xff]   ;;  %v1709_v52 = vld [vmem:[%s1810_s4 + $0x54] ss:$8 sps:$4 sm:$0xff]  }
  0x18   : > { %1478 = vmatprep.subr.bf16.mxu0 %v1662_v10  ;;  %1631 = vmatprep.subr.bf16.mxu1 %v1662_v10  ;;  %v1719_v53 = vld [vmem:[%s1810_s4 + $0x104] ss:$8 sps:$4 sm:$0xff]   ;;  %v1713_v54 = vld [vmem:[%s1810_s4 + $0x50] ss:$8 sps:$4 sm:$0xff]   ;;  %v1717_v55 = vld [vmem:[%s1810_s4 + $0x100] ss:$8 sps:$4 sm:$0xff]  }
  0x19   : > { %v1720_v56 = vld [vmem:[%s1810_s4 + $0x64] ss:$8 sps:$4 sm:$0xff]   ;;  %v1723_v57 = vld [vmem:[%s1810_s4 + $0x114] ss:$8 sps:$4 sm:$0xff]   ;;  %v1722_v58 = vld [vmem:[%s1810_s4 + $0x60] ss:$8 sps:$4 sm:$0xff]  }
  0x1a   : > { %v1727_v59 = vld [vmem:[%s1810_s4 + $0x110] ss:$8 sps:$4 sm:$0xff]   ;;  %v1725_v60 = vld [vmem:[%s1810_s4 + $0x74] ss:$8 sps:$4 sm:$0xff]   ;;  %v1729_v61 = vld [vmem:[%s1810_s4 + $0x124] ss:$8 sps:$4 sm:$0xff]  }
  0x1b   : > { %1479 = vmatpush3.bf16.msra.mxu0 %v1663_v13  ;;  %1639 = vmatpush3.bf16.msra.mxu1 %v1663_v13  ;;  %v1728_v62 = vld [vmem:[%s1810_s4 + $0x70] ss:$8 sps:$4 sm:$0xff]   ;;  %v1733_v63 = vld [vmem:[%s1810_s4 + $0x120] ss:$8 sps:$4 sm:$0xff]   ;;  %v1731_v0 = vld [vmem:[%s1810_s4 + $0x84] ss:$8 sps:$4 sm:$0xff]  }
  0x1c   : > { %1480 = vmatprep.subr.bf16.mxu0 %v1664_v14  ;;  %1632 = vmatprep.subr.bf16.mxu1 %v1664_v14  ;;  %v1735_v1 = vld [vmem:[%s1810_s4 + $0x134] ss:$8 sps:$4 sm:$0xff]   ;;  %v826_v2 = vld [vmem:[%s1810_s4 + $0x140] sm:$0x33]  ;;  %v1739_v4 = vld [vmem:[%s1810_s4 + $0x130] ss:$8 sps:$4 sm:$0xff]  }
  0x1d   : > { %v1734_v3 = vld [vmem:[%s1810_s4 + $0x80] ss:$8 sps:$4 sm:$0xff]   ;;  %v1737_v5 = vld [vmem:[%s1810_s4 + $0x94] ss:$8 sps:$4 sm:$0xff]   ;;  %v1280_v6 = vcombine.high %v826_v2, %v826_v2  ;;  %v1740_v7 = vld [vmem:[%s1810_s4 + $0x90] ss:$8 sps:$4 sm:$0xff]   ;;  %v1279_v8 = vcombine.low %v826_v2, %v826_v2 }
  0x1e   : > { %v1742_v9 = vld [vmem:[%s1810_s4 + $0xa4] ss:$8 sps:$4 sm:$0xff]   ;;  %v1745_v10 = vld [vmem:[%s1810_s4 + $0xa0] ss:$8 sps:$4 sm:$0xff]  }
  0x1f   : > { %1481 = vmatpush3.bf16.msra.mxu0 %v1665_v15  ;;  %1640 = vmatpush3.bf16.msra.mxu1 %v1665_v15 }
  0x20   : > { %1482 = vmatprep.subr.bf16.mxu0 %v1666_v16  ;;  %1633 = vmatprep.subr.bf16.mxu1 %v1666_v16 }
  0x23   : > { %1483 = vmatpush3.bf16.msra.mxu0 %v1667_v17  ;;  %1641 = vmatpush3.bf16.msra.mxu1 %v1667_v17 }
  0x24   : > { %1580 = vmatprep.subr.bf16.mxu1 %v1677_v19 }
  0x26   : > { %498 = vmatmul.mubr.bf16.vlgmr.msra.gmra.mrb[0].mxu0 %v1668_v18  ;;  %586 = vmatmul.mubr.bf16.vlgmr.msra.gmra.mrb[0].mxu1 %v1671_v20 }
  0x27   : > { %505 = vmatprep.mubr.bf16.mxu0 %v1674_v21  ;;  %1581 = vmatpush3.bf16.msra.mxu1 %v1678_v22 }
  0x28   : > { %593 = vmatprep.mubr.bf16.mxu1 %v1679_v23  ;;  %1582 = vmatprep.subr.bf16.mxu1 %v1681_v24 }
  0x2b   : > { %1583 = vmatpush3.bf16.msra.mxu1 %v1685_v25 }
  0x2c   : > { %1584 = vmatprep.subr.bf16.mxu1 %v1687_v26 }
  0x2e   : > { %506 = vmatmul.mubr.bf16.gmra.mrb[4].mxu0 %v1676_v27  ;;  %594 = vmatmul.mubr.bf16.gmra.mrb[4].mxu1 %v1684_v29 }
  0x2f   : > { %513 = vmatprep.mubr.bf16.mxu0 %v1682_v28  ;;  %1585 = vmatpush3.bf16.msra.mxu1 %v1688_v30 }
  0x30   : > { %601 = vmatprep.mubr.bf16.mxu1 %v1689_v31  ;;  %1586 = vmatprep.subr.bf16.mxu1 %v1695_v32 }
  0x33   : > { %1587 = vmatpush3.bf16.msra.mxu1 %v1696_v33 }
  0x34   : > { %1588 = vmatprep.subr.bf16.mxu1 %v1697_v34 }
  0x36   : > { %514 = vmatmul.mubr.bf16.gmra.mrb[8].mxu0 %v1686_v35  ;;  %602 = vmatmul.mubr.bf16.gmra.mrb[8].mxu1 %v1693_v36 }
  0x37   : > { %521 = vmatprep.mubr.bf16.mxu0 %v1691_v37  ;;  %609 = vmatprep.mubr.bf16.mxu1 %v1698_v38 }
  0x38   : > { %1589 = vmatpush3.bf16.msra.mxu1 %v1700_v39 }
  0x39   : > { %1590 = vmatprep.subr.bf16.mxu1 %v1705_v40 }
  0x3c   : > { %1591 = vmatpush3.bf16.msra.mxu1 %v1706_v42 }
  0x3d   : > { %1592 = vmatprep.subr.bf16.mxu1 %v1712_v43 }
  0x3e   : > { %522 = vmatmul.mubr.bf16.gmra.mrb[12].mxu0 %v1694_v41  ;;  %610 = vmatmul.mubr.bf16.gmra.mrb[12].mxu1 %v1703_v45 }
  0x3f   : > { %529 = vmatprep.mubr.bf16.mxu0 %v1701_v44  ;;  %617 = vmatprep.mubr.bf16.mxu1 %v1707_v46 }
  0x40   : > { %1593 = vmatpush3.bf16.msra.mxu1 %v1714_v47 }
  0x41   : > { %1594 = vmatprep.subr.bf16.mxu1 %v1715_v48 }
  0x44   : > { %1595 = vmatpush3.bf16.msra.mxu1 %v1716_v49 }
  0x46   : > { %530 = vmatmul.mubr.bf16.gmra.mrb[16].mxu0 %v1704_v50  ;;  %618 = vmatmul.mubr.bf16.gmra.mrb[16].mxu1 %v1711_v51 }
  0x47   : > { %537 = vmatprep.mubr.bf16.mxu0 %v1709_v52  ;;  %1034 = vmatprep.mubr.bf16.mxu1 %v1719_v53 }
  0x4e   : > { %538 = vmatmul.mubr.bf16.gmra.mrb[20].mxu0 %v1713_v54  ;;  %1035 = vmatmul.mubr.bf16.vlgmr.msra.gmra.mrb[20].mxu1 %v1717_v55 }
  0x4f   : > { %545 = vmatprep.mubr.bf16.mxu0 %v1720_v56  ;;  %1042 = vmatprep.mubr.bf16.mxu1 %v1723_v57 }
  0x56   : > { %546 = vmatmul.mubr.bf16.gmra.mrb[24].mxu0 %v1722_v58  ;;  %1043 = vmatmul.mubr.bf16.gmra.mrb[24].mxu1 %v1727_v59 }
  0x57   : > { %553 = vmatprep.mubr.bf16.mxu0 %v1725_v60  ;;  %1050 = vmatprep.mubr.bf16.mxu1 %v1729_v61 }
  0x5e   : > { %554 = vmatmul.mubr.bf16.gmra.mrb[28].mxu0 %v1728_v62  ;;  %1051 = vmatmul.mubr.bf16.gmra.mrb[28].mxu1 %v1733_v63 }
  0x5f   : > { %561 = vmatprep.mubr.bf16.mxu0 %v1731_v0  ;;  %1058 = vmatprep.mubr.bf16.mxu1 %v1735_v1 }
  0x66   : > { %562 = vmatmul.mubr.bf16.gmra.mrb[32].mxu0 %v1734_v3  ;;  %1059 = vmatmul.mubr.bf16.gmra.mrb[32].mxu1 %v1739_v4 }
  0x67   : > { %569 = vmatprep.mubr.bf16.mxu0 %v1737_v5  ;;  %1066 = vmatprep.mubr.bf16.mxu1 %v1280_v6 }
  0x6e   : > { %570 = vmatmul.mubr.bf16.gmra.mrb[36].mxu0 %v1740_v7  ;;  %1067 = vmatmul.mubr.bf16.gmra.mrb[36].mxu1 %v1279_v8 }
  0x6f   : > { %577 = vmatprep.mubr.bf16.mxu0 %v1742_v9 }
  0x76   : > { %578 = vmatmul.mubr.bf16.gmra.mrb[40].mxu0 %v1745_v10 }
  0xf9   : > { %v1484_v11 = vpop.f32.mrb[0].mxu0  ;;  %v1550_v12 = vpop.f32.mrb[0].mxu1 }
  0xfa   : > { %v1485_v13 = vpop.f32.mrb[1].mxu0  ;;  %v1551_v14 = vpop.f32.mrb[1].mxu1 }
  0xfb   : > { %v1486_v15 = vadd.f32 %v1485_v13, %v1484_v11  ;;  %v1487_v16 = vpop.f32.mrb[2].mxu0  ;;  %v1552_v17 = vadd.f32 %v1551_v14, %v1550_v12  ;;  %v1553_v18 = vpop.f32.mrb[2].mxu1 }
  0xfc   : > { %v1488_v19 = vpop.f32.mrb[3].mxu0  ;;  %v1554_v20 = vpop.f32.mrb[3].mxu1 }
  0xfd   : > { %v1489_v21 = vadd.f32 %v1488_v19, %v1487_v16  ;;  %v648_v22 = vmax.f32 %v1552_v17, 0.0  ;;  %v1555_v23 = vadd.f32 %v1554_v20, %v1553_v18  ;;  %v626_v24 = vmax.f32 %v1486_v15, 0.0 }
  0xff   : > { %v627_v25 = vmax.f32 %v1489_v21, 0.0  ;;  %v649_v26 = vmax.f32 %v1555_v23, 0.0 }
 0x101   : > { %v1352_v27 = vpack.c.bf16 %v627_v25, %v626_v24  ;;  %v1490_v28 = vpop.f32.mrb[4].mxu0  ;;  %v1407_v29 = vpack.c.bf16 %v649_v26, %v648_v22  ;;  %v1556_v30 = vpop.f32.mrb[4].mxu1 }
 0x102   : > { %v1491_v31 = vpop.f32.mrb[5].mxu0  ;;  %v1557_v32 = vpop.f32.mrb[5].mxu1 }
 0x103   : > { %1353 = vst [vmem:[%s1926_s30] sm:$0xff] %v1352_v27   ;;  %v1492_v33 = vadd.f32 %v1491_v31, %v1490_v28  ;;  %v1493_v34 = vpop.f32.mrb[6].mxu0  ;;  %1459 = vst [vmem:[%s1926_s30 + $0x58] sm:$0xff] %v1407_v29   ;;  %v1558_v35 = vadd.f32 %v1557_v32, %v1556_v30  ;;  %v1559_v36 = vpop.f32.mrb[6].mxu1 }
 0x104   : > { %v1494_v37 = vpop.f32.mrb[7].mxu0  ;;  %v1560_v38 = vpop.f32.mrb[7].mxu1 }
 0x105   : > { %v1495_v39 = vadd.f32 %v1494_v37, %v1493_v34  ;;  %v650_v40 = vmax.f32 %v1558_v35, 0.0  ;;  %v1561_v41 = vadd.f32 %v1560_v38, %v1559_v36  ;;  %v628_v42 = vmax.f32 %v1492_v33, 0.0 }
 0x107   : > { %v629_v43 = vmax.f32 %v1495_v39, 0.0  ;;  %v651_v44 = vmax.f32 %v1561_v41, 0.0 }
 0x109   : > { %v1357_v45 = vpack.c.bf16 %v629_v43, %v628_v42  ;;  %v1496_v46 = vpop.f32.mrb[8].mxu0  ;;  %v1412_v47 = vpack.c.bf16 %v651_v44, %v650_v40  ;;  %v1562_v48 = vpop.f32.mrb[8].mxu1 }
 0x10a   : > { %v1497_v49 = vpop.f32.mrb[9].mxu0  ;;  %v1563_v50 = vpop.f32.mrb[9].mxu1 }
 0x10b   : > { %1449 = vst [vmem:[%s1926_s30 + $0x8] sm:$0xff] %v1357_v45   ;;  %v1498_v51 = vadd.f32 %v1497_v49, %v1496_v46  ;;  %v1499_v52 = vpop.f32.mrb[10].mxu0  ;;  %1460 = vst [vmem:[%s1926_s30 + $0x60] sm:$0xff] %v1412_v47   ;;  %v1564_v53 = vadd.f32 %v1563_v50, %v1562_v48  ;;  %v1565_v54 = vpop.f32.mrb[10].mxu1 }
 0x10c   : > { %v1500_v55 = vpop.f32.mrb[11].mxu0  ;;  %v1566_v56 = vpop.f32.mrb[11].mxu1 }
 0x10d   : > { %v1501_v57 = vadd.f32 %v1500_v55, %v1499_v52  ;;  %v652_v58 = vmax.f32 %v1564_v53, 0.0  ;;  %v1567_v59 = vadd.f32 %v1566_v56, %v1565_v54  ;;  %v630_v60 = vmax.f32 %v1498_v51, 0.0 }
 0x10f   : > { %v631_v61 = vmax.f32 %v1501_v57, 0.0  ;;  %v653_v62 = vmax.f32 %v1567_v59, 0.0 }
 0x111   : > { %v1362_v63 = vpack.c.bf16 %v631_v61, %v630_v60  ;;  %v1502_v0 = vpop.f32.mrb[12].mxu0  ;;  %v1417_v1 = vpack.c.bf16 %v653_v62, %v652_v58  ;;  %v1568_v2 = vpop.f32.mrb[12].mxu1 }
 0x112   : > { %v1503_v3 = vpop.f32.mrb[13].mxu0  ;;  %v1569_v4 = vpop.f32.mrb[13].mxu1 }
 0x113   : > { %1450 = vst [vmem:[%s1926_s30 + $0x10] sm:$0xff] %v1362_v63   ;;  %v1504_v5 = vadd.f32 %v1503_v3, %v1502_v0  ;;  %v1505_v6 = vpop.f32.mrb[14].mxu0  ;;  %1461 = vst [vmem:[%s1926_s30 + $0x68] sm:$0xff] %v1417_v1   ;;  %v1570_v7 = vadd.f32 %v1569_v4, %v1568_v2  ;;  %v1571_v8 = vpop.f32.mrb[14].mxu1 }
 0x114   : > { %v1506_v9 = vpop.f32.mrb[15].mxu0  ;;  %v1572_v10 = vpop.f32.mrb[15].mxu1 }
 0x115   : > { %v1507_v11 = vadd.f32 %v1506_v9, %v1505_v6  ;;  %v654_v12 = vmax.f32 %v1570_v7, 0.0  ;;  %v1573_v13 = vadd.f32 %v1572_v10, %v1571_v8  ;;  %v632_v14 = vmax.f32 %v1504_v5, 0.0 }
 0x117   : > { %v633_v15 = vmax.f32 %v1507_v11, 0.0  ;;  %v655_v16 = vmax.f32 %v1573_v13, 0.0 }
 0x119   : > { %v1367_v17 = vpack.c.bf16 %v633_v15, %v632_v14  ;;  %v1508_v18 = vpop.f32.mrb[16].mxu0  ;;  %v1422_v19 = vpack.c.bf16 %v655_v16, %v654_v12  ;;  %v1574_v20 = vpop.f32.mrb[16].mxu1 }
 0x11a   : > { %v1509_v21 = vpop.f32.mrb[17].mxu0  ;;  %v1575_v22 = vpop.f32.mrb[17].mxu1 }
 0x11b   : > { %1451 = vst [vmem:[%s1926_s30 + $0x18] sm:$0xff] %v1367_v17   ;;  %v1510_v23 = vadd.f32 %v1509_v21, %v1508_v18  ;;  %v1511_v24 = vpop.f32.mrb[18].mxu0  ;;  %1462 = vst [vmem:[%s1926_s30 + $0x70] sm:$0xff] %v1422_v19   ;;  %v1576_v25 = vadd.f32 %v1575_v22, %v1574_v20  ;;  %v1577_v26 = vpop.f32.mrb[18].mxu1 }
 0x11c   : > { %v1512_v27 = vpop.f32.mrb[19].mxu0  ;;  %v1578_v28 = vpop.f32.mrb[19].mxu1 }
 0x11d   : > { %v1513_v29 = vadd.f32 %v1512_v27, %v1511_v24  ;;  %v656_v30 = vmax.f32 %v1576_v25, 0.0  ;;  %v1579_v31 = vadd.f32 %v1578_v28, %v1577_v26  ;;  %v634_v32 = vmax.f32 %v1510_v23, 0.0 }
 0x11f   : > { %v635_v33 = vmax.f32 %v1513_v29, 0.0  ;;  %v657_v34 = vmax.f32 %v1579_v31, 0.0 }
 0x121   : > { %v1372_v35 = vpack.c.bf16 %v635_v33, %v634_v32  ;;  %v1514_v36 = vpop.f32.mrb[20].mxu0  ;;  %v1427_v37 = vpack.c.bf16 %v657_v34, %v656_v30  ;;  %v1596_v38 = vpop.f32.mrb[20].mxu1 }
 0x122   : > { %v1515_v39 = vpop.f32.mrb[21].mxu0  ;;  %v1597_v40 = vpop.f32.mrb[21].mxu1 }
 0x123   : > { %1452 = vst [vmem:[%s1926_s30 + $0x20] sm:$0xff] %v1372_v35   ;;  %v1516_v41 = vadd.f32 %v1515_v39, %v1514_v36  ;;  %v1517_v42 = vpop.f32.mrb[22].mxu0  ;;  %1463 = vst [vmem:[%s1926_s30 + $0x78] sm:$0xff] %v1427_v37   ;;  %v1598_v43 = vadd.f32 %v1597_v40, %v1596_v38  ;;  %v1599_v44 = vpop.f32.mrb[22].mxu1 }
 0x124   : > { %v1518_v45 = vpop.f32.mrb[23].mxu0  ;;  %v1600_v46 = vpop.f32.mrb[23].mxu1 }
 0x125   : > { %v1519_v47 = vadd.f32 %v1518_v45, %v1517_v42  ;;  %v1074_v48 = vmax.f32 %v1598_v43, 0.0  ;;  %v1601_v49 = vadd.f32 %v1600_v46, %v1599_v44  ;;  %v636_v50 = vmax.f32 %v1516_v41, 0.0 }
 0x127   : > { %v637_v51 = vmax.f32 %v1519_v47, 0.0  ;;  %v1075_v52 = vmax.f32 %v1601_v49, 0.0 }
 0x129   : > { %v1377_v53 = vpack.c.bf16 %v637_v51, %v636_v50  ;;  %v1520_v54 = vpop.f32.mrb[24].mxu0  ;;  %v1432_v55 = vpack.c.bf16 %v1075_v52, %v1074_v48  ;;  %v1602_v56 = vpop.f32.mrb[24].mxu1 }
 0x12a   : > { %v1521_v57 = vpop.f32.mrb[25].mxu0  ;;  %v1603_v58 = vpop.f32.mrb[25].mxu1 }
 0x12b   : > { %1453 = vst [vmem:[%s1926_s30 + $0x28] sm:$0xff] %v1377_v53   ;;  %v1522_v59 = vadd.f32 %v1521_v57, %v1520_v54  ;;  %v1523_v60 = vpop.f32.mrb[26].mxu0  ;;  %1464 = vst [vmem:[%s1926_s30 + $0x80] sm:$0xff] %v1432_v55   ;;  %v1604_v61 = vadd.f32 %v1603_v58, %v1602_v56  ;;  %v1605_v62 = vpop.f32.mrb[26].mxu1 }
 0x12c   : > { %v1524_v63 = vpop.f32.mrb[27].mxu0  ;;  %v1606_v0 = vpop.f32.mrb[27].mxu1 }
 0x12d   : > { %v1525_v1 = vadd.f32 %v1524_v63, %v1523_v60  ;;  %v1076_v2 = vmax.f32 %v1604_v61, 0.0  ;;  %v1607_v3 = vadd.f32 %v1606_v0, %v1605_v62  ;;  %v638_v4 = vmax.f32 %v1522_v59, 0.0 }
 0x12f   : > { %v639_v5 = vmax.f32 %v1525_v1, 0.0  ;;  %v1077_v6 = vmax.f32 %v1607_v3, 0.0 }
 0x131   : > { %v1382_v7 = vpack.c.bf16 %v639_v5, %v638_v4  ;;  %v1526_v8 = vpop.f32.mrb[28].mxu0  ;;  %v1437_v9 = vpack.c.bf16 %v1077_v6, %v1076_v2  ;;  %v1608_v10 = vpop.f32.mrb[28].mxu1 }
 0x132   : > { %v1527_v11 = vpop.f32.mrb[29].mxu0  ;;  %v1609_v12 = vpop.f32.mrb[29].mxu1 }
 0x133   : > { %1454 = vst [vmem:[%s1926_s30 + $0x30] sm:$0xff] %v1382_v7   ;;  %v1528_v13 = vadd.f32 %v1527_v11, %v1526_v8  ;;  %v1529_v14 = vpop.f32.mrb[30].mxu0  ;;  %1465 = vst [vmem:[%s1926_s30 + $0x88] sm:$0xff] %v1437_v9   ;;  %v1610_v15 = vadd.f32 %v1609_v12, %v1608_v10  ;;  %v1611_v16 = vpop.f32.mrb[30].mxu1 }
 0x134   : > { %v1530_v17 = vpop.f32.mrb[31].mxu0  ;;  %v1612_v18 = vpop.f32.mrb[31].mxu1 }
 0x135   : > { %v1531_v19 = vadd.f32 %v1530_v17, %v1529_v14  ;;  %v1078_v20 = vmax.f32 %v1610_v15, 0.0  ;;  %v1613_v21 = vadd.f32 %v1612_v18, %v1611_v16  ;;  %v640_v22 = vmax.f32 %v1528_v13, 0.0 }
 0x137   : > { %v641_v23 = vmax.f32 %v1531_v19, 0.0  ;;  %v1079_v24 = vmax.f32 %v1613_v21, 0.0 }
 0x139   : > { %v1387_v25 = vpack.c.bf16 %v641_v23, %v640_v22  ;;  %v1532_v26 = vpop.f32.mrb[32].mxu0  ;;  %v1442_v27 = vpack.c.bf16 %v1079_v24, %v1078_v20  ;;  %v1614_v28 = vpop.f32.mrb[32].mxu1 }
 0x13a   : > { %v1533_v29 = vpop.f32.mrb[33].mxu0  ;;  %v1615_v30 = vpop.f32.mrb[33].mxu1 }
 0x13b   : > { %1455 = vst [vmem:[%s1926_s30 + $0x38] sm:$0xff] %v1387_v25   ;;  %v1534_v31 = vadd.f32 %v1533_v29, %v1532_v26  ;;  %v1535_v32 = vpop.f32.mrb[34].mxu0  ;;  %1466 = vst [vmem:[%s1926_s30 + $0x90] sm:$0xff] %v1442_v27   ;;  %v1616_v33 = vadd.f32 %v1615_v30, %v1614_v28  ;;  %v1617_v34 = vpop.f32.mrb[34].mxu1 }
 0x13c   : > { %v1536_v35 = vpop.f32.mrb[35].mxu0  ;;  %v1618_v36 = vpop.f32.mrb[35].mxu1 }
 0x13d   : > { %v1537_v37 = vadd.f32 %v1536_v35, %v1535_v32  ;;  %v1080_v38 = vmax.f32 %v1616_v33, 0.0  ;;  %v1619_v39 = vadd.f32 %v1618_v36, %v1617_v34  ;;  %v642_v40 = vmax.f32 %v1534_v31, 0.0 }
 0x13f   : > { %v643_v41 = vmax.f32 %v1537_v37, 0.0  ;;  %v1081_v42 = vmax.f32 %v1619_v39, 0.0 }
 0x141   : > { %v1392_v43 = vpack.c.bf16 %v643_v41, %v642_v40  ;;  %v1538_v44 = vpop.f32.mrb[36].mxu0  ;;  %v1447_v45 = vpack.c.bf16 %v1081_v42, %v1080_v38  ;;  %v1620_v46 = vpop.f32.mrb[36].mxu1 }
 0x142   : > { %v1539_v47 = vpop.f32.mrb[37].mxu0  ;;  %v1621_v48 = vpop.f32.mrb[37].mxu1 }
 0x143   : > { %1456 = vst [vmem:[%s1926_s30 + $0x40] sm:$0xff] %v1392_v43   ;;  %v1540_v49 = vadd.f32 %v1539_v47, %v1538_v44  ;;  %v1541_v50 = vpop.f32.mrb[38].mxu0  ;;  %1467 = vst [vmem:[%s1926_s30 + $0x98] sm:$0xff] %v1447_v45   ;;  %v1622_v51 = vadd.f32 %v1621_v48, %v1620_v46  ;;  %v1623_v52 = vpop.f32.mrb[38].mxu1 }
 0x144   : > { %v1542_v53 = vpop.f32.mrb[39].mxu0  ;;  %v1624_v54 = vpop.f32.mrb[39].mxu1 }
 0x145   : > { %v1543_v55 = vadd.f32 %v1542_v53, %v1541_v50  ;;  %v1082_v56 = vmax.f32 %v1622_v51, 0.0  ;;  %v644_v57 = vmax.f32 %v1540_v49, 0.0 }
 0x147   : > { %v645_v58 = vmax.f32 %v1543_v55, 0.0  ;;  %v1348_v59 = vpack.c.bf16 %v1082_v56, %v1082_v56 }
 0x149   : > { %v1397_v60 = vpack.c.bf16 %v645_v58, %v644_v57  ;;  %v1544_v61 = vpop.f32.mrb[40].mxu0  ;;  %1128 = vst [vmem:[%s1926_s30 + $0xa0] sm:$0x3] %v1348_v59 }
 0x14a   : > { %v1545_v62 = vpop.f32.mrb[41].mxu0 }
 0x14b   : > { %1457 = vst [vmem:[%s1926_s30 + $0x48] sm:$0xff] %v1397_v60   ;;  %v1546_v63 = vadd.f32 %v1545_v62, %v1544_v61  ;;  %v1547_v0 = vpop.f32.mrb[42].mxu0 }
 0x14c   : > { %v1548_v1 = vpop.f32.mrb[43].mxu0 }
 0x14d   : > { %v1549_v2 = vadd.f32 %v1548_v1, %v1547_v0  ;;  %v646_v3 = vmax.f32 %v1546_v63, 0.0 }
 0x14f   : > { %v647_v4 = vmax.f32 %v1549_v2, 0.0 }
 0x151   : > { %v1402_v5 = vpack.c.bf16 %v647_v4, %v646_v3 }
 0x153   : > { %1458 = vst [vmem:[%s1926_s30 + $0x50] sm:$0xff] %v1402_v5  }
 0x154 PF: > { %s12_s9 = sadd.s32 1, %s1752_s9  }
 0x155   : > { %p9_p4 = scmp.ge.s32.totalorder %s12_s9, 4  }
 0x157   :  { %11 = sbr.rel (!%p9_p4) target bundleno = 1 (0x1), region = 58 }

// kernel: resnet_forward.13
= control target key start
LH: loop header
LB: loop body
LE: loop exit
PB: predicated region body
PF: predicated region fallthrough
CT: control target
= control target key end

     0   :  { %s818_s9 = smov 0   ;;  %s911_s0 = inlined_call_operand.vmem [shape: bf16[2,100,256], index: 0, kind: input, shape index: {}]   ;;  %s912_s1 = inlined_call_operand.vmem [shape: bf16[256,128], index: 1, kind: input, shape index: {}]   ;;  %s913_s2 = inlined_call_operand.vmem [shape: bf16[2,100,128], index: 2, kind: output, shape index: {}]  }
   0x1 LB: > { %s575_s10 = sadd.s32 4294967295, %s801_s9   ;;  %p579_p0 = scmp.ge.s32.totalorder %s801_s9, 1  ;;  %s801_s9 = sphi %s818_s9, %s12_s9  }
   0x2   : > { %p112_p1 = scmp.lt.s32.totalorder %s801_s9, 3 }
   0x4   : > { %p113_p2 = pnand %p579_p0, %p112_p1 }
   0x5   : > { %v759_v0 = vld [vmem:[%s912_s1 + $0x40] sm:$0xff] (!%p113_p2)   ;;  %v761_v2 = vld [vmem:[%s912_s1 + $0x48] sm:$0xff] (!%p113_p2)   ;;  %p134_p3 = scmp.lt.s32.totalorder (!%p113_p2), %s575_s10, 1  ;;  %v763_v4 = vld [vmem:[%s912_s1 + $0x50] sm:$0xff] (!%p113_p2)  }
   0x6   : > { %116 = sbr.rel (%p113_p2) target bundleno = 284 (0x11c), region = 28  ;;  %v760_v1 = vld [vmem:[%s912_s1] sm:$0xff] (!%p113_p2)   ;;  %675 = vmatprep.subr.bf16.mxu0 (!%p113_p2), %v759_v0  ;;  %733 = vmatprep.subr.bf16.mxu1 (!%p113_p2), %v759_v0  ;;  %v762_v3 = vld [vmem:[%s912_s1 + $0x8] sm:$0xff] (!%p113_p2)   ;;  %v764_v5 = vld [vmem:[%s912_s1 + $0x10] sm:$0xff] (!%p113_p2)  }
   0x7   : > { %676 = vmatpush3.bf16.msra.mxu0 (!%p113_p2), %v760_v1  ;;  %741 = vmatpush3.bf16.msra.mxu1 (!%p113_p2), %v760_v1  ;;  %v765_v6 = vld [vmem:[%s912_s1 + $0x58] sm:$0xff] (!%p113_p2)   ;;  %v767_v8 = vld [vmem:[%s912_s1 + $0x60] sm:$0xff] (!%p113_p2)   ;;  %v769_v10 = vld [vmem:[%s912_s1 + $0x68] sm:$0xff] (!%p113_p2)  }
   0x8   : > { %677 = vmatprep.subr.bf16.mxu0 (!%p113_p2), %v761_v2  ;;  %734 = vmatprep.subr.bf16.mxu1 (!%p113_p2), %v761_v2  ;;  %v766_v7 = vld [vmem:[%s912_s1 + $0x18] sm:$0xff] (!%p113_p2)   ;;  %v768_v9 = vld [vmem:[%s912_s1 + $0x20] sm:$0xff] (!%p113_p2)   ;;  %v770_v13 = vld [vmem:[%s912_s1 + $0x28] sm:$0xff] (!%p113_p2)  }
   0x9   : > { %v771_v14 = vld [vmem:[%s912_s1 + $0x70] sm:$0xff] (!%p113_p2)   ;;  %v773_v16 = vld [vmem:[%s912_s1 + $0x78] sm:$0xff] (!%p113_p2)  }
   0xa   : > { %v772_v15 = vld [vmem:[%s912_s1 + $0x30] sm:$0xff] (!%p113_p2)   ;;  %v774_v17 = vld [vmem:[%s912_s1 + $0x38] sm:$0xff] (!%p113_p2)  }
   0xb   : > { %678 = vmatpush3.bf16.msra.mxu0 (!%p113_p2), %v762_v3  ;;  %742 = vmatpush3.bf16.msra.mxu1 (!%p113_p2), %v762_v3 }
   0xc   : > { %679 = vmatprep.subr.bf16.mxu0 (!%p113_p2), %v763_v4  ;;  %735 = vmatprep.subr.bf16.mxu1 (!%p113_p2), %v763_v4 }
   0xd   : > { %s915_s10 = smov (!%p134_p3, %s575_s10), 1 }
   0xe   : > { %s749_s25 = smul.u32 104, %s915_s10 }
   0xf   : > { %680 = vmatpush3.bf16.msra.mxu0 %v764_v5  ;;  %743 = vmatpush3.bf16.msra.mxu1 %v764_v5  ;;  %s750_s21 = smul.u32 52, %s915_s10 }
  0x10   : > { %681 = vmatprep.subr.bf16.mxu0 %v765_v6  ;;  %736 = vmatprep.subr.bf16.mxu1 %v765_v6  ;;  %s859_s4 = scalar_lea.vmem %s911_s0, %s749_s25 }
  0x11   : > { %v777_v11 = vld [vmem:[%s859_s4 + $0x4] ss:$8 sps:$4 sm:$0xff]   ;;  %v775_v18 = vld [vmem:[%s859_s4] ss:$8 sps:$4 sm:$0xff]   ;;  %v781_v20 = vld [vmem:[%s859_s4 + $0x14] ss:$8 sps:$4 sm:$0xff]   ;;  %s899_s24 = scalar_lea.vmem %s913_s2, %s750_s21 }
  0x12   : > { %v780_v12 = vld [vmem:[%s859_s4 + $0x44] ss:$8 sps:$4 sm:$0xff]   ;;  %385 = vmatprep.mubr.bf16.mxu0 %v777_v11  ;;  %v778_v19 = vld [vmem:[%s859_s4 + $0x40] ss:$8 sps:$4 sm:$0xff]   ;;  %v784_v21 = vld [vmem:[%s859_s4 + $0x54] ss:$8 sps:$4 sm:$0xff]  }
  0x13   : > { %682 = vmatpush3.bf16.msra.mxu0 %v766_v7  ;;  %744 = vmatpush3.bf16.msra.mxu1 %v766_v7  ;;  %v157_v22 = vld [vmem:[%s859_s4 + $0x60] sm:$0x33]  ;;  %v783_v23 = vld [vmem:[%s859_s4 + $0x10] ss:$8 sps:$4 sm:$0xff]   ;;  %v791_v29 = vld [vmem:[%s859_s4 + $0x34] ss:$8 sps:$4 sm:$0xff]  }
  0x14   : > { %683 = vmatprep.subr.bf16.mxu0 %v767_v8  ;;  %737 = vmatprep.subr.bf16.mxu1 %v767_v8  ;;  %v788_v24 = vld [vmem:[%s859_s4 + $0x50] ss:$8 sps:$4 sm:$0xff]   ;;  %v786_v25 = vld [vmem:[%s859_s4 + $0x24] ss:$8 sps:$4 sm:$0xff]   ;;  %v595_v26 = vcombine.high %v157_v22, %v157_v22  ;;  %v789_v27 = vld [vmem:[%s859_s4 + $0x20] ss:$8 sps:$4 sm:$0xff]   ;;  %v594_v28 = vcombine.low %v157_v22, %v157_v22 }
  0x15   : > { %417 = vmatprep.mubr.bf16.mxu1 %v780_v12  ;;  %v794_v30 = vld [vmem:[%s859_s4 + $0x30] ss:$8 sps:$4 sm:$0xff]  }
  0x17   : > { %684 = vmatpush3.bf16.msra.mxu0 %v768_v9  ;;  %745 = vmatpush3.bf16.msra.mxu1 %v768_v9 }
  0x18   : > { %685 = vmatprep.subr.bf16.mxu0 %v769_v10  ;;  %738 = vmatprep.subr.bf16.mxu1 %v769_v10 }
  0x1b   : > { %686 = vmatpush3.bf16.msra.mxu0 %v770_v13  ;;  %746 = vmatpush3.bf16.msra.mxu1 %v770_v13 }
  0x1c   : > { %687 = vmatprep.subr.bf16.mxu0 %v771_v14  ;;  %739 = vmatprep.subr.bf16.mxu1 %v771_v14 }
  0x1f   : > { %688 = vmatpush3.bf16.msra.mxu0 %v772_v15  ;;  %747 = vmatpush3.bf16.msra.mxu1 %v772_v15 }
  0x20   : > { %689 = vmatprep.subr.bf16.mxu0 %v773_v16  ;;  %740 = vmatprep.subr.bf16.mxu1 %v773_v16 }
  0x23   : > { %690 = vmatpush3.bf16.msra.mxu0 %v774_v17  ;;  %748 = vmatpush3.bf16.msra.mxu1 %v774_v17 }
  0x26   : > { %386 = vmatmul.mubr.bf16.vlgmr.msra.gmra.mrb[0].mxu0 %v775_v18  ;;  %418 = vmatmul.mubr.bf16.vlgmr.msra.gmra.mrb[0].mxu1 %v778_v19 }
  0x27   : > { %393 = vmatprep.mubr.bf16.mxu0 %v781_v20  ;;  %425 = vmatprep.mubr.bf16.mxu1 %v784_v21 }
  0x2e   : > { %394 = vmatmul.mubr.bf16.gmra.mrb[4].mxu0 %v783_v23  ;;  %426 = vmatmul.mubr.bf16.gmra.mrb[4].mxu1 %v788_v24 }
  0x2f   : > { %401 = vmatprep.mubr.bf16.mxu0 %v786_v25  ;;  %433 = vmatprep.mubr.bf16.mxu1 %v595_v26 }
  0x36   : > { %402 = vmatmul.mubr.bf16.gmra.mrb[8].mxu0 %v789_v27  ;;  %434 = vmatmul.mubr.bf16.gmra.mrb[8].mxu1 %v594_v28 }
  0x37   : > { %409 = vmatprep.mubr.bf16.mxu0 %v791_v29 }
  0x3e   : > { %410 = vmatmul.mubr.bf16.gmra.mrb[12].mxu0 %v794_v30 }
  0xf9   : > { %v691_v31 = vpop.f32.mrb[0].mxu0  ;;  %v715_v32 = vpop.f32.mrb[0].mxu1 }
  0xfa   : > { %v692_v33 = vpop.f32.mrb[1].mxu0  ;;  %v716_v34 = vpop.f32.mrb[1].mxu1 }
  0xfb   : > { %v693_v35 = vadd.f32 %v692_v33, %v691_v31  ;;  %v694_v36 = vpop.f32.mrb[2].mxu0  ;;  %v717_v37 = vadd.f32 %v716_v34, %v715_v32  ;;  %v718_v38 = vpop.f32.mrb[2].mxu1 }
  0xfc   : > { %v695_v39 = vpop.f32.mrb[3].mxu0  ;;  %v719_v40 = vpop.f32.mrb[3].mxu1 }
  0xfd   : > { %v696_v41 = vadd.f32 %v695_v39, %v694_v36  ;;  %v449_v42 = vmax.f32 %v717_v37, 0.0  ;;  %v720_v43 = vadd.f32 %v719_v40, %v718_v38  ;;  %v441_v44 = vmax.f32 %v693_v35, 0.0 }
  0xff   : > { %v442_v45 = vmax.f32 %v696_v41, 0.0  ;;  %v450_v46 = vmax.f32 %v720_v43, 0.0 }
 0x101   : > { %v643_v47 = vpack.c.bf16 %v442_v45, %v441_v44  ;;  %v697_v48 = vpop.f32.mrb[4].mxu0  ;;  %v663_v49 = vpack.c.bf16 %v450_v46, %v449_v42  ;;  %v721_v50 = vpop.f32.mrb[4].mxu1 }
 0x102   : > { %v698_v51 = vpop.f32.mrb[5].mxu0  ;;  %v722_v52 = vpop.f32.mrb[5].mxu1 }
 0x103   : > { %644 = vst [vmem:[%s899_s24] sm:$0xff] %v643_v47   ;;  %v699_v53 = vadd.f32 %v698_v51, %v697_v48  ;;  %v700_v54 = vpop.f32.mrb[6].mxu0  ;;  %673 = vst [vmem:[%s899_s24 + $0x20] sm:$0xff] %v663_v49   ;;  %v723_v55 = vadd.f32 %v722_v52, %v721_v50  ;;  %v724_v56 = vpop.f32.mrb[6].mxu1 }
 0x104   : > { %v701_v57 = vpop.f32.mrb[7].mxu0  ;;  %v725_v58 = vpop.f32.mrb[7].mxu1 }
 0x105   : > { %v702_v59 = vadd.f32 %v701_v57, %v700_v54  ;;  %v451_v60 = vmax.f32 %v723_v55, 0.0  ;;  %v726_v61 = vadd.f32 %v725_v58, %v724_v56  ;;  %v443_v62 = vmax.f32 %v699_v53, 0.0 }
 0x107   : > { %v444_v63 = vmax.f32 %v702_v59, 0.0  ;;  %v452_v0 = vmax.f32 %v726_v61, 0.0 }
 0x109   : > { %v648_v1 = vpack.c.bf16 %v444_v63, %v443_v62  ;;  %v703_v2 = vpop.f32.mrb[8].mxu0  ;;  %v668_v3 = vpack.c.bf16 %v452_v0, %v451_v60  ;;  %v727_v4 = vpop.f32.mrb[8].mxu1 }
 0x10a   : > { %v704_v5 = vpop.f32.mrb[9].mxu0  ;;  %v728_v6 = vpop.f32.mrb[9].mxu1 }
 0x10b   : > { %670 = vst [vmem:[%s899_s24 + $0x8] sm:$0xff] %v648_v1   ;;  %v705_v7 = vadd.f32 %v704_v5, %v703_v2  ;;  %v706_v8 = vpop.f32.mrb[10].mxu0  ;;  %674 = vst [vmem:[%s899_s24 + $0x28] sm:$0xff] %v668_v3   ;;  %v729_v9 = vadd.f32 %v728_v6, %v727_v4  ;;  %v730_v10 = vpop.f32.mrb[10].mxu1 }
 0x10c   : > { %v707_v11 = vpop.f32.mrb[11].mxu0  ;;  %v731_v12 = vpop.f32.mrb[11].mxu1 }
 0x10d   : > { %v708_v13 = vadd.f32 %v707_v11, %v706_v8  ;;  %v453_v14 = vmax.f32 %v729_v9, 0.0  ;;  %v445_v15 = vmax.f32 %v705_v7, 0.0 }
 0x10f   : > { %v446_v16 = vmax.f32 %v708_v13, 0.0  ;;  %v639_v17 = vpack.c.bf16 %v453_v14, %v453_v14 }
 0x111   : > { %v653_v18 = vpack.c.bf16 %v446_v16, %v445_v15  ;;  %v709_v19 = vpop.f32.mrb[12].mxu0  ;;  %519 = vst [vmem:[%s899_s24 + $0x30] sm:$0x3] %v639_v17 }
 0x112   : > { %v710_v20 = vpop.f32.mrb[13].mxu0 }
 0x113   : > { %671 = vst [vmem:[%s899_s24 + $0x10] sm:$0xff] %v653_v18   ;;  %v711_v21 = vadd.f32 %v710_v20, %v709_v19  ;;  %v712_v22 = vpop.f32.mrb[14].mxu0 }
 0x114   : > { %v713_v23 = vpop.f32.mrb[15].mxu0 }
 0x115   : > { %v714_v24 = vadd.f32 %v713_v23, %v712_v22  ;;  %v447_v25 = vmax.f32 %v711_v21, 0.0 }
 0x117   : > { %v448_v26 = vmax.f32 %v714_v24, 0.0 }
 0x119   : > { %v658_v27 = vpack.c.bf16 %v448_v26, %v447_v25 }
 0x11b   : > { %672 = vst [vmem:[%s899_s24 + $0x18] sm:$0xff] %v658_v27  }
 0x11c PF: > { %s12_s9 = sadd.s32 1, %s801_s9  }
 0x11d   : > { %p9_p4 = scmp.ge.s32.totalorder %s12_s9, 4  }
 0x11f   :  { %11 = sbr.rel (!%p9_p4) target bundleno = 1 (0x1), region = 58 }

// kernel: resnet_forward.15
= control target key start
LH: loop header
LB: loop body
LE: loop exit
PB: predicated region body
PF: predicated region fallthrough
CT: control target
= control target key end

     0   :  { %8 = vsyncpa [#allocation3], 0  ;;  %s738_s0 = inlined_call_operand.vmem [shape: bf16[2,100,128], index: 0, kind: input, shape index: {}]   ;;  %s739_s1 = inlined_call_operand.vmem [shape: bf16[128,128], index: 1, kind: input, shape index: {}]   ;;  %s740_s2 = inlined_call_operand.vmem [shape: f32[1,128], index: 2, kind: input, shape index: {}]   ;;  %s741_s3 = inlined_call_operand.hbm [shape: f32[2,1,128], index: 3, kind: output, shape index: {}]  }
   0x1   :  { %10 = vsyncpa [#allocation3 + $0x1], 0  ;;  %s602_s12 = smov 0   ;;  %s604_s13 = smov 0  }
   0x2   :  { %s606_s14 = smov 0   ;;  %s608_s15 = smov 0  }
   0x3 LB: > { %s623_s16 = sadd.s32 4294967295, %s577_s15   ;;  %s391_s17 = sadd.s32 4294967294, %s577_s15   ;;  %s577_s15 = sphi %s608_s15, %s747_s15   ;;  %s573_s14 = sphi %s606_s14, %s746_s14   ;;  %s569_s13 = sphi %s604_s13, %s745_s13   ;;  %s565_s12 = sphi %s602_s12, %s744_s12  }
   0x4   : > { %s627_s18 = sadd.s32 1, %s577_s15   ;;  %s91_s19 = sadd.s32 1, %s573_s14 }
   0x5   : > { %s88_s20 = ssub.s32 %s577_s15, %s627_s18  ;;  %p101_p0 = scmp.ne.s32.totalorder %s573_s14, %s569_s13 }
   0x6   : > { %p89_p1 = scmp.eq.s32.totalorder %s88_s20, 0  ;;  %p102_p2 = scmp.eq.s32.totalorder %s623_s16, 1 }
   0x7   : > { %p107_p3 = scmp.ne.s32.totalorder %s569_s13, %s565_s12  ;;  %p108_p4 = scmp.eq.s32.totalorder %s391_s17, 1 }
   0x8   : > { %s638_s21 = scalar_select %p89_p1, %s573_s14, %s91_s19  }
   0x9   : > { %p640_p5 = por %p102_p2, %p101_p0  ;;  %p644_p6 = por %p108_p4, %p107_p3 }
   0xa   : > { %p394_p7 = scmp.ge.s32.totalorder %s577_s15, 1  ;;  %p140_p8 = scmp.lt.s32.totalorder %s577_s15, 3 }
   0xc   : > { %p141_p9 = pnand %p394_p7, %p140_p8 }
   0xd   : > { %v507_v0 = vld [vmem:[%s739_s1] sm:$0xff] (!%p141_p9)   ;;  %v579_v1 = vmov (!%p141_p9), 0.0   ;;  %v508_v2 = vld [vmem:[%s739_s1 + $0x8] sm:$0xff] (!%p141_p9)   ;;  %vm580_vm0 = vmmov (!%p141_p9), 0   ;;  %p163_p10 = scmp.lt.s32.totalorder (!%p141_p9), %s623_s16, 1  ;;  %v509_v3 = vld [vmem:[%s739_s1 + $0x10] sm:$0xff] (!%p141_p9)  }
   0xe   : > { %144 = sbr.rel (%p141_p9) target bundleno = 297 (0x129), region = 32  ;;  %445 = vmatprep.subr.bf16.mxu0 (!%p141_p9), %v579_v1  ;;  %461 = vmatprep.mubr.msk.bf16.mxu0 (!%p141_p9), %vm580_vm0, %v579_v1  ;;  %v510_v6 = vld [vmem:[%s739_s1 + $0x18] sm:$0xff] (!%p141_p9)   ;;  %v511_v13 = vld [vmem:[%s739_s1 + $0x20] sm:$0xff] (!%p141_p9)   ;;  %v512_v19 = vld [vmem:[%s739_s1 + $0x28] sm:$0xff] (!%p141_p9)   ;;  %vm206_vm1 = vcmask (!%p141_p9), 1043456   ;;  %s161_s27 = sand.u32 (!%p141_p9), 1, %s569_s13  }
   0xf   : > { %446 = vmatpush3.bf16.msra.mxu0 (!%p141_p9), %v507_v0  ;;  %v513_v25 = vld [vmem:[%s739_s1 + $0x30] sm:$0xff] (!%p141_p9)   ;;  %v514_v32 = vld [vmem:[%s739_s1 + $0x38] sm:$0xff] (!%p141_p9)   ;;  %v233_v50 = vld [vmem:[%s740_s2] sm:$0x1] (!%p141_p9)  ;;  %s404_s30 = sshll.u32 (!%p141_p9), %s623_s16, 4  ;;  %s324_s9 = scalar_lea.sflag (!%p141_p9), [#allocation3], %s161_s27 }
  0x10   : > { %447 = vmatprep.subr.bf16.mxu0 (!%p141_p9), %v579_v1  ;;  %s696_s8 = scalar_lea.hbm (!%p141_p9), %s741_s3, %s404_s30  ;;  %s581_s10 = smov (!%p141_p9), [#allocation2]  }
  0x11   : > { %s519_s11 = sshll.u32 (!%p141_p9), %s581_s10, 4  ;;  %s520_s11 = int_to_ptr.vmem [resolvable:$false] %s519_s11 }
  0x12   : > { %s521_s17 = scalar_lea.vmem (!%p141_p9), %s520_s11, 32 }
  0x13   : > { %448 = vmatpush3.bf16.msra.mxu0 (!%p141_p9), %v508_v2 }
  0x14   : > { %449 = vmatprep.subr.bf16.mxu0 (!%p141_p9), %v579_v1 }
  0x15   : > { %s164_s28 = scalar_select %p163_p10, %s623_s16, 1 }
  0x17   : > { %s465_s4 = smul.u32 52, %s164_s28  ;;  %450 = vmatpush3.bf16.msra.mxu0 %v509_v3 }
  0x18   : > { %451 = vmatprep.subr.bf16.mxu0 %v579_v1 }
  0x19   : > { %s664_s7 = scalar_lea.vmem %s738_s0, %s465_s4  ;;  %s162_s4 = scalar_lea.vmem [#allocation2], %s161_s27 }
  0x1a   : > { %v408_v4 = vld [vmem:[%s664_s7] sm:$0xff]   ;;  %v431_v5 = vld [vmem:[%s664_s7 + $0x8] sm:$0xff]   ;;  %v432_v10 = vld [vmem:[%s664_s7 + $0x10] sm:$0xff]   ;;  %s336_s5 = sshll.u32 %s162_s4, 4  ;;  %s698_s5 = int_to_ptr.vmem [resolvable:$true] %s336_s5 }
  0x1b   : > { %v409_v7 = vunpack.c.l.bf16 %v408_v4  ;;  %v410_v8 = vunpack.c.h.bf16 %v408_v4  ;;  %v413_v9 = vunpack.c.l.bf16 %v431_v5  ;;  %v414_v11 = vunpack.c.h.bf16 %v431_v5  ;;  %452 = vmatpush3.bf16.msra.mxu0 %v510_v6  ;;  %v433_v16 = vld [vmem:[%s664_s7 + $0x18] sm:$0xff]   ;;  %v434_v22 = vld [vmem:[%s664_s7 + $0x20] sm:$0xff]   ;;  %v435_v28 = vld [vmem:[%s664_s7 + $0x28] sm:$0xff]   ;;  %s515_s16 = scalar_lea.vmem %s698_s5, 16  ;;  %p522_p0 = scmp.lt.s32.totalorder %s698_s5, %s520_s11 }
  0x1c   : > { %453 = vmatprep.subr.bf16.mxu0 %v579_v1  ;;  %v417_v14 = vunpack.c.l.bf16 %v432_v10  ;;  %v418_v17 = vunpack.c.h.bf16 %v432_v10  ;;  %v421_v20 = vunpack.c.l.bf16 %v433_v16  ;;  %v422_v23 = vunpack.c.h.bf16 %v433_v16  ;;  %v181_v30 = vld [vmem:[%s664_s7 + $0x30] sm:$0x3]  ;;  %p516_p11 = scmp.ne.s32.totalorder %s698_s5, %s515_s16  ;;  %p523_p1 = scmp.lt.s32.totalorder %s521_s17, %s515_s16 }
  0x1d   : > { %v195_v12 = vadd.f32 %v410_v8, %v409_v7  ;;  %v425_v26 = vunpack.c.l.bf16 %v434_v22  ;;  %v426_v29 = vunpack.c.h.bf16 %v434_v22  ;;  %v429_v33 = vunpack.c.l.bf16 %v435_v28 }
  0x1e   : > { %v194_v35 = vunpack.c.l.bf16 %v181_v30  ;;  %v430_v36 = vunpack.c.h.bf16 %v435_v28  ;;  %p517_p12 = pnand %p516_p11, %p640_p5  ;;  %p524_p2 = por %p523_p1, %p522_p0 }
  0x1f   : > { %v196_v15 = vadd.f32 %v413_v9, %v195_v12  ;;  %454 = vmatpush3.bf16.msra.mxu0 %v511_v13 }
  0x20   : > { %455 = vmatprep.subr.bf16.mxu0 %v579_v1  ;;  %v207_v39 = vsel %vm206_vm1, %v194_v35, 0.0  ;;  %p518_p13 = pneg %p517_p12 }
  0x21   : > { %v197_v18 = vadd.f32 %v414_v11, %v196_v15 }
  0x22   : > { %p525_p3 = pnand %p524_p2, %p518_p13 }
  0x23   : > { %v198_v21 = vadd.f32 %v417_v14, %v197_v18  ;;  %456 = vmatpush3.bf16.msra.mxu0 %v512_v19 }
  0x24   : > { %457 = vmatprep.subr.bf16.mxu0 %v579_v1 }
  0x25   : > { %v199_v24 = vadd.f32 %v418_v17, %v198_v21 }
  0x27   : > { %v200_v27 = vadd.f32 %v421_v20, %v199_v24  ;;  %458 = vmatpush3.bf16.msra.mxu0 %v513_v25 }
  0x28   : > { %459 = vmatprep.subr.bf16.mxu0 %v579_v1 }
  0x29   : > { %v201_v31 = vadd.f32 %v422_v23, %v200_v27 }
  0x2b   : > { %v202_v34 = vadd.f32 %v425_v26, %v201_v31  ;;  %460 = vmatpush3.bf16.msra.mxu0 %v514_v32 }
  0x2d   : > { %v203_v37 = vadd.f32 %v426_v29, %v202_v34 }
  0x2f   : > { %v204_v38 = vadd.f32 %v429_v33, %v203_v37 }
  0x31   : > { %v205_v40 = vadd.f32 %v430_v36, %v204_v38 }
  0x33   : > { %v208_v41 = vadd.f32 %v207_v39, %v205_v40 }
  0x35   : > { %v209_v42 = vrot.slane %v208_v41, 4 }
  0x37   : > { %v210_v43 = vadd.f32 %v209_v42, %v208_v41 }
  0x39   : > { %v211_v44 = vrot.slane %v210_v43, 2 }
  0x3b   : > { %v212_v45 = vadd.f32 %v211_v44, %v210_v43 }
  0x3d   : > { %v213_v46 = vrot.slane %v212_v45, 1 }
  0x3f   : > { %v214_v47 = vadd.f32 %v213_v46, %v212_v45 }
  0x41   : > { %v215_v48 = vmul.f32 0.015625, %v214_v47 }
  0x43   : > { %v216_v49 = vpack.c.bf16 %v215_v48, %v215_v48 }
  0x45   : > { %462 = vmatmul.mubr.bf16.vlgmr.msra.gmra.mrb[0].mxu0 %v216_v49 }
 0x118   : > { %v316_v51 = vpop.f32.mrb[0].mxu0 }
 0x119   : > { %v317_v52 = vadd.f32 %v316_v51, %v233_v50  ;;  %v463_v53 = vpop.f32.mrb[1].mxu0 }
 0x11a   : > { %v319_v54 = vpop.f32.mrb[2].mxu0 }
 0x11b   : > { %322 = vst [vmem:[%s162_s4] sm:$0x1] %v317_v52  ;;  %v464_v55 = vpop.f32.mrb[3].mxu0 }
 0x11c   : > { %528 = shalt.err (!%p525_p3)
}
 0x11d   : > { %s529_s19 = scalar_lea.hbm %s696_s8, 16  ;;  %s533_s25 = scalar_lea.hbm %s741_s3, 32 }
 0x11e   : > { %p530_p4 = scmp.ne.s32.totalorder %s696_s8, %s529_s19  ;;  %p534_p9 = scmp.lt.u32.totalorder %s696_s8, %s741_s3 }
 0x11f   : > { %p535_p10 = scmp.lt.u32.totalorder %s533_s25, %s529_s19  ;;  %p537_p12 = scmp.lt.u32.totalorder %s529_s19, %s696_s8 }
 0x120   : > { %p531_p7 = pnand %p530_p4, %p640_p5 }
 0x121   : > { %p536_p11 = por %p535_p10, %p534_p9 }
 0x122   : > { %p532_p8 = pneg %p531_p7 }
 0x123   : > { %p538_p13 = por %p537_p12, %p536_p11 }
 0x125   : > { %p539_p0 = pnand %p538_p13, %p532_p8 }
 0x127   : > { %542 = shalt.err (!%p539_p0)
}
 0x128   : > { %466 = dma.vmem_to_hbm [thread:$0]  (%p640_p5), %s698_s5, 16, %s696_s8, %s324_s9  }
 0x129 PF: > { %p472_p1 = scmp.ge.s32.totalorder %s577_s15, 2  ;;  %s348_s28 = sand.u32 1, %s565_s12  }
 0x12a   : > { %s349_s29 = scalar_lea.sflag [#allocation3], %s348_s28 }
 0x12b   : > { %p469_p2 = pnand %p472_p1, %p644_p6 }
 0x12d   : > { %560 = dma.done.wait (!%p469_p2), %s349_s29, 16  }
 0x12e   : > { %562 = vsyncadd (!%p469_p2), %s349_s29, 4294967280  ;;  %p13_p3 = scmp.ge.s32.totalorder %s627_s18, 4   ;;  %s744_s12 = smov %s569_s13 }
 0x12f   : > { %s745_s13 = smov %s573_s14  ;;  %s746_s14 = smov %s638_s21 }
 0x130   : > { %s747_s15 = smov %s627_s18  ;;  %15 = sbr.rel (!%p13_p3) target bundleno = 3 (0x3), region = 67 }
 0x137   :  { %353 = vsyncpa [#allocation3], 1 }
 0x138   :  { %355 = vsyncpa [#allocation3 + $0x1], 1 }

// kernel: resnet_forward.14
= control target key start
LH: loop header
LB: loop body
LE: loop exit
PB: predicated region body
PF: predicated region fallthrough
CT: control target
= control target key end

     0   :  { %s1100_s9 = smov 0   ;;  %s1250_s0 = inlined_call_operand.vmem [shape: bf16[2,100,384], index: 0, kind: input, shape index: {}]   ;;  %s1251_s1 = inlined_call_operand.vmem [shape: bf16[384,128], index: 1, kind: input, shape index: {}]   ;;  %s1252_s2 = inlined_call_operand.vmem [shape: bf16[2,100,128], index: 2, kind: output, shape index: {}]  }
   0x1 LB: > { %s780_s10 = sadd.s32 4294967295, %s1081_s9   ;;  %p784_p0 = scmp.ge.s32.totalorder %s1081_s9, 1  ;;  %s1081_s9 = sphi %s1100_s9, %s12_s9  }
   0x2   : > { %p112_p1 = scmp.lt.s32.totalorder %s1081_s9, 3 }
   0x4   : > { %p113_p2 = pnand %p784_p0, %p112_p1 }
   0x5   : > { %v1024_v0 = vld [vmem:[%s1251_s1 + $0x40] sm:$0xff] (!%p113_p2)   ;;  %v1083_v1 = vmov (!%p113_p2), 0.0   ;;  %v1027_v4 = vld [vmem:[%s1251_s1 + $0x48] sm:$0xff] (!%p113_p2)   ;;  %vm1084_vm0 = vmmov (!%p113_p2), 0   ;;  %v1030_v7 = vld [vmem:[%s1251_s1 + $0x50] sm:$0xff] (!%p113_p2)   ;;  %p134_p3 = scmp.lt.s32.totalorder (!%p113_p2), %s780_s10, 1 }
   0x6   : > { %116 = sbr.rel (%p113_p2) target bundleno = 308 (0x134), region = 28  ;;  %968 = vmatprep.subr.bf16.mxu1 (!%p113_p2), %v1083_v1  ;;  %v1025_v2 = vld [vmem:[%s1251_s1] sm:$0xff] (!%p113_p2)   ;;  %895 = vmatprep.subr.bf16.mxu0 (!%p113_p2), %v1024_v0  ;;  %v1028_v5 = vld [vmem:[%s1251_s1 + $0x8] sm:$0xff] (!%p113_p2)   ;;  %v1031_v8 = vld [vmem:[%s1251_s1 + $0x10] sm:$0xff] (!%p113_p2)  }
   0x7   : > { %v1026_v3 = vld [vmem:[%s1251_s1 + $0x80] sm:$0xff] (!%p113_p2)   ;;  %896 = vmatpush3.bf16.msra.mxu0 (!%p113_p2), %v1025_v2  ;;  %984 = vmatprep.mubr.msk.bf16.mxu1 (!%p113_p2), %vm1084_vm0, %v1083_v1  ;;  %v1029_v6 = vld [vmem:[%s1251_s1 + $0x88] sm:$0xff] (!%p113_p2)   ;;  %v1032_v9 = vld [vmem:[%s1251_s1 + $0x90] sm:$0xff] (!%p113_p2)  }
   0x8   : > { %969 = vmatpush3.bf16.msra.mxu1 (!%p113_p2), %v1026_v3  ;;  %897 = vmatprep.subr.bf16.mxu0 (!%p113_p2), %v1027_v4  ;;  %v1033_v10 = vld [vmem:[%s1251_s1 + $0x58] sm:$0xff] (!%p113_p2)   ;;  %v1036_v13 = vld [vmem:[%s1251_s1 + $0x60] sm:$0xff] (!%p113_p2)   ;;  %v1039_v16 = vld [vmem:[%s1251_s1 + $0x68] sm:$0xff] (!%p113_p2)  }
   0x9   : > { %970 = vmatprep.subr.bf16.mxu1 (!%p113_p2), %v1083_v1  ;;  %v1034_v11 = vld [vmem:[%s1251_s1 + $0x18] sm:$0xff] (!%p113_p2)   ;;  %v1037_v14 = vld [vmem:[%s1251_s1 + $0x20] sm:$0xff] (!%p113_p2)   ;;  %v1040_v17 = vld [vmem:[%s1251_s1 + $0x28] sm:$0xff] (!%p113_p2)  }
   0xa   : > { %v1035_v12 = vld [vmem:[%s1251_s1 + $0x98] sm:$0xff] (!%p113_p2)   ;;  %v1038_v15 = vld [vmem:[%s1251_s1 + $0xa0] sm:$0xff] (!%p113_p2)   ;;  %v1041_v18 = vld [vmem:[%s1251_s1 + $0xa8] sm:$0xff] (!%p113_p2)  }
   0xb   : > { %898 = vmatpush3.bf16.msra.mxu0 (!%p113_p2), %v1028_v5  ;;  %v1042_v19 = vld [vmem:[%s1251_s1 + $0x70] sm:$0xff] (!%p113_p2)   ;;  %v1045_v22 = vld [vmem:[%s1251_s1 + $0x78] sm:$0xff] (!%p113_p2)  }
   0xc   : > { %971 = vmatpush3.bf16.msra.mxu1 (!%p113_p2), %v1029_v6  ;;  %899 = vmatprep.subr.bf16.mxu0 (!%p113_p2), %v1030_v7  ;;  %v1043_v20 = vld [vmem:[%s1251_s1 + $0x30] sm:$0xff] (!%p113_p2)   ;;  %v1046_v24 = vld [vmem:[%s1251_s1 + $0x38] sm:$0xff] (!%p113_p2)  }
   0xd   : > { %972 = vmatprep.subr.bf16.mxu1 %v1083_v1  ;;  %s1254_s10 = smov (!%p134_p3, %s780_s10), 1  ;;  %v1044_v21 = vld [vmem:[%s1251_s1 + $0xb0] sm:$0xff]   ;;  %v1047_v25 = vld [vmem:[%s1251_s1 + $0xb8] sm:$0xff]  }
   0xe   : > { %s1012_s19 = smul.u32 156, %s1254_s10 }
   0xf   : > { %900 = vmatpush3.bf16.msra.mxu0 %v1031_v8  ;;  %s1013_s11 = smul.u32 52, %s1254_s10 }
  0x10   : > { %973 = vmatpush3.bf16.msra.mxu1 %v1032_v9  ;;  %901 = vmatprep.subr.bf16.mxu0 %v1033_v10  ;;  %s1186_s28 = scalar_lea.vmem %s1250_s0, %s1012_s19 }
  0x11   : > { %974 = vmatprep.subr.bf16.mxu1 %v1083_v1  ;;  %v1050_v23 = vld [vmem:[%s1186_s28 + $0x4] ss:$12 sps:$4 sm:$0xff]   ;;  %v1048_v26 = vld [vmem:[%s1186_s28] ss:$12 sps:$4 sm:$0xff]   ;;  %v1051_v27 = vld [vmem:[%s1186_s28 + $0x8] ss:$12 sps:$4 sm:$0xff]   ;;  %s1238_s14 = scalar_lea.vmem %s1252_s2, %s1013_s11 }
  0x12   : > { %502 = vmatprep.mubr.bf16.mxu0 %v1050_v23  ;;  %v1052_v28 = vld [vmem:[%s1186_s28 + $0x1c] ss:$12 sps:$4 sm:$0xff]   ;;  %v1054_v29 = vld [vmem:[%s1186_s28 + $0x18] ss:$12 sps:$4 sm:$0xff]   ;;  %v1055_v30 = vld [vmem:[%s1186_s28 + $0x20] ss:$12 sps:$4 sm:$0xff]  }
  0x13   : > { %902 = vmatpush3.bf16.msra.mxu0 %v1034_v11  ;;  %v1056_v31 = vld [vmem:[%s1186_s28 + $0x34] ss:$12 sps:$4 sm:$0xff]   ;;  %v1058_v32 = vld [vmem:[%s1186_s28 + $0x30] ss:$12 sps:$4 sm:$0xff]   ;;  %v1059_v33 = vld [vmem:[%s1186_s28 + $0x38] ss:$12 sps:$4 sm:$0xff]  }
  0x14   : > { %975 = vmatpush3.bf16.msra.mxu1 %v1035_v12  ;;  %903 = vmatprep.subr.bf16.mxu0 %v1036_v13  ;;  %v1060_v34 = vld [vmem:[%s1186_s28 + $0x4c] ss:$12 sps:$4 sm:$0xff]   ;;  %v1062_v35 = vld [vmem:[%s1186_s28 + $0x48] ss:$12 sps:$4 sm:$0xff]   ;;  %v1063_v36 = vld [vmem:[%s1186_s28 + $0x50] ss:$12 sps:$4 sm:$0xff]  }
  0x15   : > { %976 = vmatprep.subr.bf16.mxu1 %v1083_v1  ;;  %v1064_v37 = vld [vmem:[%s1186_s28 + $0x64] ss:$12 sps:$4 sm:$0xff]   ;;  %v1066_v38 = vld [vmem:[%s1186_s28 + $0x60] ss:$12 sps:$4 sm:$0xff]   ;;  %v1067_v39 = vld [vmem:[%s1186_s28 + $0x68] ss:$12 sps:$4 sm:$0xff]  }
  0x16   : > { %v1068_v40 = vld [vmem:[%s1186_s28 + $0x7c] ss:$12 sps:$4 sm:$0xff]   ;;  %v169_v41 = vld [vmem:[%s1186_s28 + $0x90] sm:$0x33]  ;;  %v1070_v42 = vld [vmem:[%s1186_s28 + $0x78] ss:$12 sps:$4 sm:$0xff]  }
  0x17   : > { %904 = vmatpush3.bf16.msra.mxu0 %v1037_v14  ;;  %v1071_v43 = vld [vmem:[%s1186_s28 + $0x80] ss:$12 sps:$4 sm:$0xff]   ;;  %v806_v44 = vcombine.high %v169_v41, %v169_v41  ;;  %v805_v45 = vcombine.low %v169_v41, %v169_v41  ;;  %v1074_v46 = vld [vmem:[%s1186_s28 + $0x98] ss:$0 sps:$4 sm:$0x33]  }
  0x18   : > { %977 = vmatpush3.bf16.msra.mxu1 %v1038_v15  ;;  %905 = vmatprep.subr.bf16.mxu0 %v1039_v16 }
  0x19   : > { %978 = vmatprep.subr.bf16.mxu1 %v1083_v1 }
  0x1b   : > { %906 = vmatpush3.bf16.msra.mxu0 %v1040_v17 }
  0x1c   : > { %979 = vmatpush3.bf16.msra.mxu1 %v1041_v18  ;;  %907 = vmatprep.subr.bf16.mxu0 %v1042_v19 }
  0x1d   : > { %980 = vmatprep.subr.bf16.mxu1 %v1083_v1 }
  0x1f   : > { %908 = vmatpush3.bf16.msra.mxu0 %v1043_v20 }
  0x20   : > { %981 = vmatpush3.bf16.msra.mxu1 %v1044_v21  ;;  %909 = vmatprep.subr.bf16.mxu0 %v1045_v22 }
  0x21   : > { %982 = vmatprep.subr.bf16.mxu1 %v1083_v1 }
  0x23   : > { %910 = vmatpush3.bf16.msra.mxu0 %v1046_v24 }
  0x24   : > { %983 = vmatpush3.bf16.msra.mxu1 %v1047_v25 }
  0x26   : > { %503 = vmatmul.mubr.bf16.vlgmr.msra.gmra.mrb[0].mxu0 %v1048_v26 }
  0x27   : > { %985 = vmatmul.mubr.bf16.vlgmr.msra.gmra.mrb[0].mxu1 %v1051_v27  ;;  %510 = vmatprep.mubr.bf16.mxu0 %v1052_v28 }
  0x28   : > { %988 = vmatprep.mubr.msk.bf16.mxu1 %vm1084_vm0, %v1083_v1 }
  0x2e   : > { %511 = vmatmul.mubr.bf16.gmra.mrb[4].mxu0 %v1054_v29 }
  0x2f   : > { %989 = vmatmul.mubr.bf16.gmra.mrb[4].mxu1 %v1055_v30  ;;  %518 = vmatprep.mubr.bf16.mxu0 %v1056_v31 }
  0x30   : > { %992 = vmatprep.mubr.msk.bf16.mxu1 %vm1084_vm0, %v1083_v1 }
  0x36   : > { %519 = vmatmul.mubr.bf16.gmra.mrb[8].mxu0 %v1058_v32 }
  0x37   : > { %993 = vmatmul.mubr.bf16.gmra.mrb[8].mxu1 %v1059_v33  ;;  %526 = vmatprep.mubr.bf16.mxu0 %v1060_v34 }
  0x38   : > { %996 = vmatprep.mubr.msk.bf16.mxu1 %vm1084_vm0, %v1083_v1 }
  0x3e   : > { %527 = vmatmul.mubr.bf16.gmra.mrb[12].mxu0 %v1062_v35 }
  0x3f   : > { %997 = vmatmul.mubr.bf16.gmra.mrb[12].mxu1 %v1063_v36  ;;  %534 = vmatprep.mubr.bf16.mxu0 %v1064_v37 }
  0x40   : > { %1000 = vmatprep.mubr.msk.bf16.mxu1 %vm1084_vm0, %v1083_v1 }
  0x46   : > { %535 = vmatmul.mubr.bf16.gmra.mrb[16].mxu0 %v1066_v38 }
  0x47   : > { %1001 = vmatmul.mubr.bf16.gmra.mrb[16].mxu1 %v1067_v39  ;;  %542 = vmatprep.mubr.bf16.mxu0 %v1068_v40 }
  0x48   : > { %1004 = vmatprep.mubr.msk.bf16.mxu1 %vm1084_vm0, %v1083_v1 }
  0x4e   : > { %543 = vmatmul.mubr.bf16.gmra.mrb[20].mxu0 %v1070_v42 }
  0x4f   : > { %1005 = vmatmul.mubr.bf16.gmra.mrb[20].mxu1 %v1071_v43  ;;  %550 = vmatprep.mubr.bf16.mxu0 %v806_v44 }
  0x50   : > { %1008 = vmatprep.mubr.msk.bf16.mxu1 %vm1084_vm0, %v1083_v1 }
  0x56   : > { %551 = vmatmul.mubr.bf16.gmra.mrb[24].mxu0 %v805_v45 }
  0x57   : > { %1009 = vmatmul.mubr.bf16.gmra.mrb[24].mxu1 %v1074_v46 }
  0xf9   : > { %v911_v47 = vpop.f32.mrb[0].mxu0 }
  0xfa   : > { %v592_v48 = vpop.f32.mrb[0].mxu1  ;;  %v912_v49 = vpop.f32.mrb[1].mxu0 }
  0xfb   : > { %v913_v50 = vadd.f32 %v912_v49, %v911_v47  ;;  %v986_v51 = vpop.f32.mrb[1].mxu1  ;;  %v914_v52 = vpop.f32.mrb[2].mxu0 }
  0xfc   : > { %v595_v53 = vpop.f32.mrb[2].mxu1  ;;  %v915_v54 = vpop.f32.mrb[3].mxu0 }
  0xfd   : > { %v593_v55 = vadd.f32 %v913_v50, %v592_v48  ;;  %v916_v56 = vadd.f32 %v915_v54, %v914_v52  ;;  %v987_v57 = vpop.f32.mrb[3].mxu1 }
  0xff   : > { %v596_v58 = vadd.f32 %v916_v56, %v595_v53  ;;  %v646_v59 = vmax.f32 %v593_v55, 0.0 }
 0x101   : > { %v647_v60 = vmax.f32 %v596_v58, 0.0  ;;  %v917_v61 = vpop.f32.mrb[4].mxu0 }
 0x102   : > { %v600_v62 = vpop.f32.mrb[4].mxu1  ;;  %v918_v63 = vpop.f32.mrb[5].mxu0 }
 0x103   : > { %v863_v0 = vpack.c.bf16 %v647_v60, %v646_v59  ;;  %v919_v1 = vadd.f32 %v918_v63, %v917_v61  ;;  %v990_v2 = vpop.f32.mrb[5].mxu1  ;;  %v920_v3 = vpop.f32.mrb[6].mxu0 }
 0x104   : > { %v603_v4 = vpop.f32.mrb[6].mxu1  ;;  %v921_v5 = vpop.f32.mrb[7].mxu0 }
 0x105   : > { %864 = vst [vmem:[%s1238_s14] sm:$0xff] %v863_v0   ;;  %v601_v6 = vadd.f32 %v919_v1, %v600_v62  ;;  %v922_v7 = vadd.f32 %v921_v5, %v920_v3  ;;  %v991_v8 = vpop.f32.mrb[7].mxu1 }
 0x107   : > { %v604_v9 = vadd.f32 %v922_v7, %v603_v4  ;;  %v648_v10 = vmax.f32 %v601_v6, 0.0 }
 0x109   : > { %v649_v11 = vmax.f32 %v604_v9, 0.0  ;;  %v923_v12 = vpop.f32.mrb[8].mxu0 }
 0x10a   : > { %v608_v13 = vpop.f32.mrb[8].mxu1  ;;  %v924_v14 = vpop.f32.mrb[9].mxu0 }
 0x10b   : > { %v868_v15 = vpack.c.bf16 %v649_v11, %v648_v10  ;;  %v925_v16 = vadd.f32 %v924_v14, %v923_v12  ;;  %v994_v17 = vpop.f32.mrb[9].mxu1  ;;  %v926_v18 = vpop.f32.mrb[10].mxu0 }
 0x10c   : > { %v611_v19 = vpop.f32.mrb[10].mxu1  ;;  %v927_v20 = vpop.f32.mrb[11].mxu0 }
 0x10d   : > { %890 = vst [vmem:[%s1238_s14 + $0x8] sm:$0xff] %v868_v15   ;;  %v609_v21 = vadd.f32 %v925_v16, %v608_v13  ;;  %v928_v22 = vadd.f32 %v927_v20, %v926_v18  ;;  %v995_v23 = vpop.f32.mrb[11].mxu1 }
 0x10f   : > { %v612_v24 = vadd.f32 %v928_v22, %v611_v19  ;;  %v650_v25 = vmax.f32 %v609_v21, 0.0 }
 0x111   : > { %v651_v26 = vmax.f32 %v612_v24, 0.0  ;;  %v929_v27 = vpop.f32.mrb[12].mxu0 }
 0x112   : > { %v616_v28 = vpop.f32.mrb[12].mxu1  ;;  %v930_v29 = vpop.f32.mrb[13].mxu0 }
 0x113   : > { %v873_v30 = vpack.c.bf16 %v651_v26, %v650_v25  ;;  %v931_v31 = vadd.f32 %v930_v29, %v929_v27  ;;  %v998_v32 = vpop.f32.mrb[13].mxu1  ;;  %v932_v33 = vpop.f32.mrb[14].mxu0 }
 0x114   : > { %v619_v34 = vpop.f32.mrb[14].mxu1  ;;  %v933_v35 = vpop.f32.mrb[15].mxu0 }
 0x115   : > { %891 = vst [vmem:[%s1238_s14 + $0x10] sm:$0xff] %v873_v30   ;;  %v617_v36 = vadd.f32 %v931_v31, %v616_v28  ;;  %v934_v37 = vadd.f32 %v933_v35, %v932_v33  ;;  %v999_v38 = vpop.f32.mrb[15].mxu1 }
 0x117   : > { %v620_v39 = vadd.f32 %v934_v37, %v619_v34  ;;  %v652_v40 = vmax.f32 %v617_v36, 0.0 }
 0x119   : > { %v653_v41 = vmax.f32 %v620_v39, 0.0  ;;  %v935_v42 = vpop.f32.mrb[16].mxu0 }
 0x11a   : > { %v624_v43 = vpop.f32.mrb[16].mxu1  ;;  %v936_v44 = vpop.f32.mrb[17].mxu0 }
 0x11b   : > { %v878_v45 = vpack.c.bf16 %v653_v41, %v652_v40  ;;  %v937_v46 = vadd.f32 %v936_v44, %v935_v42  ;;  %v1002_v47 = vpop.f32.mrb[17].mxu1  ;;  %v938_v48 = vpop.f32.mrb[18].mxu0 }
 0x11c   : > { %v627_v49 = vpop.f32.mrb[18].mxu1  ;;  %v939_v50 = vpop.f32.mrb[19].mxu0 }
 0x11d   : > { %892 = vst [vmem:[%s1238_s14 + $0x18] sm:$0xff] %v878_v45   ;;  %v625_v51 = vadd.f32 %v937_v46, %v624_v43  ;;  %v940_v52 = vadd.f32 %v939_v50, %v938_v48  ;;  %v1003_v53 = vpop.f32.mrb[19].mxu1 }
 0x11f   : > { %v628_v54 = vadd.f32 %v940_v52, %v627_v49  ;;  %v654_v55 = vmax.f32 %v625_v51, 0.0 }
 0x121   : > { %v655_v56 = vmax.f32 %v628_v54, 0.0  ;;  %v941_v57 = vpop.f32.mrb[20].mxu0 }
 0x122   : > { %v632_v58 = vpop.f32.mrb[20].mxu1  ;;  %v942_v59 = vpop.f32.mrb[21].mxu0 }
 0x123   : > { %v883_v60 = vpack.c.bf16 %v655_v56, %v654_v55  ;;  %v943_v61 = vadd.f32 %v942_v59, %v941_v57  ;;  %v1006_v62 = vpop.f32.mrb[21].mxu1  ;;  %v944_v63 = vpop.f32.mrb[22].mxu0 }
 0x124   : > { %v635_v0 = vpop.f32.mrb[22].mxu1  ;;  %v945_v1 = vpop.f32.mrb[23].mxu0 }
 0x125   : > { %893 = vst [vmem:[%s1238_s14 + $0x20] sm:$0xff] %v883_v60   ;;  %v633_v2 = vadd.f32 %v943_v61, %v632_v58  ;;  %v946_v3 = vadd.f32 %v945_v1, %v944_v63  ;;  %v1007_v4 = vpop.f32.mrb[23].mxu1 }
 0x127   : > { %v636_v5 = vadd.f32 %v946_v3, %v635_v0  ;;  %v656_v6 = vmax.f32 %v633_v2, 0.0 }
 0x129   : > { %v657_v7 = vmax.f32 %v636_v5, 0.0  ;;  %v947_v8 = vpop.f32.mrb[24].mxu0 }
 0x12a   : > { %v640_v9 = vpop.f32.mrb[24].mxu1  ;;  %v948_v10 = vpop.f32.mrb[25].mxu0 }
 0x12b   : > { %v888_v11 = vpack.c.bf16 %v657_v7, %v656_v6  ;;  %v949_v12 = vadd.f32 %v948_v10, %v947_v8  ;;  %v1010_v13 = vpop.f32.mrb[25].mxu1  ;;  %v950_v14 = vpop.f32.mrb[26].mxu0 }
 0x12c   : > { %v643_v15 = vpop.f32.mrb[26].mxu1  ;;  %v951_v16 = vpop.f32.mrb[27].mxu0 }
 0x12d   : > { %894 = vst [vmem:[%s1238_s14 + $0x28] sm:$0xff] %v888_v11   ;;  %v641_v17 = vadd.f32 %v949_v12, %v640_v9  ;;  %v1011_v18 = vpop.f32.mrb[27].mxu1 }
 0x12f   : > { %v658_v19 = vmax.f32 %v641_v17, 0.0 }
 0x131   : > { %v859_v20 = vpack.c.bf16 %v658_v19, %v658_v19 }
 0x133   : > { %724 = vst [vmem:[%s1238_s14 + $0x30] sm:$0x3] %v859_v20 }
 0x134 PF: > { %s12_s9 = sadd.s32 1, %s1081_s9  }
 0x135   : > { %p9_p4 = scmp.ge.s32.totalorder %s12_s9, 4  }
 0x137   :  { %11 = sbr.rel (!%p9_p4) target bundleno = 1 (0x1), region = 58 }

</bundles_post_ra>
